<compile_context>
chip_gen: v7x
topology: tpu7x:2x2x1
jax: 0.10.0
libtpu: 0.0.40
codegen_flags: <defaults>
</compile_context>

<pallas_src>
import functools
import math

import jax
import jax.numpy as jnp
from jax import lax
from jax.experimental import pallas as pl
from jax.experimental.pallas import tpu as pltpu

F32 = jnp.float32
BF16 = jnp.bfloat16
# 48 MiB: above the scoped default on v5e (16) / v6e,v7x (32); below v7x's 64 MiB physical.
_VMEM_LIMIT = 48 * 1024 * 1024


# ---------------------------------------------------------------------------
# small helpers
# ---------------------------------------------------------------------------
def _round_up(x, m):
    return (x + m - 1) // m * m


def _pad_rows(x, rows):
    if x.shape[0] == rows:
        return x
    return jnp.pad(x, ((0, rows - x.shape[0]), (0, 0)))


def _row_grid(M, block_rows=512):
    bm = min(block_rows, _round_up(M, 8))
    return bm, _round_up(M, bm)


def _dot(a, b):
    return lax.dot_general(a, b, (((1,), (0,)), ((), ())),
                           preferred_element_type=F32)


def _dot_t(a, b):  # a @ b.T
    return lax.dot_general(a, b, (((1,), (1,)), ((), ())),
                           preferred_element_type=F32)


def _softmax_rows(x):
    x = x - jnp.max(x, axis=-1, keepdims=True)
    e = jnp.exp(x)
    return e * pl.reciprocal(jnp.sum(e, axis=-1, keepdims=True), approx=True)


def _softmax_cols(x):
    x = x - jnp.max(x, axis=-2, keepdims=True)
    e = jnp.exp(x)
    return e * pl.reciprocal(jnp.sum(e, axis=-2, keepdims=True), approx=True)


# ---------------------------------------------------------------------------
# Pallas kernels
# ---------------------------------------------------------------------------
def _fc1_kernel(x_ref, w_ref, b_ref, o_ref):
    # Linear(L->D) + ReLU, bf16 MXU matmul, f32 accumulate.
    y = _dot(x_ref[...].astype(BF16), w_ref[...]) + b_ref[...]
    o_ref[...] = jnp.maximum(y, 0.0)


def _ln_qkv_kernel(x_ref, g_ref, b_ref, w_ref, o_ref):
    # fused LayerNorm (f32) + qkv projection (bf16 MXU, no bias).
    x = x_ref[...]
    mu = jnp.mean(x, axis=-1, keepdims=True)
    xc = x - mu
    var = jnp.mean(xc * xc, axis=-1, keepdims=True)
    xn = xc * lax.rsqrt(var + 1e-5) * g_ref[...] + b_ref[...]
    o_ref[...] = _dot(xn.astype(BF16), w_ref[...]).astype(BF16)


def _out_res_kernel(a_ref, w_ref, b_ref, r_ref, o_ref):
    # fused to_out Linear + bias + residual add (residual stream stays f32).
    y = _dot(a_ref[...], w_ref[...])
    o_ref[...] = y + b_ref[...] + r_ref[...]


def _layernorm_kernel(x_ref, g_ref, b_ref, o_ref):
    x = x_ref[...]
    mu = jnp.mean(x, axis=-1, keepdims=True)
    xc = x - mu
    var = jnp.mean(xc * xc, axis=-1, keepdims=True)
    o_ref[...] = xc * lax.rsqrt(var + 1e-5) * g_ref[...] + b_ref[...]


def _ppeg_kernel(xp_ref, w_ref, b_ref, o_ref):
    # combined depthwise 7x7 (7x7 + 5x5 + 3x3 + identity folded into one kernel)
    H, W, C = o_ref.shape
    K = w_ref.shape[0]
    acc = jnp.zeros((H, W, C), F32) + b_ref[...]          # bias hoisted once
    for i in range(K):                                    # static unrolled taps
        for j in range(K):
            acc = acc + xp_ref[i:i + H, j:j + W, :] * w_ref[i:i + 1, j:j + 1, :]
    o_ref[...] = acc


def _nystrom_kernel(q_ref, k_ref, vp_ref, ql_ref, kl_ref, wr_ref, *out_refs,
                    iters, n, compute_attn):
    out_ref = out_refs[0]
    q = q_ref[...]                 # (n, d) bf16, pre-scaled by dim_head**-0.5
    k = k_ref[...]                 # (n, d) bf16
    ql = ql_ref[...]               # (m, d) bf16 landmark means of (scaled) q
    kl = kl_ref[...]               # (m, d) bf16 landmark means of k
    v = vp_ref[16:16 + n, :]       # (n, d) bf16 (center window of conv-padded v)

    attn1 = _softmax_rows(_dot_t(q, kl))     # (n, m) f32
    sim2 = _dot_t(ql, kl)                    # (m, m) f32
    sim2t = _dot_t(kl, ql)                   # (m, m) == sim2.T
    attn2 = _softmax_rows(sim2)
    attn2t = _softmax_cols(sim2t)            # == attn2.T (no transpose / identity matmul)
    attn3 = _softmax_rows(_dot_t(ql, k))     # (m, n) f32

    # Moore-Penrose iterative pseudo-inverse of attn2 (kept in f32).
    msz = attn2.shape[-1]
    ri = lax.broadcasted_iota(jnp.int32, (msz, msz), 0)
    ci = lax.broadcasted_iota(jnp.int32, (msz, msz), 1)
    eye = jnp.where(ri == ci, 1.0, 0.0).astype(F32)
    e7, e13, e15 = 7.0 * eye, 13.0 * eye, 15.0 * eye

    abs2 = jnp.abs(attn2)
    col = jnp.sum(abs2, axis=-1, keepdims=True)           # (m, 1)
    row = jnp.sum(abs2, axis=-2, keepdims=True)           # (1, m)
    denom = (jnp.max(col, axis=0, keepdims=True) *
             jnp.max(row, axis=1, keepdims=True))         # (1, 1)
    z = attn2t / denom
    for _ in range(iters):
        xz = _dot(attn2, z)
        z = 0.25 * _dot(z, e13 - _dot(xz, e15 - _dot(xz, e7 - xz)))

    a1z = _dot(attn1.astype(BF16), z.astype(BF16))        # (n, m) f32
    a1z_b = a1z.astype(BF16)
    a3v = _dot(attn3.astype(BF16), v)                     # (m, d) f32
    out = _dot(a1z_b, a3v.astype(BF16))                   # (n, d) f32

    # residual depthwise conv on v: 33 shifted adds (replaces n x n Toeplitz matmul)
    res = jnp.zeros_like(out)
    for t in range(33):
        res = res + vp_ref[t:t + n, :].astype(F32) * wr_ref[0:1, t:t + 1]
    out_ref[...] = (out + res).astype(out_ref.dtype)

    if compute_attn:
        out_refs[1][...] = _dot(a1z_b, attn3.astype(BF16))


# ---------------------------------------------------------------------------
# pallas_call wrappers
# ---------------------------------------------------------------------------
def fc1_relu(x, w_bf16, b):
    M, L = x.shape
    D = w_bf16.shape[1]
    bm, Mp = _row_grid(M)
    y = pl.pallas_call(
        _fc1_kernel,
        grid=(Mp // bm,),
        in_specs=[
            pl.BlockSpec((bm, L), lambda i: (i, 0)),
            pl.BlockSpec((L, D), lambda i: (0, 0)),
            pl.BlockSpec((1, D), lambda i: (0, 0)),
        ],
        out_specs=pl.BlockSpec((bm, D), lambda i: (i, 0)),
        out_shape=jax.ShapeDtypeStruct((Mp, D), F32),
        compiler_params=pltpu.CompilerParams(
            dimension_semantics=("parallel",), vmem_limit_bytes=_VMEM_LIMIT),
    )(_pad_rows(x, Mp), w_bf16, b.reshape(1, D))
    return y[:M]


def ln_qkv(x, g, b, w_bf16):
    M, D = x.shape
    N3 = w_bf16.shape[1]
    bm, Mp = _row_grid(M)
    y = pl.pallas_call(
        _ln_qkv_kernel,
        grid=(Mp // bm,),
        in_specs=[
            pl.BlockSpec((bm, D), lambda i: (i, 0)),
            pl.BlockSpec((1, D), lambda i: (0, 0)),
            pl.BlockSpec((1, D), lambda i: (0, 0)),
            pl.BlockSpec((D, N3), lambda i: (0, 0)),
        ],
        out_specs=pl.BlockSpec((bm, N3), lambda i: (i, 0)),
        out_shape=jax.ShapeDtypeStruct((Mp, N3), BF16),
        compiler_params=pltpu.CompilerParams(
            dimension_semantics=("parallel",), vmem_limit_bytes=_VMEM_LIMIT),
    )(_pad_rows(x, Mp), g.reshape(1, D), b.reshape(1, D), w_bf16)
    return y[:M]


def out_res(a_bf16, w_bf16, b, resid):
    M, K = a_bf16.shape
    D = w_bf16.shape[1]
    bm, Mp = _row_grid(M)
    y = pl.pallas_call(
        _out_res_kernel,
        grid=(Mp // bm,),
        in_specs=[
            pl.BlockSpec((bm, K), lambda i: (i, 0)),
            pl.BlockSpec((K, D), lambda i: (0, 0)),
            pl.BlockSpec((1, D), lambda i: (0, 0)),
            pl.BlockSpec((bm, D), lambda i: (i, 0)),
        ],
        out_specs=pl.BlockSpec((bm, D), lambda i: (i, 0)),
        out_shape=jax.ShapeDtypeStruct((Mp, D), F32),
        compiler_params=pltpu.CompilerParams(
            dimension_semantics=("parallel",), vmem_limit_bytes=_VMEM_LIMIT),
    )(_pad_rows(a_bf16, Mp), w_bf16, b.reshape(1, D), _pad_rows(resid, Mp))
    return y[:M]


def layernorm_rows(x, g, b):
    M, D = x.shape
    return pl.pallas_call(
        _layernorm_kernel,
        out_shape=jax.ShapeDtypeStruct((M, D), F32),
    )(x, g.reshape(1, D), b.reshape(1, D))


def ppeg_conv(cnn_feat, w_comb, b_comb):
    """cnn_feat NHWC (B,H,W,C); combined depthwise 7x7 (incl. 5x5, 3x3, identity)."""
    B, H, W, C = cnn_feat.shape
    K = w_comb.shape[0]
    pad = K // 2
    xp = jnp.pad(cnn_feat, ((0, 0), (pad, pad), (pad, pad), (0, 0)))
    Hp, Wp = H + 2 * pad, W + 2 * pad
    # TODO(synk): for very large feature maps, tile H on a second grid axis and
    # move the W-offset taps onto pltpu.roll to avoid sublane-unaligned slices.
    return pl.pallas_call(
        _ppeg_kernel,
        grid=(B,),
        in_specs=[
            pl.BlockSpec((None, Hp, Wp, C), lambda b: (b, 0, 0, 0)),
            pl.BlockSpec((K, K, C), lambda b: (0, 0, 0)),
            pl.BlockSpec((1, 1, C), lambda b: (0, 0, 0)),
        ],
        out_specs=pl.BlockSpec((None, H, W, C), lambda b: (b, 0, 0, 0)),
        out_shape=jax.ShapeDtypeStruct((B, H, W, C), F32),
        compiler_params=pltpu.CompilerParams(
            dimension_semantics=("parallel",), vmem_limit_bytes=_VMEM_LIMIT),
    )(xp, w_comb, b_comb.reshape(1, 1, C))


def nystrom_core(q, k, v_pad, ql, kl, w_res, *, iters, return_attn):
    B, Hh, Np, Dh = q.shape
    m = ql.shape[2]
    seq_spec = pl.BlockSpec((None, None, Np, Dh), lambda b, h: (b, h, 0, 0))
    lm_spec = pl.BlockSpec((None, None, m, Dh), lambda b, h: (b, h, 0, 0))
    vp_spec = pl.BlockSpec((None, None, Np + 32, Dh), lambda b, h: (b, h, 0, 0))
    wr_spec = pl.BlockSpec((None, 1, 33), lambda b, h: (h, 0, 0))
    out_spec = pl.BlockSpec((None, None, Np, Dh), lambda b, h: (b, h, 0, 0))
    out_shape = jax.ShapeDtypeStruct((B, Hh, Np, Dh), BF16)
    if return_attn:
        out_specs = [out_spec,
                     pl.BlockSpec((None, None, Np, Np), lambda b, h: (b, h, 0, 0))]
        out_shapes = [out_shape, jax.ShapeDtypeStruct((B, Hh, Np, Np), F32)]
    else:
        out_specs, out_shapes = out_spec, out_shape
    # TODO(synk): for very long sequences (n ~ thousands) tile the query axis on a
    # third grid dim with the m x m pinv kept in scratch; the dense (n, n) attention
    # map output (required by the reference when return_attn=True) is inherently O(n^2).
    res = pl.pallas_call(
        functools.partial(_nystrom_kernel, iters=iters, n=Np,
                          compute_attn=return_attn),
        grid=(B, Hh),
        in_specs=[seq_spec, seq_spec, vp_spec, lm_spec, lm_spec, wr_spec],
        out_specs=out_specs,
        out_shape=out_shapes,
        compiler_params=pltpu.CompilerParams(
            dimension_semantics=("parallel", "parallel"),
            vmem_limit_bytes=_VMEM_LIMIT),
    )(q, k, v_pad, ql, kl, w_res)
    if return_attn:
        out, attn = res
        return out, attn
    return res, None


# ---------------------------------------------------------------------------
# Model glue (plain JAX: reshapes, padding, parameter setup)
# ---------------------------------------------------------------------------
def trans_layer(x, p, return_attn=True):
    """x: (B, nseq, D) f32 -> (x + NystromAttention(LayerNorm(x)), attn)."""
    B, nseq, D = x.shape
    heads, dh = p["heads"], p["dim_head"]
    m, iters = p["num_landmarks"], p["pinv_iterations"]
    HD = heads * dh
    rows = x.reshape(B * nseq, D)

    # fused LayerNorm + qkv projection; q-scale folded into the q columns of w_qkv
    col_scale = jnp.concatenate(
        [jnp.full((HD,), dh ** -0.5, F32), jnp.ones((2 * HD,), F32)])
    w_qkv = (p["w_qkv"] * col_scale[None, :]).astype(BF16)
    qkv = ln_qkv(rows, p["ln_g"], p["ln_b"], w_qkv)      # (B*nseq, 3*HD) bf16

    # front-pad sequence to a multiple of num_landmarks (reference pads before qkv;
    # equivalent here because to_qkv has no bias, so padded rows map to zero q/k/v)
    pad = (m - nseq % m) % m
    n_pad = nseq + pad
    qkv = qkv.reshape(B, nseq, 3, heads, dh)
    qkv = jnp.pad(qkv, ((0, 0), (pad, 0), (0, 0), (0, 0), (0, 0)))
    qkv = qkv.transpose(2, 0, 3, 1, 4)                   # (3, B, H, n_pad, dh)
    q, k, v = qkv[0], qkv[1], qkv[2]

    # landmark means (block-diagonal pooling done as a cheap XLA reduction:
    # no (m, n) pooling matrix and no MXU pooling matmul inside the kernel)
    l = n_pad // m
    ql = q.reshape(B, heads, m, l, dh).astype(F32).mean(axis=3).astype(BF16)
    kl = k.reshape(B, heads, m, l, dh).astype(F32).mean(axis=3).astype(BF16)

    v_pad = jnp.pad(v, ((0, 0), (0, 0), (16, 16), (0, 0)))   # zero pad for 33-tap conv
    w_res = p["w_res"].reshape(heads, 1, 33).astype(F32)

    out, attn = nystrom_core(q, k, v_pad, ql, kl, w_res,
                             iters=iters, return_attn=return_attn)

    # merge heads, drop front pad (to_out is row-wise, so trimming first is equivalent)
    out = out.transpose(0, 2, 1, 3).reshape(B, n_pad, HD)[:, pad:]
    new_x = out_res(out.reshape(B * nseq, HD), p["w_out"].astype(BF16),
                    p["b_out"], rows)
    return new_x.reshape(B, nseq, D), attn


def transmil_forward(x, params, return_attn=True):
    B, n, L = x.shape
    D = params["D"]
    h = fc1_relu(x.reshape(B * n, L).astype(F32),
                 params["w_fc1"].astype(BF16), params["b_fc1"]).reshape(B, n, D)

    _H = _W = int(math.ceil(math.sqrt(n)))
    add = _H * _W - n
    h = jnp.concatenate([h, h[:, :add, :]], axis=1)
    cls = jnp.broadcast_to(params["cls_token"], (B, 1, D)).astype(F32)
    h = jnp.concatenate([cls, h], axis=1)                # (B, _H*_W + 1, D)

    h, attn0 = trans_layer(h, params["layer1"], return_attn)

    # PPEG positional encoding
    cls_t, feat = h[:, :1], h[:, 1:]
    cnn = feat.reshape(B, _H, _W, D)                     # NHWC (== PyTorch NCHW permuted)
    conv = ppeg_conv(cnn, params["ppeg_w"], params["ppeg_b"])
    h = jnp.concatenate([cls_t, conv.reshape(B, _H * _W, D)], axis=1)

    h, attn1 = trans_layer(h, params["layer2"], return_attn)

    # final LayerNorm is row-wise -> only normalize the cls row forward() keeps
    h_cls = layernorm_rows(h[:, 0], params["ln_g"], params["ln_b"])
    return h_cls, [attn0, attn1]


def init_params(key, L, D, heads):
    assert D % heads == 0 and D % 2 == 0
    d_head = D // heads
    keys = jax.random.split(key, 12)

    def nrm(k, shape, s=0.05):
        return s * jax.random.normal(k, shape, F32)

    def layer_params(k):
        ks = jax.random.split(k, 4)
        return {
            "heads": heads, "dim_head": d_head,
            "num_landmarks": D // 2, "pinv_iterations": 6,
            "ln_g": jnp.ones((D,), F32),
            "ln_b": jnp.zeros((D,), F32),
            "w_qkv": nrm(ks[0], (D, 3 * heads * d_head)),
            "w_out": nrm(ks[1], (heads * d_head, D)),
            "b_out": nrm(ks[2], (D,), 0.01),
            "w_res": nrm(ks[3], (heads, 33)),
        }

    # PPEG: combine depthwise 7x7 + 5x5 + 3x3 + identity into one 7x7 kernel
    w7 = nrm(keys[5], (D, 7, 7)); b7 = nrm(keys[6], (D,), 0.01)
    w5 = nrm(keys[7], (D, 5, 5)); b5 = nrm(keys[8], (D,), 0.01)
    w3 = nrm(keys[9], (D, 3, 3)); b3 = nrm(keys[10], (D,), 0.01)
    wc = jnp.transpose(w7, (1, 2, 0))
    wc = wc.at[1:6, 1:6, :].add(jnp.transpose(w5, (1, 2, 0)))
    wc = wc.at[2:5, 2:5, :].add(jnp.transpose(w3, (1, 2, 0)))
    wc = wc.at[3, 3, :].add(1.0)                         # + cnn_feat (identity)
    bc = b7 + b5 + b3

    return {
        "D": D,
        "w_fc1": nrm(keys[0], (L, D)),
        "b_fc1": nrm(keys[1], (D,), 0.01),
        "cls_token": jax.random.normal(keys[2], (1, 1, D), F32),
        "layer1": layer_params(keys[3]),
        "layer2": layer_params(keys[4]),
        "ppeg_w": wc,
        "ppeg_b": bc,
        "ln_g": jnp.ones((D,), F32),
        "ln_b": jnp.zeros((D,), F32),
    }


if __name__ == "__main__":
    key = jax.random.PRNGKey(0)
    kx, kp = jax.random.split(key)
    # small shapes consistent with the module (L=feature dim, D=model dim)
    B, n, L, D, heads = 2, 8, 48, 32, 8
    x = jax.random.normal(kx, (B, n, L), jnp.float32)
    params = init_params(kp, L, D, heads)

    fwd = jax.jit(lambda inp: transmil_forward(inp, params, return_attn=True))
    h, attns = fwd(x)
    jax.block_until_ready((h, attns))

    assert h.shape == (B, D)
    assert attns[0].shape[0] == B and attns[0].shape[1] == heads
    assert bool(jnp.all(jnp.isfinite(h)))
    print("KERNEL_OK")
</pallas_src>

<mosaic_0001>
module attributes {stable_mosaic.version = 11 : i64} {
  func.func @_fc1_kernel(%arg0: i32, %arg1: memref<16x48xf32, #tpu.memory_space<vmem>>, %arg2: memref<48x32xbf16, #tpu.memory_space<vmem>>, %arg3: memref<1x32xf32, #tpu.memory_space<vmem>>, %arg4: memref<16x32xf32, #tpu.memory_space<vmem>>) attributes {dimension_semantics = [#tpu.dimension_semantics<parallel>], iteration_bounds = array<i64: 1>, scalar_prefetch = 0 : i64, scratch_operands = 0 : i64, tpu.core_type = #tpu.core_type<tc>, window_params = [{transform_indices = @transform_0, window_bounds = array<i64: 16, 48>}, {pipeline_mode = #tpu.pipeline_mode<synchronous>, transform_indices = @transform_1, window_bounds = array<i64: 48, 32>}, {pipeline_mode = #tpu.pipeline_mode<synchronous>, transform_indices = @transform_2, window_bounds = array<i64: 1, 32>}, {transform_indices = @transform_3, window_bounds = array<i64: 16, 32>}]} {
    %c0 = arith.constant 0 : index
    %c0_0 = arith.constant 0 : index
    %0 = vector.load %arg1[%c0, %c0_0] : memref<16x48xf32, #tpu.memory_space<vmem>>, vector<16x48xf32>
    %1 = arith.truncf %0 : vector<16x48xf32> to vector<16x48xbf16>
    %c0_1 = arith.constant 0 : index
    %c0_2 = arith.constant 0 : index
    %2 = vector.load %arg2[%c0_1, %c0_2] : memref<48x32xbf16, #tpu.memory_space<vmem>>, vector<48x32xbf16>
    %cst = arith.constant dense<0.000000e+00> : vector<16x32xf32>
    %3 = tpu.matmul %1, %2, %cst {dimension_numbers = #tpu.dot_dimension_numbers<[1], [0], [0], [1], [0, 0, 1, 1], [], []>} : vector<16x48xbf16>, vector<48x32xbf16>, vector<16x32xf32> -> vector<16x32xf32>
    %c0_3 = arith.constant 0 : index
    %c0_4 = arith.constant 0 : index
    %4 = vector.load %arg3[%c0_3, %c0_4] : memref<1x32xf32, #tpu.memory_space<vmem>>, vector<1x32xf32>
    %5 = vector.broadcast %4 : vector<1x32xf32> to vector<16x32xf32>
    %6 = arith.addf %3, %5 : vector<16x32xf32>
    %cst_5 = arith.constant 0.000000e+00 : f32
    %7 = vector.broadcast %cst_5 : f32 to vector<16x32xf32>
    %8 = arith.maximumf %6, %7 : vector<16x32xf32>
    %c0_6 = arith.constant 0 : index
    %c0_7 = arith.constant 0 : index
    %9 = vector.load %arg4[%c0_6, %c0_7] : memref<16x32xf32, #tpu.memory_space<vmem>>, vector<16x32xf32>
    tpu.vector_store %arg4[%c0_6, %c0_7], %8 {strides = array<i32>} : memref<16x32xf32, #tpu.memory_space<vmem>>, vector<16x32xf32>,
    return
  }
  func.func @transform_0(%arg0: i32) -> (i32, i32) {
    %c0_i32 = arith.constant 0 : i32
    %c0_i32_0 = arith.constant 0 : i32
    return %arg0, %c0_i32 : i32, i32
  }
  func.func @transform_1(%arg0: i32) -> (i32, i32) {
    %c0_i32 = arith.constant 0 : i32
    %c0_i32_0 = arith.constant 0 : i32
    %c0_i32_1 = arith.constant 0 : i32
    return %c0_i32, %c0_i32_0 : i32, i32
  }
  func.func @transform_2(%arg0: i32) -> (i32, i32) {
    %c0_i32 = arith.constant 0 : i32
    %c0_i32_0 = arith.constant 0 : i32
    %c0_i32_1 = arith.constant 0 : i32
    return %c0_i32, %c0_i32_0 : i32, i32
  }
  func.func @transform_3(%arg0: i32) -> (i32, i32) {
    %c0_i32 = arith.constant 0 : i32
    %c0_i32_0 = arith.constant 0 : i32
    return %arg0, %c0_i32 : i32, i32
  }
}

module attributes {stable_mosaic.version = 11 : i64} {
  func.func @_ln_qkv_kernel(%arg0: i32, %arg1: memref<24x32xf32, #tpu.memory_space<vmem>>, %arg2: memref<1x32xf32, #tpu.memory_space<vmem>>, %arg3: memref<1x32xf32, #tpu.memory_space<vmem>>, %arg4: memref<32x96xbf16, #tpu.memory_space<vmem>>, %arg5: memref<24x96xbf16, #tpu.memory_space<vmem>>) attributes {dimension_semantics = [#tpu.dimension_semantics<parallel>], iteration_bounds = array<i64: 1>, scalar_prefetch = 0 : i64, scratch_operands = 0 : i64, tpu.core_type = #tpu.core_type<tc>, window_params = [{transform_indices = @transform_0, window_bounds = array<i64: 24, 32>}, {pipeline_mode = #tpu.pipeline_mode<synchronous>, transform_indices = @transform_1, window_bounds = array<i64: 1, 32>}, {pipeline_mode = #tpu.pipeline_mode<synchronous>, transform_indices = @transform_2, window_bounds = array<i64: 1, 32>}, {pipeline_mode = #tpu.pipeline_mode<synchronous>, transform_indices = @transform_3, window_bounds = array<i64: 32, 96>}, {transform_indices = @transform_4, window_bounds = array<i64: 24, 96>}]} {
    %c0 = arith.constant 0 : index
    %c0_0 = arith.constant 0 : index
    %0 = vector.load %arg1[%c0, %c0_0] : memref<24x32xf32, #tpu.memory_space<vmem>>, vector<24x32xf32>
    %cst = arith.constant dense<0.000000e+00> : vector<24xf32>
    %1 = vector.multi_reduction <add>, %0, %cst [1] : vector<24x32xf32> to vector<24xf32>
    %2 = vector.shape_cast %1 : vector<24xf32> to vector<24x1xf32>
    %cst_1 = arith.constant 3.200000e+01 : f32
    %3 = vector.broadcast %cst_1 : f32 to vector<24x1xf32>
    %4 = arith.divf %2, %3 : vector<24x1xf32>
    %5 = vector.broadcast %4 : vector<24x1xf32> to vector<24x32xf32>
    %6 = arith.subf %0, %5 : vector<24x32xf32>
    %7 = arith.mulf %6, %6 : vector<24x32xf32>
    %cst_2 = arith.constant dense<0.000000e+00> : vector<24xf32>
    %8 = vector.multi_reduction <add>, %7, %cst_2 [1] : vector<24x32xf32> to vector<24xf32>
    %9 = vector.shape_cast %8 : vector<24xf32> to vector<24x1xf32>
    %cst_3 = arith.constant 3.200000e+01 : f32
    %10 = vector.broadcast %cst_3 : f32 to vector<24x1xf32>
    %11 = arith.divf %9, %10 : vector<24x1xf32>
    %cst_4 = arith.constant 9.99999974E-6 : f32
    %12 = vector.broadcast %cst_4 : f32 to vector<24x1xf32>
    %13 = arith.addf %11, %12 : vector<24x1xf32>
    %14 = math.rsqrt %13 : vector<24x1xf32>
    %15 = vector.broadcast %14 : vector<24x1xf32> to vector<24x32xf32>
    %16 = arith.mulf %6, %15 : vector<24x32xf32>
    %c0_5 = arith.constant 0 : index
    %c0_6 = arith.constant 0 : index
    %17 = vector.load %arg2[%c0_5, %c0_6] : memref<1x32xf32, #tpu.memory_space<vmem>>, vector<1x32xf32>
    %18 = vector.broadcast %17 : vector<1x32xf32> to vector<24x32xf32>
    %19 = arith.mulf %16, %18 : vector<24x32xf32>
    %c0_7 = arith.constant 0 : index
    %c0_8 = arith.constant 0 : index
    %20 = vector.load %arg3[%c0_7, %c0_8] : memref<1x32xf32, #tpu.memory_space<vmem>>, vector<1x32xf32>
    %21 = vector.broadcast %20 : vector<1x32xf32> to vector<24x32xf32>
    %22 = arith.addf %19, %21 : vector<24x32xf32>
    %23 = arith.truncf %22 : vector<24x32xf32> to vector<24x32xbf16>
    %c0_9 = arith.constant 0 : index
    %c0_10 = arith.constant 0 : index
    %24 = vector.load %arg4[%c0_9, %c0_10] : memref<32x96xbf16, #tpu.memory_space<vmem>>, vector<32x96xbf16>
    %cst_11 = arith.constant dense<0.000000e+00> : vector<24x96xf32>
    %25 = tpu.matmul %23, %24, %cst_11 {dimension_numbers = #tpu.dot_dimension_numbers<[1], [0], [0], [1], [0, 0, 1, 1], [], []>} : vector<24x32xbf16>, vector<32x96xbf16>, vector<24x96xf32> -> vector<24x96xf32>
    %26 = arith.truncf %25 : vector<24x96xf32> to vector<24x96xbf16>
    %c0_12 = arith.constant 0 : index
    %c0_13 = arith.constant 0 : index
    %27 = vector.load %arg5[%c0_12, %c0_13] : memref<24x96xbf16, #tpu.memory_space<vmem>>, vector<24x96xbf16>
    tpu.vector_store %arg5[%c0_12, %c0_13], %26 {strides = array<i32>} : memref<24x96xbf16, #tpu.memory_space<vmem>>, vector<24x96xbf16>,
    return
  }
  func.func @transform_0(%arg0: i32) -> (i32, i32) {
    %c0_i32 = arith.constant 0 : i32
    %c0_i32_0 = arith.constant 0 : i32
    return %arg0, %c0_i32 : i32, i32
  }
  func.func @transform_1(%arg0: i32) -> (i32, i32) {
    %c0_i32 = arith.constant 0 : i32
    %c0_i32_0 = arith.constant 0 : i32
    %c0_i32_1 = arith.constant 0 : i32
    return %c0_i32, %c0_i32_0 : i32, i32
  }
  func.func @transform_2(%arg0: i32) -> (i32, i32) {
    %c0_i32 = arith.constant 0 : i32
    %c0_i32_0 = arith.constant 0 : i32
    %c0_i32_1 = arith.constant 0 : i32
    return %c0_i32, %c0_i32_0 : i32, i32
  }
  func.func @transform_3(%arg0: i32) -> (i32, i32) {
    %c0_i32 = arith.constant 0 : i32
    %c0_i32_0 = arith.constant 0 : i32
    %c0_i32_1 = arith.constant 0 : i32
    return %c0_i32, %c0_i32_0 : i32, i32
  }
  func.func @transform_4(%arg0: i32) -> (i32, i32) {
    %c0_i32 = arith.constant 0 : i32
    %c0_i32_0 = arith.constant 0 : i32
    return %arg0, %c0_i32 : i32, i32
  }
}

module attributes {stable_mosaic.version = 11 : i64} {
  func.func @_nystrom_kernel(%arg0: i32, %arg1: i32, %arg2: memref<1x1x16x4xbf16, #tpu.memory_space<vmem>>, %arg3: memref<1x1x16x4xbf16, #tpu.memory_space<vmem>>, %arg4: memref<1x1x48x4xbf16, #tpu.memory_space<vmem>>, %arg5: memref<1x1x16x4xbf16, #tpu.memory_space<vmem>>, %arg6: memref<1x1x16x4xbf16, #tpu.memory_space<vmem>>, %arg7: memref<1x1x33xf32, #tpu.memory_space<vmem>>, %arg8: memref<1x1x16x4xbf16, #tpu.memory_space<vmem>>, %arg9: memref<1x1x16x16xf32, #tpu.memory_space<vmem>>) attributes {dimension_semantics = [#tpu.dimension_semantics<parallel>, #tpu.dimension_semantics<parallel>], iteration_bounds = array<i64: 2, 8>, scalar_prefetch = 0 : i64, scratch_operands = 0 : i64, tpu.core_type = #tpu.core_type<tc>, window_params = [{transform_indices = @transform_0, window_bounds = array<i64: 1, 1, 16, 4>}, {transform_indices = @transform_1, window_bounds = array<i64: 1, 1, 16, 4>}, {transform_indices = @transform_2, window_bounds = array<i64: 1, 1, 48, 4>}, {transform_indices = @transform_3, window_bounds = array<i64: 1, 1, 16, 4>}, {transform_indices = @transform_4, window_bounds = array<i64: 1, 1, 16, 4>}, {transform_indices = @transform_5, window_bounds = array<i64: 1, 1, 33>}, {transform_indices = @transform_6, window_bounds = array<i64: 1, 1, 16, 4>}, {transform_indices = @transform_7, window_bounds = array<i64: 1, 1, 16, 16>}]} {
    %c0 = arith.constant 0 : index
    %c0_0 = arith.constant 0 : index
    %c0_1 = arith.constant 0 : index
    %c0_2 = arith.constant 0 : index
    %0 = vector.load %arg2[%c0, %c0_0, %c0_1, %c0_2] : memref<1x1x16x4xbf16, #tpu.memory_space<vmem>>, vector<1x1x16x4xbf16>
    %1 = vector.shape_cast %0 : vector<1x1x16x4xbf16> to vector<16x4xbf16>
    %c0_3 = arith.constant 0 : index
    %c0_4 = arith.constant 0 : index
    %c0_5 = arith.constant 0 : index
    %c0_6 = arith.constant 0 : index
    %2 = vector.load %arg3[%c0_3, %c0_4, %c0_5, %c0_6] : memref<1x1x16x4xbf16, #tpu.memory_space<vmem>>, vector<1x1x16x4xbf16>
    %3 = vector.shape_cast %2 : vector<1x1x16x4xbf16> to vector<16x4xbf16>
    %c0_7 = arith.constant 0 : index
    %c0_8 = arith.constant 0 : index
    %c0_9 = arith.constant 0 : index
    %c0_10 = arith.constant 0 : index
    %4 = vector.load %arg5[%c0_7, %c0_8, %c0_9, %c0_10] : memref<1x1x16x4xbf16, #tpu.memory_space<vmem>>, vector<1x1x16x4xbf16>
    %5 = vector.shape_cast %4 : vector<1x1x16x4xbf16> to vector<16x4xbf16>
    %c0_11 = arith.constant 0 : index
    %c0_12 = arith.constant 0 : index
    %c0_13 = arith.constant 0 : index
    %c0_14 = arith.constant 0 : index
    %6 = vector.load %arg6[%c0_11, %c0_12, %c0_13, %c0_14] : memref<1x1x16x4xbf16, #tpu.memory_space<vmem>>, vector<1x1x16x4xbf16>
    %7 = vector.shape_cast %6 : vector<1x1x16x4xbf16> to vector<16x4xbf16>
    %c0_15 = arith.constant 0 : index
    %c0_16 = arith.constant 0 : index
    %c16 = arith.constant 16 : index
    %c0_17 = arith.constant 0 : index
    %8 = vector.load %arg4[%c0_15, %c0_16, %c16, %c0_17] : memref<1x1x48x4xbf16, #tpu.memory_space<vmem>>, vector<1x1x16x4xbf16>
    %9 = vector.shape_cast %8 : vector<1x1x16x4xbf16> to vector<16x4xbf16>
    %cst = arith.constant dense<0.000000e+00> : vector<16x16xf32>
    %10 = tpu.matmul %1, %7, %cst {dimension_numbers = #tpu.dot_dimension_numbers<[1], [1], [0], [0], [0, 0, 1, 0], [], []>} : vector<16x4xbf16>, vector<16x4xbf16>, vector<16x16xf32> -> vector<16x16xf32>
    %cst_18 = arith.constant dense<0xFF800000> : vector<16xf32>
    %11 = vector.multi_reduction <maximumf>, %10, %cst_18 [1] : vector<16x16xf32> to vector<16xf32>
    %12 = vector.shape_cast %11 : vector<16xf32> to vector<16x1xf32>
    %13 = vector.broadcast %12 : vector<16x1xf32> to vector<16x16xf32>
    %14 = arith.subf %10, %13 : vector<16x16xf32>
    %15 = math.exp %14 : vector<16x16xf32>
    %cst_19 = arith.constant dense<0.000000e+00> : vector<16xf32>
    %16 = vector.multi_reduction <add>, %15, %cst_19 [1] : vector<16x16xf32> to vector<16xf32>
    %17 = vector.shape_cast %16 : vector<16xf32> to vector<16x1xf32>
    %18 = tpu.reciprocal %17 {approx = true} : vector<16x1xf32> -> vector<16x1xf32>
    %19 = vector.broadcast %18 : vector<16x1xf32> to vector<16x16xf32>
    %20 = arith.mulf %15, %19 : vector<16x16xf32>
    %cst_20 = arith.constant dense<0.000000e+00> : vector<16x16xf32>
    %21 = tpu.matmul %5, %7, %cst_20 {dimension_numbers = #tpu.dot_dimension_numbers<[1], [1], [0], [0], [0, 0, 1, 0], [], []>} : vector<16x4xbf16>, vector<16x4xbf16>, vector<16x16xf32> -> vector<16x16xf32>
    %cst_21 = arith.constant dense<0.000000e+00> : vector<16x16xf32>
    %22 = tpu.matmul %7, %5, %cst_21 {dimension_numbers = #tpu.dot_dimension_numbers<[1], [1], [0], [0], [0, 0, 1, 0], [], []>} : vector<16x4xbf16>, vector<16x4xbf16>, vector<16x16xf32> -> vector<16x16xf32>
    %cst_22 = arith.constant dense<0xFF800000> : vector<16xf32>
    %23 = vector.multi_reduction <maximumf>, %21, %cst_22 [1] : vector<16x16xf32> to vector<16xf32>
    %24 = vector.shape_cast %23 : vector<16xf32> to vector<16x1xf32>
    %25 = vector.broadcast %24 : vector<16x1xf32> to vector<16x16xf32>
    %26 = arith.subf %21, %25 : vector<16x16xf32>
    %27 = math.exp %26 : vector<16x16xf32>
    %cst_23 = arith.constant dense<0.000000e+00> : vector<16xf32>
    %28 = vector.multi_reduction <add>, %27, %cst_23 [1] : vector<16x16xf32> to vector<16xf32>
    %29 = vector.shape_cast %28 : vector<16xf32> to vector<16x1xf32>
    %30 = tpu.reciprocal %29 {approx = true} : vector<16x1xf32> -> vector<16x1xf32>
    %31 = vector.broadcast %30 : vector<16x1xf32> to vector<16x16xf32>
    %32 = arith.mulf %27, %31 : vector<16x16xf32>
    %cst_24 = arith.constant dense<0xFF800000> : vector<16xf32>
    %33 = vector.multi_reduction <maximumf>, %22, %cst_24 [0] : vector<16x16xf32> to vector<16xf32>
    %34 = vector.shape_cast %33 : vector<16xf32> to vector<1x16xf32>
    %35 = vector.broadcast %34 : vector<1x16xf32> to vector<16x16xf32>
    %36 = arith.subf %22, %35 : vector<16x16xf32>
    %37 = math.exp %36 : vector<16x16xf32>
    %cst_25 = arith.constant dense<0.000000e+00> : vector<16xf32>
    %38 = vector.multi_reduction <add>, %37, %cst_25 [0] : vector<16x16xf32> to vector<16xf32>
    %39 = vector.shape_cast %38 : vector<16xf32> to vector<1x16xf32>
    %40 = tpu.reciprocal %39 {approx = true} : vector<1x16xf32> -> vector<1x16xf32>
    %41 = vector.broadcast %40 : vector<1x16xf32> to vector<16x16xf32>
    %42 = arith.mulf %37, %41 : vector<16x16xf32>
    %cst_26 = arith.constant dense<0.000000e+00> : vector<16x16xf32>
    %43 = tpu.matmul %5, %3, %cst_26 {dimension_numbers = #tpu.dot_dimension_numbers<[1], [1], [0], [0], [0, 0, 1, 0], [], []>} : vector<16x4xbf16>, vector<16x4xbf16>, vector<16x16xf32> -> vector<16x16xf32>
    %cst_27 = arith.constant dense<0xFF800000> : vector<16xf32>
    %44 = vector.multi_reduction <maximumf>, %43, %cst_27 [1] : vector<16x16xf32> to vector<16xf32>
    %45 = vector.shape_cast %44 : vector<16xf32> to vector<16x1xf32>
    %46 = vector.broadcast %45 : vector<16x1xf32> to vector<16x16xf32>
    %47 = arith.subf %43, %46 : vector<16x16xf32>
    %48 = math.exp %47 : vector<16x16xf32>
    %cst_28 = arith.constant dense<0.000000e+00> : vector<16xf32>
    %49 = vector.multi_reduction <add>, %48, %cst_28 [1] : vector<16x16xf32> to vector<16xf32>
    %50 = vector.shape_cast %49 : vector<16xf32> to vector<16x1xf32>
    %51 = tpu.reciprocal %50 {approx = true} : vector<16x1xf32> -> vector<16x1xf32>
    %52 = vector.broadcast %51 : vector<16x1xf32> to vector<16x16xf32>
    %53 = arith.mulf %48, %52 : vector<16x16xf32>
    %54 = tpu.iota {dimensions = array<i32: 0>} : vector<16x16xi32>
    %55 = tpu.iota {dimensions = array<i32: 1>} : vector<16x16xi32>
    %56 = arith.cmpi eq, %54, %55 : vector<16x16xi32>
    %cst_29 = arith.constant 1.000000e+00 : f32
    %cst_30 = arith.constant 0.000000e+00 : f32
    %57 = vector.broadcast %cst_29 : f32 to vector<16x16xf32>
    %58 = vector.broadcast %cst_30 : f32 to vector<16x16xf32>
    %59 = arith.select %56, %57, %58 : vector<16x16xi1>, vector<16x16xf32>
    %cst_31 = arith.constant 7.000000e+00 : f32
    %60 = vector.broadcast %cst_31 : f32 to vector<16x16xf32>
    %61 = arith.mulf %60, %59 : vector<16x16xf32>
    %cst_32 = arith.constant 1.300000e+01 : f32
    %62 = vector.broadcast %cst_32 : f32 to vector<16x16xf32>
    %63 = arith.mulf %62, %59 : vector<16x16xf32>
    %cst_33 = arith.constant 1.500000e+01 : f32
    %64 = vector.broadcast %cst_33 : f32 to vector<16x16xf32>
    %65 = arith.mulf %64, %59 : vector<16x16xf32>
    %66 = math.absf %32 : vector<16x16xf32>
    %cst_34 = arith.constant dense<0.000000e+00> : vector<16xf32>
    %67 = vector.multi_reduction <add>, %66, %cst_34 [1] : vector<16x16xf32> to vector<16xf32>
    %68 = vector.shape_cast %67 : vector<16xf32> to vector<16x1xf32>
    %cst_35 = arith.constant dense<0.000000e+00> : vector<16xf32>
    %69 = vector.multi_reduction <add>, %66, %cst_35 [0] : vector<16x16xf32> to vector<16xf32>
    %70 = vector.shape_cast %69 : vector<16xf32> to vector<1x16xf32>
    %cst_36 = arith.constant dense<0xFF800000> : vector<1xf32>
    %71 = vector.multi_reduction <maximumf>, %68, %cst_36 [0] : vector<16x1xf32> to vector<1xf32>
    %72 = vector.shape_cast %71 : vector<1xf32> to vector<1x1xf32>
    %cst_37 = arith.constant dense<0xFF800000> : vector<1xf32>
    %73 = vector.multi_reduction <maximumf>, %70, %cst_37 [1] : vector<1x16xf32> to vector<1xf32>
    %74 = vector.shape_cast %73 : vector<1xf32> to vector<1x1xf32>
    %75 = arith.mulf %72, %74 : vector<1x1xf32>
    %76 = vector.broadcast %75 : vector<1x1xf32> to vector<16x16xf32>
    %77 = arith.divf %42, %76 : vector<16x16xf32>
    %cst_38 = arith.constant dense<0.000000e+00> : vector<16x16xf32>
    %78 = tpu.matmul %32, %77, %cst_38 {dimension_numbers = #tpu.dot_dimension_numbers<[1], [0], [0], [1], [0, 0, 1, 1], [], []>} : vector<16x16xf32>, vector<16x16xf32>, vector<16x16xf32> -> vector<16x16xf32>
    %79 = arith.subf %61, %78 : vector<16x16xf32>
    %cst_39 = arith.constant dense<0.000000e+00> : vector<16x16xf32>
    %80 = tpu.matmul %78, %79, %cst_39 {dimension_numbers = #tpu.dot_dimension_numbers<[1], [0], [0], [1], [0, 0, 1, 1], [], []>} : vector<16x16xf32>, vector<16x16xf32>, vector<16x16xf32> -> vector<16x16xf32>
    %81 = arith.subf %65, %80 : vector<16x16xf32>
    %cst_40 = arith.constant dense<0.000000e+00> : vector<16x16xf32>
    %82 = tpu.matmul %78, %81, %cst_40 {dimension_numbers = #tpu.dot_dimension_numbers<[1], [0], [0], [1], [0, 0, 1, 1], [], []>} : vector<16x16xf32>, vector<16x16xf32>, vector<16x16xf32> -> vector<16x16xf32>
    %83 = arith.subf %63, %82 : vector<16x16xf32>
    %cst_41 = arith.constant dense<0.000000e+00> : vector<16x16xf32>
    %84 = tpu.matmul %77, %83, %cst_41 {dimension_numbers = #tpu.dot_dimension_numbers<[1], [0], [0], [1], [0, 0, 1, 1], [], []>} : vector<16x16xf32>, vector<16x16xf32>, vector<16x16xf32> -> vector<16x16xf32>
    %cst_42 = arith.constant 2.500000e-01 : f32
    %85 = vector.broadcast %cst_42 : f32 to vector<16x16xf32>
    %86 = arith.mulf %85, %84 : vector<16x16xf32>
    %cst_43 = arith.constant dense<0.000000e+00> : vector<16x16xf32>
    %87 = tpu.matmul %32, %86, %cst_43 {dimension_numbers = #tpu.dot_dimension_numbers<[1], [0], [0], [1], [0, 0, 1, 1], [], []>} : vector<16x16xf32>, vector<16x16xf32>, vector<16x16xf32> -> vector<16x16xf32>
    %88 = arith.subf %61, %87 : vector<16x16xf32>
    %cst_44 = arith.constant dense<0.000000e+00> : vector<16x16xf32>
    %89 = tpu.matmul %87, %88, %cst_44 {dimension_numbers = #tpu.dot_dimension_numbers<[1], [0], [0], [1], [0, 0, 1, 1], [], []>} : vector<16x16xf32>, vector<16x16xf32>, vector<16x16xf32> -> vector<16x16xf32>
    %90 = arith.subf %65, %89 : vector<16x16xf32>
    %cst_45 = arith.constant dense<0.000000e+00> : vector<16x16xf32>
    %91 = tpu.matmul %87, %90, %cst_45 {dimension_numbers = #tpu.dot_dimension_numbers<[1], [0], [0], [1], [0, 0, 1, 1], [], []>} : vector<16x16xf32>, vector<16x16xf32>, vector<16x16xf32> -> vector<16x16xf32>
    %92 = arith.subf %63, %91 : vector<16x16xf32>
    %cst_46 = arith.constant dense<0.000000e+00> : vector<16x16xf32>
    %93 = tpu.matmul %86, %92, %cst_46 {dimension_numbers = #tpu.dot_dimension_numbers<[1], [0], [0], [1], [0, 0, 1, 1], [], []>} : vector<16x16xf32>, vector<16x16xf32>, vector<16x16xf32> -> vector<16x16xf32>
    %cst_47 = arith.constant 2.500000e-01 : f32
    %94 = vector.broadcast %cst_47 : f32 to vector<16x16xf32>
    %95 = arith.mulf %94, %93 : vector<16x16xf32>
    %cst_48 = arith.constant dense<0.000000e+00> : vector<16x16xf32>
    %96 = tpu.matmul %32, %95, %cst_48 {dimension_numbers = #tpu.dot_dimension_numbers<[1], [0], [0], [1], [0, 0, 1, 1], [], []>} : vector<16x16xf32>, vector<16x16xf32>, vector<16x16xf32> -> vector<16x16xf32>
    %97 = arith.subf %61, %96 : vector<16x16xf32>
    %cst_49 = arith.constant dense<0.000000e+00> : vector<16x16xf32>
    %98 = tpu.matmul %96, %97, %cst_49 {dimension_numbers = #tpu.dot_dimension_numbers<[1], [0], [0], [1], [0, 0, 1, 1], [], []>} : vector<16x16xf32>, vector<16x16xf32>, vector<16x16xf32> -> vector<16x16xf32>
    %99 = arith.subf %65, %98 : vector<16x16xf32>
    %cst_50 = arith.constant dense<0.000000e+00> : vector<16x16xf32>
    %100 = tpu.matmul %96, %99, %cst_50 {dimension_numbers = #tpu.dot_dimension_numbers<[1], [0], [0], [1], [0, 0, 1, 1], [], []>} : vector<16x16xf32>, vector<16x16xf32>, vector<16x16xf32> -> vector<16x16xf32>
    %101 = arith.subf %63, %100 : vector<16x16xf32>
    %cst_51 = arith.constant dense<0.000000e+00> : vector<16x16xf32>
    %102 = tpu.matmul %95, %101, %cst_51 {dimension_numbers = #tpu.dot_dimension_numbers<[1], [0], [0], [1], [0, 0, 1, 1], [], []>} : vector<16x16xf32>, vector<16x16xf32>, vector<16x16xf32> -> vector<16x16xf32>
    %cst_52 = arith.constant 2.500000e-01 : f32
    %103 = vector.broadcast %cst_52 : f32 to vector<16x16xf32>
    %104 = arith.mulf %103, %102 : vector<16x16xf32>
    %cst_53 = arith.constant dense<0.000000e+00> : vector<16x16xf32>
    %105 = tpu.matmul %32, %104, %cst_53 {dimension_numbers = #tpu.dot_dimension_numbers<[1], [0], [0], [1], [0, 0, 1, 1], [], []>} : vector<16x16xf32>, vector<16x16xf32>, vector<16x16xf32> -> vector<16x16xf32>
    %106 = arith.subf %61, %105 : vector<16x16xf32>
    %cst_54 = arith.constant dense<0.000000e+00> : vector<16x16xf32>
    %107 = tpu.matmul %105, %106, %cst_54 {dimension_numbers = #tpu.dot_dimension_numbers<[1], [0], [0], [1], [0, 0, 1, 1], [], []>} : vector<16x16xf32>, vector<16x16xf32>, vector<16x16xf32> -> vector<16x16xf32>
    %108 = arith.subf %65, %107 : vector<16x16xf32>
    %cst_55 = arith.constant dense<0.000000e+00> : vector<16x16xf32>
    %109 = tpu.matmul %105, %108, %cst_55 {dimension_numbers = #tpu.dot_dimension_numbers<[1], [0], [0], [1], [0, 0, 1, 1], [], []>} : vector<16x16xf32>, vector<16x16xf32>, vector<16x16xf32> -> vector<16x16xf32>
    %110 = arith.subf %63, %109 : vector<16x16xf32>
    %cst_56 = arith.constant dense<0.000000e+00> : vector<16x16xf32>
    %111 = tpu.matmul %104, %110, %cst_56 {dimension_numbers = #tpu.dot_dimension_numbers<[1], [0], [0], [1], [0, 0, 1, 1], [], []>} : vector<16x16xf32>, vector<16x16xf32>, vector<16x16xf32> -> vector<16x16xf32>
    %cst_57 = arith.constant 2.500000e-01 : f32
    %112 = vector.broadcast %cst_57 : f32 to vector<16x16xf32>
    %113 = arith.mulf %112, %111 : vector<16x16xf32>
    %cst_58 = arith.constant dense<0.000000e+00> : vector<16x16xf32>
    %114 = tpu.matmul %32, %113, %cst_58 {dimension_numbers = #tpu.dot_dimension_numbers<[1], [0], [0], [1], [0, 0, 1, 1], [], []>} : vector<16x16xf32>, vector<16x16xf32>, vector<16x16xf32> -> vector<16x16xf32>
    %115 = arith.subf %61, %114 : vector<16x16xf32>
    %cst_59 = arith.constant dense<0.000000e+00> : vector<16x16xf32>
    %116 = tpu.matmul %114, %115, %cst_59 {dimension_numbers = #tpu.dot_dimension_numbers<[1], [0], [0], [1], [0, 0, 1, 1], [], []>} : vector<16x16xf32>, vector<16x16xf32>, vector<16x16xf32> -> vector<16x16xf32>
    %117 = arith.subf %65, %116 : vector<16x16xf32>
    %cst_60 = arith.constant dense<0.000000e+00> : vector<16x16xf32>
    %118 = tpu.matmul %114, %117, %cst_60 {dimension_numbers = #tpu.dot_dimension_numbers<[1], [0], [0], [1], [0, 0, 1, 1], [], []>} : vector<16x16xf32>, vector<16x16xf32>, vector<16x16xf32> -> vector<16x16xf32>
    %119 = arith.subf %63, %118 : vector<16x16xf32>
    %cst_61 = arith.constant dense<0.000000e+00> : vector<16x16xf32>
    %120 = tpu.matmul %113, %119, %cst_61 {dimension_numbers = #tpu.dot_dimension_numbers<[1], [0], [0], [1], [0, 0, 1, 1], [], []>} : vector<16x16xf32>, vector<16x16xf32>, vector<16x16xf32> -> vector<16x16xf32>
    %cst_62 = arith.constant 2.500000e-01 : f32
    %121 = vector.broadcast %cst_62 : f32 to vector<16x16xf32>
    %122 = arith.mulf %121, %120 : vector<16x16xf32>
    %cst_63 = arith.constant dense<0.000000e+00> : vector<16x16xf32>
    %123 = tpu.matmul %32, %122, %cst_63 {dimension_numbers = #tpu.dot_dimension_numbers<[1], [0], [0], [1], [0, 0, 1, 1], [], []>} : vector<16x16xf32>, vector<16x16xf32>, vector<16x16xf32> -> vector<16x16xf32>
    %124 = arith.subf %61, %123 : vector<16x16xf32>
    %cst_64 = arith.constant dense<0.000000e+00> : vector<16x16xf32>
    %125 = tpu.matmul %123, %124, %cst_64 {dimension_numbers = #tpu.dot_dimension_numbers<[1], [0], [0], [1], [0, 0, 1, 1], [], []>} : vector<16x16xf32>, vector<16x16xf32>, vector<16x16xf32> -> vector<16x16xf32>
    %126 = arith.subf %65, %125 : vector<16x16xf32>
    %cst_65 = arith.constant dense<0.000000e+00> : vector<16x16xf32>
    %127 = tpu.matmul %123, %126, %cst_65 {dimension_numbers = #tpu.dot_dimension_numbers<[1], [0], [0], [1], [0, 0, 1, 1], [], []>} : vector<16x16xf32>, vector<16x16xf32>, vector<16x16xf32> -> vector<16x16xf32>
    %128 = arith.subf %63, %127 : vector<16x16xf32>
    %cst_66 = arith.constant dense<0.000000e+00> : vector<16x16xf32>
    %129 = tpu.matmul %122, %128, %cst_66 {dimension_numbers = #tpu.dot_dimension_numbers<[1], [0], [0], [1], [0, 0, 1, 1], [], []>} : vector<16x16xf32>, vector<16x16xf32>, vector<16x16xf32> -> vector<16x16xf32>
    %cst_67 = arith.constant 2.500000e-01 : f32
    %130 = vector.broadcast %cst_67 : f32 to vector<16x16xf32>
    %131 = arith.mulf %130, %129 : vector<16x16xf32>
    %132 = arith.truncf %20 : vector<16x16xf32> to vector<16x16xbf16>
    %133 = arith.truncf %131 : vector<16x16xf32> to vector<16x16xbf16>
    %cst_68 = arith.constant dense<0.000000e+00> : vector<16x16xf32>
    %134 = tpu.matmul %132, %133, %cst_68 {dimension_numbers = #tpu.dot_dimension_numbers<[1], [0], [0], [1], [0, 0, 1, 1], [], []>} : vector<16x16xbf16>, vector<16x16xbf16>, vector<16x16xf32> -> vector<16x16xf32>
    %135 = arith.truncf %134 : vector<16x16xf32> to vector<16x16xbf16>
    %136 = arith.truncf %53 : vector<16x16xf32> to vector<16x16xbf16>
    %cst_69 = arith.constant dense<0.000000e+00> : vector<16x4xf32>
    %137 = tpu.matmul %136, %9, %cst_69 {dimension_numbers = #tpu.dot_dimension_numbers<[1], [0], [0], [1], [0, 0, 1, 1], [], []>} : vector<16x16xbf16>, vector<16x4xbf16>, vector<16x4xf32> -> vector<16x4xf32>
    %138 = arith.truncf %137 : vector<16x4xf32> to vector<16x4xbf16>
    %cst_70 = arith.constant dense<0.000000e+00> : vector<16x4xf32>
    %139 = tpu.matmul %135, %138, %cst_70 {dimension_numbers = #tpu.dot_dimension_numbers<[1], [0], [0], [1], [0, 0, 1, 1], [], []>} : vector<16x16xbf16>, vector<16x4xbf16>, vector<16x4xf32> -> vector<16x4xf32>
    %cst_71 = arith.constant 0.000000e+00 : f32
    %140 = vector.broadcast %cst_71 : f32 to vector<16x4xf32>
    %c0_72 = arith.constant 0 : index
    %c0_73 = arith.constant 0 : index
    %c0_74 = arith.constant 0 : index
    %c0_75 = arith.constant 0 : index
    %141 = vector.load %arg4[%c0_72, %c0_73, %c0_74, %c0_75] : memref<1x1x48x4xbf16, #tpu.memory_space<vmem>>, vector<1x1x16x4xbf16>
    %142 = vector.shape_cast %141 : vector<1x1x16x4xbf16> to vector<16x4xbf16>
    %143 = arith.extf %142 : vector<16x4xbf16> to vector<16x4xf32>
    %c0_76 = arith.constant 0 : index
    %c0_77 = arith.constant 0 : index
    %c0_78 = arith.constant 0 : index
    %144 = vector.load %arg7[%c0_76, %c0_77, %c0_78] : memref<1x1x33xf32, #tpu.memory_space<vmem>>, vector<1x1x1xf32>
    %145 = vector.shape_cast %144 : vector<1x1x1xf32> to vector<1x1xf32>
    %146 = vector.broadcast %145 : vector<1x1xf32> to vector<16x4xf32>
    %147 = arith.mulf %143, %146 : vector<16x4xf32>
    %148 = arith.addf %140, %147 : vector<16x4xf32>
    %c0_79 = arith.constant 0 : index
    %c0_80 = arith.constant 0 : index
    %c1 = arith.constant 1 : index
    %c0_81 = arith.constant 0 : index
    %149 = vector.load %arg4[%c0_79, %c0_80, %c1, %c0_81] : memref<1x1x48x4xbf16, #tpu.memory_space<vmem>>, vector<1x1x16x4xbf16>
    %150 = vector.shape_cast %149 : vector<1x1x16x4xbf16> to vector<16x4xbf16>
    %151 = arith.extf %150 : vector<16x4xbf16> to vector<16x4xf32>
    %c0_82 = arith.constant 0 : index
    %c0_83 = arith.constant 0 : index
    %c1_84 = arith.constant 1 : index
    %152 = vector.load %arg7[%c0_82, %c0_83, %c1_84] : memref<1x1x33xf32, #tpu.memory_space<vmem>>, vector<1x1x1xf32>
    %153 = vector.shape_cast %152 : vector<1x1x1xf32> to vector<1x1xf32>
    %154 = vector.broadcast %153 : vector<1x1xf32> to vector<16x4xf32>
    %155 = arith.mulf %151, %154 : vector<16x4xf32>
    %156 = arith.addf %148, %155 : vector<16x4xf32>
    %c0_85 = arith.constant 0 : index
    %c0_86 = arith.constant 0 : index
    %c2 = arith.constant 2 : index
    %c0_87 = arith.constant 0 : index
    %157 = vector.load %arg4[%c0_85, %c0_86, %c2, %c0_87] : memref<1x1x48x4xbf16, #tpu.memory_space<vmem>>, vector<1x1x16x4xbf16>
    %158 = vector.shape_cast %157 : vector<1x1x16x4xbf16> to vector<16x4xbf16>
    %159 = arith.extf %158 : vector<16x4xbf16> to vector<16x4xf32>
    %c0_88 = arith.constant 0 : index
    %c0_89 = arith.constant 0 : index
    %c2_90 = arith.constant 2 : index
    %160 = vector.load %arg7[%c0_88, %c0_89, %c2_90] : memref<1x1x33xf32, #tpu.memory_space<vmem>>, vector<1x1x1xf32>
    %161 = vector.shape_cast %160 : vector<1x1x1xf32> to vector<1x1xf32>
    %162 = vector.broadcast %161 : vector<1x1xf32> to vector<16x4xf32>
    %163 = arith.mulf %159, %162 : vector<16x4xf32>
    %164 = arith.addf %156, %163 : vector<16x4xf32>
    %c0_91 = arith.constant 0 : index
    %c0_92 = arith.constant 0 : index
    %c3 = arith.constant 3 : index
    %c0_93 = arith.constant 0 : index
    %165 = vector.load %arg4[%c0_91, %c0_92, %c3, %c0_93] : memref<1x1x48x4xbf16, #tpu.memory_space<vmem>>, vector<1x1x16x4xbf16>
    %166 = vector.shape_cast %165 : vector<1x1x16x4xbf16> to vector<16x4xbf16>
    %167 = arith.extf %166 : vector<16x4xbf16> to vector<16x4xf32>
    %c0_94 = arith.constant 0 : index
    %c0_95 = arith.constant 0 : index
    %c3_96 = arith.constant 3 : index
    %168 = vector.load %arg7[%c0_94, %c0_95, %c3_96] : memref<1x1x33xf32, #tpu.memory_space<vmem>>, vector<1x1x1xf32>
    %169 = vector.shape_cast %168 : vector<1x1x1xf32> to vector<1x1xf32>
    %170 = vector.broadcast %169 : vector<1x1xf32> to vector<16x4xf32>
    %171 = arith.mulf %167, %170 : vector<16x4xf32>
    %172 = arith.addf %164, %171 : vector<16x4xf32>
    %c0_97 = arith.constant 0 : index
    %c0_98 = arith.constant 0 : index
    %c4 = arith.constant 4 : index
    %c0_99 = arith.constant 0 : index
    %173 = vector.load %arg4[%c0_97, %c0_98, %c4, %c0_99] : memref<1x1x48x4xbf16, #tpu.memory_space<vmem>>, vector<1x1x16x4xbf16>
    %174 = vector.shape_cast %173 : vector<1x1x16x4xbf16> to vector<16x4xbf16>
    %175 = arith.extf %174 : vector<16x4xbf16> to vector<16x4xf32>
    %c0_100 = arith.constant 0 : index
    %c0_101 = arith.constant 0 : index
    %c4_102 = arith.constant 4 : index
    %176 = vector.load %arg7[%c0_100, %c0_101, %c4_102] : memref<1x1x33xf32, #tpu.memory_space<vmem>>, vector<1x1x1xf32>
    %177 = vector.shape_cast %176 : vector<1x1x1xf32> to vector<1x1xf32>
    %178 = vector.broadcast %177 : vector<1x1xf32> to vector<16x4xf32>
    %179 = arith.mulf %175, %178 : vector<16x4xf32>
    %180 = arith.addf %172, %179 : vector<16x4xf32>
    %c0_103 = arith.constant 0 : index
    %c0_104 = arith.constant 0 : index
    %c5 = arith.constant 5 : index
    %c0_105 = arith.constant 0 : index
    %181 = vector.load %arg4[%c0_103, %c0_104, %c5, %c0_105] : memref<1x1x48x4xbf16, #tpu.memory_space<vmem>>, vector<1x1x16x4xbf16>
    %182 = vector.shape_cast %181 : vector<1x1x16x4xbf16> to vector<16x4xbf16>
    %183 = arith.extf %182 : vector<16x4xbf16> to vector<16x4xf32>
    %c0_106 = arith.constant 0 : index
    %c0_107 = arith.constant 0 : index
    %c5_108 = arith.constant 5 : index
    %184 = vector.load %arg7[%c0_106, %c0_107, %c5_108] : memref<1x1x33xf32, #tpu.memory_space<vmem>>, vector<1x1x1xf32>
    %185 = vector.shape_cast %184 : vector<1x1x1xf32> to vector<1x1xf32>
    %186 = vector.broadcast %185 : vector<1x1xf32> to vector<16x4xf32>
    %187 = arith.mulf %183, %186 : vector<16x4xf32>
    %188 = arith.addf %180, %187 : vector<16x4xf32>
    %c0_109 = arith.constant 0 : index
    %c0_110 = arith.constant 0 : index
    %c6 = arith.constant 6 : index
    %c0_111 = arith.constant 0 : index
    %189 = vector.load %arg4[%c0_109, %c0_110, %c6, %c0_111] : memref<1x1x48x4xbf16, #tpu.memory_space<vmem>>, vector<1x1x16x4xbf16>
    %190 = vector.shape_cast %189 : vector<1x1x16x4xbf16> to vector<16x4xbf16>
    %191 = arith.extf %190 : vector<16x4xbf16> to vector<16x4xf32>
    %c0_112 = arith.constant 0 : index
    %c0_113 = arith.constant 0 : index
    %c6_114 = arith.constant 6 : index
    %192 = vector.load %arg7[%c0_112, %c0_113, %c6_114] : memref<1x1x33xf32, #tpu.memory_space<vmem>>, vector<1x1x1xf32>
    %193 = vector.shape_cast %192 : vector<1x1x1xf32> to vector<1x1xf32>
    %194 = vector.broadcast %193 : vector<1x1xf32> to vector<16x4xf32>
    %195 = arith.mulf %191, %194 : vector<16x4xf32>
    %196 = arith.addf %188, %195 : vector<16x4xf32>
    %c0_115 = arith.constant 0 : index
    %c0_116 = arith.constant 0 : index
    %c7 = arith.constant 7 : index
    %c0_117 = arith.constant 0 : index
    %197 = vector.load %arg4[%c0_115, %c0_116, %c7, %c0_117] : memref<1x1x48x4xbf16, #tpu.memory_space<vmem>>, vector<1x1x16x4xbf16>
    %198 = vector.shape_cast %197 : vector<1x1x16x4xbf16> to vector<16x4xbf16>
    %199 = arith.extf %198 : vector<16x4xbf16> to vector<16x4xf32>
    %c0_118 = arith.constant 0 : index
    %c0_119 = arith.constant 0 : index
    %c7_120 = arith.constant 7 : index
    %200 = vector.load %arg7[%c0_118, %c0_119, %c7_120] : memref<1x1x33xf32, #tpu.memory_space<vmem>>, vector<1x1x1xf32>
    %201 = vector.shape_cast %200 : vector<1x1x1xf32> to vector<1x1xf32>
    %202 = vector.broadcast %201 : vector<1x1xf32> to vector<16x4xf32>
    %203 = arith.mulf %199, %202 : vector<16x4xf32>
    %204 = arith.addf %196, %203 : vector<16x4xf32>
    %c0_121 = arith.constant 0 : index
    %c0_122 = arith.constant 0 : index
    %c8 = arith.constant 8 : index
    %c0_123 = arith.constant 0 : index
    %205 = vector.load %arg4[%c0_121, %c0_122, %c8, %c0_123] : memref<1x1x48x4xbf16, #tpu.memory_space<vmem>>, vector<1x1x16x4xbf16>
    %206 = vector.shape_cast %205 : vector<1x1x16x4xbf16> to vector<16x4xbf16>
    %207 = arith.extf %206 : vector<16x4xbf16> to vector<16x4xf32>
    %c0_124 = arith.constant 0 : index
    %c0_125 = arith.constant 0 : index
    %c8_126 = arith.constant 8 : index
    %208 = vector.load %arg7[%c0_124, %c0_125, %c8_126] : memref<1x1x33xf32, #tpu.memory_space<vmem>>, vector<1x1x1xf32>
    %209 = vector.shape_cast %208 : vector<1x1x1xf32> to vector<1x1xf32>
    %210 = vector.broadcast %209 : vector<1x1xf32> to vector<16x4xf32>
    %211 = arith.mulf %207, %210 : vector<16x4xf32>
    %212 = arith.addf %204, %211 : vector<16x4xf32>
    %c0_127 = arith.constant 0 : index
    %c0_128 = arith.constant 0 : index
    %c9 = arith.constant 9 : index
    %c0_129 = arith.constant 0 : index
    %213 = vector.load %arg4[%c0_127, %c0_128, %c9, %c0_129] : memref<1x1x48x4xbf16, #tpu.memory_space<vmem>>, vector<1x1x16x4xbf16>
    %214 = vector.shape_cast %213 : vector<1x1x16x4xbf16> to vector<16x4xbf16>
    %215 = arith.extf %214 : vector<16x4xbf16> to vector<16x4xf32>
    %c0_130 = arith.constant 0 : index
    %c0_131 = arith.constant 0 : index
    %c9_132 = arith.constant 9 : index
    %216 = vector.load %arg7[%c0_130, %c0_131, %c9_132] : memref<1x1x33xf32, #tpu.memory_space<vmem>>, vector<1x1x1xf32>
    %217 = vector.shape_cast %216 : vector<1x1x1xf32> to vector<1x1xf32>
    %218 = vector.broadcast %217 : vector<1x1xf32> to vector<16x4xf32>
    %219 = arith.mulf %215, %218 : vector<16x4xf32>
    %220 = arith.addf %212, %219 : vector<16x4xf32>
    %c0_133 = arith.constant 0 : index
    %c0_134 = arith.constant 0 : index
    %c10 = arith.constant 10 : index
    %c0_135 = arith.constant 0 : index
    %221 = vector.load %arg4[%c0_133, %c0_134, %c10, %c0_135] : memref<1x1x48x4xbf16, #tpu.memory_space<vmem>>, vector<1x1x16x4xbf16>
    %222 = vector.shape_cast %221 : vector<1x1x16x4xbf16> to vector<16x4xbf16>
    %223 = arith.extf %222 : vector<16x4xbf16> to vector<16x4xf32>
    %c0_136 = arith.constant 0 : index
    %c0_137 = arith.constant 0 : index
    %c10_138 = arith.constant 10 : index
    %224 = vector.load %arg7[%c0_136, %c0_137, %c10_138] : memref<1x1x33xf32, #tpu.memory_space<vmem>>, vector<1x1x1xf32>
    %225 = vector.shape_cast %224 : vector<1x1x1xf32> to vector<1x1xf32>
    %226 = vector.broadcast %225 : vector<1x1xf32> to vector<16x4xf32>
    %227 = arith.mulf %223, %226 : vector<16x4xf32>
    %228 = arith.addf %220, %227 : vector<16x4xf32>
    %c0_139 = arith.constant 0 : index
    %c0_140 = arith.constant 0 : index
    %c11 = arith.constant 11 : index
    %c0_141 = arith.constant 0 : index
    %229 = vector.load %arg4[%c0_139, %c0_140, %c11, %c0_141] : memref<1x1x48x4xbf16, #tpu.memory_space<vmem>>, vector<1x1x16x4xbf16>
    %230 = vector.shape_cast %229 : vector<1x1x16x4xbf16> to vector<16x4xbf16>
    %231 = arith.extf %230 : vector<16x4xbf16> to vector<16x4xf32>
    %c0_142 = arith.constant 0 : index
    %c0_143 = arith.constant 0 : index
    %c11_144 = arith.constant 11 : index
    %232 = vector.load %arg7[%c0_142, %c0_143, %c11_144] : memref<1x1x33xf32, #tpu.memory_space<vmem>>, vector<1x1x1xf32>
    %233 = vector.shape_cast %232 : vector<1x1x1xf32> to vector<1x1xf32>
    %234 = vector.broadcast %233 : vector<1x1xf32> to vector<16x4xf32>
    %235 = arith.mulf %231, %234 : vector<16x4xf32>
    %236 = arith.addf %228, %235 : vector<16x4xf32>
    %c0_145 = arith.constant 0 : index
    %c0_146 = arith.constant 0 : index
    %c12 = arith.constant 12 : index
    %c0_147 = arith.constant 0 : index
    %237 = vector.load %arg4[%c0_145, %c0_146, %c12, %c0_147] : memref<1x1x48x4xbf16, #tpu.memory_space<vmem>>, vector<1x1x16x4xbf16>
    %238 = vector.shape_cast %237 : vector<1x1x16x4xbf16> to vector<16x4xbf16>
    %239 = arith.extf %238 : vector<16x4xbf16> to vector<16x4xf32>
    %c0_148 = arith.constant 0 : index
    %c0_149 = arith.constant 0 : index
    %c12_150 = arith.constant 12 : index
    %240 = vector.load %arg7[%c0_148, %c0_149, %c12_150] : memref<1x1x33xf32, #tpu.memory_space<vmem>>, vector<1x1x1xf32>
    %241 = vector.shape_cast %240 : vector<1x1x1xf32> to vector<1x1xf32>
    %242 = vector.broadcast %241 : vector<1x1xf32> to vector<16x4xf32>
    %243 = arith.mulf %239, %242 : vector<16x4xf32>
    %244 = arith.addf %236, %243 : vector<16x4xf32>
    %c0_151 = arith.constant 0 : index
    %c0_152 = arith.constant 0 : index
    %c13 = arith.constant 13 : index
    %c0_153 = arith.constant 0 : index
    %245 = vector.load %arg4[%c0_151, %c0_152, %c13, %c0_153] : memref<1x1x48x4xbf16, #tpu.memory_space<vmem>>, vector<1x1x16x4xbf16>
    %246 = vector.shape_cast %245 : vector<1x1x16x4xbf16> to vector<16x4xbf16>
    %247 = arith.extf %246 : vector<16x4xbf16> to vector<16x4xf32>
    %c0_154 = arith.constant 0 : index
    %c0_155 = arith.constant 0 : index
    %c13_156 = arith.constant 13 : index
    %248 = vector.load %arg7[%c0_154, %c0_155, %c13_156] : memref<1x1x33xf32, #tpu.memory_space<vmem>>, vector<1x1x1xf32>
    %249 = vector.shape_cast %248 : vector<1x1x1xf32> to vector<1x1xf32>
    %250 = vector.broadcast %249 : vector<1x1xf32> to vector<16x4xf32>
    %251 = arith.mulf %247, %250 : vector<16x4xf32>
    %252 = arith.addf %244, %251 : vector<16x4xf32>
    %c0_157 = arith.constant 0 : index
    %c0_158 = arith.constant 0 : index
    %c14 = arith.constant 14 : index
    %c0_159 = arith.constant 0 : index
    %253 = vector.load %arg4[%c0_157, %c0_158, %c14, %c0_159] : memref<1x1x48x4xbf16, #tpu.memory_space<vmem>>, vector<1x1x16x4xbf16>
    %254 = vector.shape_cast %253 : vector<1x1x16x4xbf16> to vector<16x4xbf16>
    %255 = arith.extf %254 : vector<16x4xbf16> to vector<16x4xf32>
    %c0_160 = arith.constant 0 : index
    %c0_161 = arith.constant 0 : index
    %c14_162 = arith.constant 14 : index
    %256 = vector.load %arg7[%c0_160, %c0_161, %c14_162] : memref<1x1x33xf32, #tpu.memory_space<vmem>>, vector<1x1x1xf32>
    %257 = vector.shape_cast %256 : vector<1x1x1xf32> to vector<1x1xf32>
    %258 = vector.broadcast %257 : vector<1x1xf32> to vector<16x4xf32>
    %259 = arith.mulf %255, %258 : vector<16x4xf32>
    %260 = arith.addf %252, %259 : vector<16x4xf32>
    %c0_163 = arith.constant 0 : index
    %c0_164 = arith.constant 0 : index
    %c15 = arith.constant 15 : index
    %c0_165 = arith.constant 0 : index
    %261 = vector.load %arg4[%c0_163, %c0_164, %c15, %c0_165] : memref<1x1x48x4xbf16, #tpu.memory_space<vmem>>, vector<1x1x16x4xbf16>
    %262 = vector.shape_cast %261 : vector<1x1x16x4xbf16> to vector<16x4xbf16>
    %263 = arith.extf %262 : vector<16x4xbf16> to vector<16x4xf32>
    %c0_166 = arith.constant 0 : index
    %c0_167 = arith.constant 0 : index
    %c15_168 = arith.constant 15 : index
    %264 = vector.load %arg7[%c0_166, %c0_167, %c15_168] : memref<1x1x33xf32, #tpu.memory_space<vmem>>, vector<1x1x1xf32>
    %265 = vector.shape_cast %264 : vector<1x1x1xf32> to vector<1x1xf32>
    %266 = vector.broadcast %265 : vector<1x1xf32> to vector<16x4xf32>
    %267 = arith.mulf %263, %266 : vector<16x4xf32>
    %268 = arith.addf %260, %267 : vector<16x4xf32>
    %c0_169 = arith.constant 0 : index
    %c0_170 = arith.constant 0 : index
    %c16_171 = arith.constant 16 : index
    %c0_172 = arith.constant 0 : index
    %269 = vector.load %arg4[%c0_169, %c0_170, %c16_171, %c0_172] : memref<1x1x48x4xbf16, #tpu.memory_space<vmem>>, vector<1x1x16x4xbf16>
    %270 = vector.shape_cast %269 : vector<1x1x16x4xbf16> to vector<16x4xbf16>
    %271 = arith.extf %270 : vector<16x4xbf16> to vector<16x4xf32>
    %c0_173 = arith.constant 0 : index
    %c0_174 = arith.constant 0 : index
    %c16_175 = arith.constant 16 : index
    %272 = vector.load %arg7[%c0_173, %c0_174, %c16_175] : memref<1x1x33xf32, #tpu.memory_space<vmem>>, vector<1x1x1xf32>
    %273 = vector.shape_cast %272 : vector<1x1x1xf32> to vector<1x1xf32>
    %274 = vector.broadcast %273 : vector<1x1xf32> to vector<16x4xf32>
    %275 = arith.mulf %271, %274 : vector<16x4xf32>
    %276 = arith.addf %268, %275 : vector<16x4xf32>
    %c0_176 = arith.constant 0 : index
    %c0_177 = arith.constant 0 : index
    %c17 = arith.constant 17 : index
    %c0_178 = arith.constant 0 : index
    %277 = vector.load %arg4[%c0_176, %c0_177, %c17, %c0_178] : memref<1x1x48x4xbf16, #tpu.memory_space<vmem>>, vector<1x1x16x4xbf16>
    %278 = vector.shape_cast %277 : vector<1x1x16x4xbf16> to vector<16x4xbf16>
    %279 = arith.extf %278 : vector<16x4xbf16> to vector<16x4xf32>
    %c0_179 = arith.constant 0 : index
    %c0_180 = arith.constant 0 : index
    %c17_181 = arith.constant 17 : index
    %280 = vector.load %arg7[%c0_179, %c0_180, %c17_181] : memref<1x1x33xf32, #tpu.memory_space<vmem>>, vector<1x1x1xf32>
    %281 = vector.shape_cast %280 : vector<1x1x1xf32> to vector<1x1xf32>
    %282 = vector.broadcast %281 : vector<1x1xf32> to vector<16x4xf32>
    %283 = arith.mulf %279, %282 : vector<16x4xf32>
    %284 = arith.addf %276, %283 : vector<16x4xf32>
    %c0_182 = arith.constant 0 : index
    %c0_183 = arith.constant 0 : index
    %c18 = arith.constant 18 : index
    %c0_184 = arith.constant 0 : index
    %285 = vector.load %arg4[%c0_182, %c0_183, %c18, %c0_184] : memref<1x1x48x4xbf16, #tpu.memory_space<vmem>>, vector<1x1x16x4xbf16>
    %286 = vector.shape_cast %285 : vector<1x1x16x4xbf16> to vector<16x4xbf16>
    %287 = arith.extf %286 : vector<16x4xbf16> to vector<16x4xf32>
    %c0_185 = arith.constant 0 : index
    %c0_186 = arith.constant 0 : index
    %c18_187 = arith.constant 18 : index
    %288 = vector.load %arg7[%c0_185, %c0_186, %c18_187] : memref<1x1x33xf32, #tpu.memory_space<vmem>>, vector<1x1x1xf32>
    %289 = vector.shape_cast %288 : vector<1x1x1xf32> to vector<1x1xf32>
    %290 = vector.broadcast %289 : vector<1x1xf32> to vector<16x4xf32>
    %291 = arith.mulf %287, %290 : vector<16x4xf32>
    %292 = arith.addf %284, %291 : vector<16x4xf32>
    %c0_188 = arith.constant 0 : index
    %c0_189 = arith.constant 0 : index
    %c19 = arith.constant 19 : index
    %c0_190 = arith.constant 0 : index
    %293 = vector.load %arg4[%c0_188, %c0_189, %c19, %c0_190] : memref<1x1x48x4xbf16, #tpu.memory_space<vmem>>, vector<1x1x16x4xbf16>
    %294 = vector.shape_cast %293 : vector<1x1x16x4xbf16> to vector<16x4xbf16>
    %295 = arith.extf %294 : vector<16x4xbf16> to vector<16x4xf32>
    %c0_191 = arith.constant 0 : index
    %c0_192 = arith.constant 0 : index
    %c19_193 = arith.constant 19 : index
    %296 = vector.load %arg7[%c0_191, %c0_192, %c19_193] : memref<1x1x33xf32, #tpu.memory_space<vmem>>, vector<1x1x1xf32>
    %297 = vector.shape_cast %296 : vector<1x1x1xf32> to vector<1x1xf32>
    %298 = vector.broadcast %297 : vector<1x1xf32> to vector<16x4xf32>
    %299 = arith.mulf %295, %298 : vector<16x4xf32>
    %300 = arith.addf %292, %299 : vector<16x4xf32>
    %c0_194 = arith.constant 0 : index
    %c0_195 = arith.constant 0 : index
    %c20 = arith.constant 20 : index
    %c0_196 = arith.constant 0 : index
    %301 = vector.load %arg4[%c0_194, %c0_195, %c20, %c0_196] : memref<1x1x48x4xbf16, #tpu.memory_space<vmem>>, vector<1x1x16x4xbf16>
    %302 = vector.shape_cast %301 : vector<1x1x16x4xbf16> to vector<16x4xbf16>
    %303 = arith.extf %302 : vector<16x4xbf16> to vector<16x4xf32>
    %c0_197 = arith.constant 0 : index
    %c0_198 = arith.constant 0 : index
    %c20_199 = arith.constant 20 : index
    %304 = vector.load %arg7[%c0_197, %c0_198, %c20_199] : memref<1x1x33xf32, #tpu.memory_space<vmem>>, vector<1x1x1xf32>
    %305 = vector.shape_cast %304 : vector<1x1x1xf32> to vector<1x1xf32>
    %306 = vector.broadcast %305 : vector<1x1xf32> to vector<16x4xf32>
    %307 = arith.mulf %303, %306 : vector<16x4xf32>
    %308 = arith.addf %300, %307 : vector<16x4xf32>
    %c0_200 = arith.constant 0 : index
    %c0_201 = arith.constant 0 : index
    %c21 = arith.constant 21 : index
    %c0_202 = arith.constant 0 : index
    %309 = vector.load %arg4[%c0_200, %c0_201, %c21, %c0_202] : memref<1x1x48x4xbf16, #tpu.memory_space<vmem>>, vector<1x1x16x4xbf16>
    %310 = vector.shape_cast %309 : vector<1x1x16x4xbf16> to vector<16x4xbf16>
    %311 = arith.extf %310 : vector<16x4xbf16> to vector<16x4xf32>
    %c0_203 = arith.constant 0 : index
    %c0_204 = arith.constant 0 : index
    %c21_205 = arith.constant 21 : index
    %312 = vector.load %arg7[%c0_203, %c0_204, %c21_205] : memref<1x1x33xf32, #tpu.memory_space<vmem>>, vector<1x1x1xf32>
    %313 = vector.shape_cast %312 : vector<1x1x1xf32> to vector<1x1xf32>
    %314 = vector.broadcast %313 : vector<1x1xf32> to vector<16x4xf32>
    %315 = arith.mulf %311, %314 : vector<16x4xf32>
    %316 = arith.addf %308, %315 : vector<16x4xf32>
    %c0_206 = arith.constant 0 : index
    %c0_207 = arith.constant 0 : index
    %c22 = arith.constant 22 : index
    %c0_208 = arith.constant 0 : index
    %317 = vector.load %arg4[%c0_206, %c0_207, %c22, %c0_208] : memref<1x1x48x4xbf16, #tpu.memory_space<vmem>>, vector<1x1x16x4xbf16>
    %318 = vector.shape_cast %317 : vector<1x1x16x4xbf16> to vector<16x4xbf16>
    %319 = arith.extf %318 : vector<16x4xbf16> to vector<16x4xf32>
    %c0_209 = arith.constant 0 : index
    %c0_210 = arith.constant 0 : index
    %c22_211 = arith.constant 22 : index
    %320 = vector.load %arg7[%c0_209, %c0_210, %c22_211] : memref<1x1x33xf32, #tpu.memory_space<vmem>>, vector<1x1x1xf32>
    %321 = vector.shape_cast %320 : vector<1x1x1xf32> to vector<1x1xf32>
    %322 = vector.broadcast %321 : vector<1x1xf32> to vector<16x4xf32>
    %323 = arith.mulf %319, %322 : vector<16x4xf32>
    %324 = arith.addf %316, %323 : vector<16x4xf32>
    %c0_212 = arith.constant 0 : index
    %c0_213 = arith.constant 0 : index
    %c23 = arith.constant 23 : index
    %c0_214 = arith.constant 0 : index
    %325 = vector.load %arg4[%c0_212, %c0_213, %c23, %c0_214] : memref<1x1x48x4xbf16, #tpu.memory_space<vmem>>, vector<1x1x16x4xbf16>
    %326 = vector.shape_cast %325 : vector<1x1x16x4xbf16> to vector<16x4xbf16>
    %327 = arith.extf %326 : vector<16x4xbf16> to vector<16x4xf32>
    %c0_215 = arith.constant 0 : index
    %c0_216 = arith.constant 0 : index
    %c23_217 = arith.constant 23 : index
    %328 = vector.load %arg7[%c0_215, %c0_216, %c23_217] : memref<1x1x33xf32, #tpu.memory_space<vmem>>, vector<1x1x1xf32>
    %329 = vector.shape_cast %328 : vector<1x1x1xf32> to vector<1x1xf32>
    %330 = vector.broadcast %329 : vector<1x1xf32> to vector<16x4xf32>
    %331 = arith.mulf %327, %330 : vector<16x4xf32>
    %332 = arith.addf %324, %331 : vector<16x4xf32>
    %c0_218 = arith.constant 0 : index
    %c0_219 = arith.constant 0 : index
    %c24 = arith.constant 24 : index
    %c0_220 = arith.constant 0 : index
    %333 = vector.load %arg4[%c0_218, %c0_219, %c24, %c0_220] : memref<1x1x48x4xbf16, #tpu.memory_space<vmem>>, vector<1x1x16x4xbf16>
    %334 = vector.shape_cast %333 : vector<1x1x16x4xbf16> to vector<16x4xbf16>
    %335 = arith.extf %334 : vector<16x4xbf16> to vector<16x4xf32>
    %c0_221 = arith.constant 0 : index
    %c0_222 = arith.constant 0 : index
    %c24_223 = arith.constant 24 : index
    %336 = vector.load %arg7[%c0_221, %c0_222, %c24_223] : memref<1x1x33xf32, #tpu.memory_space<vmem>>, vector<1x1x1xf32>
    %337 = vector.shape_cast %336 : vector<1x1x1xf32> to vector<1x1xf32>
    %338 = vector.broadcast %337 : vector<1x1xf32> to vector<16x4xf32>
    %339 = arith.mulf %335, %338 : vector<16x4xf32>
    %340 = arith.addf %332, %339 : vector<16x4xf32>
    %c0_224 = arith.constant 0 : index
    %c0_225 = arith.constant 0 : index
    %c25 = arith.constant 25 : index
    %c0_226 = arith.constant 0 : index
    %341 = vector.load %arg4[%c0_224, %c0_225, %c25, %c0_226] : memref<1x1x48x4xbf16, #tpu.memory_space<vmem>>, vector<1x1x16x4xbf16>
    %342 = vector.shape_cast %341 : vector<1x1x16x4xbf16> to vector<16x4xbf16>
    %343 = arith.extf %342 : vector<16x4xbf16> to vector<16x4xf32>
    %c0_227 = arith.constant 0 : index
    %c0_228 = arith.constant 0 : index
    %c25_229 = arith.constant 25 : index
    %344 = vector.load %arg7[%c0_227, %c0_228, %c25_229] : memref<1x1x33xf32, #tpu.memory_space<vmem>>, vector<1x1x1xf32>
    %345 = vector.shape_cast %344 : vector<1x1x1xf32> to vector<1x1xf32>
    %346 = vector.broadcast %345 : vector<1x1xf32> to vector<16x4xf32>
    %347 = arith.mulf %343, %346 : vector<16x4xf32>
    %348 = arith.addf %340, %347 : vector<16x4xf32>
    %c0_230 = arith.constant 0 : index
    %c0_231 = arith.constant 0 : index
    %c26 = arith.constant 26 : index
    %c0_232 = arith.constant 0 : index
    %349 = vector.load %arg4[%c0_230, %c0_231, %c26, %c0_232] : memref<1x1x48x4xbf16, #tpu.memory_space<vmem>>, vector<1x1x16x4xbf16>
    %350 = vector.shape_cast %349 : vector<1x1x16x4xbf16> to vector<16x4xbf16>
    %351 = arith.extf %350 : vector<16x4xbf16> to vector<16x4xf32>
    %c0_233 = arith.constant 0 : index
    %c0_234 = arith.constant 0 : index
    %c26_235 = arith.constant 26 : index
    %352 = vector.load %arg7[%c0_233, %c0_234, %c26_235] : memref<1x1x33xf32, #tpu.memory_space<vmem>>, vector<1x1x1xf32>
    %353 = vector.shape_cast %352 : vector<1x1x1xf32> to vector<1x1xf32>
    %354 = vector.broadcast %353 : vector<1x1xf32> to vector<16x4xf32>
    %355 = arith.mulf %351, %354 : vector<16x4xf32>
    %356 = arith.addf %348, %355 : vector<16x4xf32>
    %c0_236 = arith.constant 0 : index
    %c0_237 = arith.constant 0 : index
    %c27 = arith.constant 27 : index
    %c0_238 = arith.constant 0 : index
    %357 = vector.load %arg4[%c0_236, %c0_237, %c27, %c0_238] : memref<1x1x48x4xbf16, #tpu.memory_space<vmem>>, vector<1x1x16x4xbf16>
    %358 = vector.shape_cast %357 : vector<1x1x16x4xbf16> to vector<16x4xbf16>
    %359 = arith.extf %358 : vector<16x4xbf16> to vector<16x4xf32>
    %c0_239 = arith.constant 0 : index
    %c0_240 = arith.constant 0 : index
    %c27_241 = arith.constant 27 : index
    %360 = vector.load %arg7[%c0_239, %c0_240, %c27_241] : memref<1x1x33xf32, #tpu.memory_space<vmem>>, vector<1x1x1xf32>
    %361 = vector.shape_cast %360 : vector<1x1x1xf32> to vector<1x1xf32>
    %362 = vector.broadcast %361 : vector<1x1xf32> to vector<16x4xf32>
    %363 = arith.mulf %359, %362 : vector<16x4xf32>
    %364 = arith.addf %356, %363 : vector<16x4xf32>
    %c0_242 = arith.constant 0 : index
    %c0_243 = arith.constant 0 : index
    %c28 = arith.constant 28 : index
    %c0_244 = arith.constant 0 : index
    %365 = vector.load %arg4[%c0_242, %c0_243, %c28, %c0_244] : memref<1x1x48x4xbf16, #tpu.memory_space<vmem>>, vector<1x1x16x4xbf16>
    %366 = vector.shape_cast %365 : vector<1x1x16x4xbf16> to vector<16x4xbf16>
    %367 = arith.extf %366 : vector<16x4xbf16> to vector<16x4xf32>
    %c0_245 = arith.constant 0 : index
    %c0_246 = arith.constant 0 : index
    %c28_247 = arith.constant 28 : index
    %368 = vector.load %arg7[%c0_245, %c0_246, %c28_247] : memref<1x1x33xf32, #tpu.memory_space<vmem>>, vector<1x1x1xf32>
    %369 = vector.shape_cast %368 : vector<1x1x1xf32> to vector<1x1xf32>
    %370 = vector.broadcast %369 : vector<1x1xf32> to vector<16x4xf32>
    %371 = arith.mulf %367, %370 : vector<16x4xf32>
    %372 = arith.addf %364, %371 : vector<16x4xf32>
    %c0_248 = arith.constant 0 : index
    %c0_249 = arith.constant 0 : index
    %c29 = arith.constant 29 : index
    %c0_250 = arith.constant 0 : index
    %373 = vector.load %arg4[%c0_248, %c0_249, %c29, %c0_250] : memref<1x1x48x4xbf16, #tpu.memory_space<vmem>>, vector<1x1x16x4xbf16>
    %374 = vector.shape_cast %373 : vector<1x1x16x4xbf16> to vector<16x4xbf16>
    %375 = arith.extf %374 : vector<16x4xbf16> to vector<16x4xf32>
    %c0_251 = arith.constant 0 : index
    %c0_252 = arith.constant 0 : index
    %c29_253 = arith.constant 29 : index
    %376 = vector.load %arg7[%c0_251, %c0_252, %c29_253] : memref<1x1x33xf32, #tpu.memory_space<vmem>>, vector<1x1x1xf32>
    %377 = vector.shape_cast %376 : vector<1x1x1xf32> to vector<1x1xf32>
    %378 = vector.broadcast %377 : vector<1x1xf32> to vector<16x4xf32>
    %379 = arith.mulf %375, %378 : vector<16x4xf32>
    %380 = arith.addf %372, %379 : vector<16x4xf32>
    %c0_254 = arith.constant 0 : index
    %c0_255 = arith.constant 0 : index
    %c30 = arith.constant 30 : index
    %c0_256 = arith.constant 0 : index
    %381 = vector.load %arg4[%c0_254, %c0_255, %c30, %c0_256] : memref<1x1x48x4xbf16, #tpu.memory_space<vmem>>, vector<1x1x16x4xbf16>
    %382 = vector.shape_cast %381 : vector<1x1x16x4xbf16> to vector<16x4xbf16>
    %383 = arith.extf %382 : vector<16x4xbf16> to vector<16x4xf32>
    %c0_257 = arith.constant 0 : index
    %c0_258 = arith.constant 0 : index
    %c30_259 = arith.constant 30 : index
    %384 = vector.load %arg7[%c0_257, %c0_258, %c30_259] : memref<1x1x33xf32, #tpu.memory_space<vmem>>, vector<1x1x1xf32>
    %385 = vector.shape_cast %384 : vector<1x1x1xf32> to vector<1x1xf32>
    %386 = vector.broadcast %385 : vector<1x1xf32> to vector<16x4xf32>
    %387 = arith.mulf %383, %386 : vector<16x4xf32>
    %388 = arith.addf %380, %387 : vector<16x4xf32>
    %c0_260 = arith.constant 0 : index
    %c0_261 = arith.constant 0 : index
    %c31 = arith.constant 31 : index
    %c0_262 = arith.constant 0 : index
    %389 = vector.load %arg4[%c0_260, %c0_261, %c31, %c0_262] : memref<1x1x48x4xbf16, #tpu.memory_space<vmem>>, vector<1x1x16x4xbf16>
    %390 = vector.shape_cast %389 : vector<1x1x16x4xbf16> to vector<16x4xbf16>
    %391 = arith.extf %390 : vector<16x4xbf16> to vector<16x4xf32>
    %c0_263 = arith.constant 0 : index
    %c0_264 = arith.constant 0 : index
    %c31_265 = arith.constant 31 : index
    %392 = vector.load %arg7[%c0_263, %c0_264, %c31_265] : memref<1x1x33xf32, #tpu.memory_space<vmem>>, vector<1x1x1xf32>
    %393 = vector.shape_cast %392 : vector<1x1x1xf32> to vector<1x1xf32>
    %394 = vector.broadcast %393 : vector<1x1xf32> to vector<16x4xf32>
    %395 = arith.mulf %391, %394 : vector<16x4xf32>
    %396 = arith.addf %388, %395 : vector<16x4xf32>
    %c0_266 = arith.constant 0 : index
    %c0_267 = arith.constant 0 : index
    %c32 = arith.constant 32 : index
    %c0_268 = arith.constant 0 : index
    %397 = vector.load %arg4[%c0_266, %c0_267, %c32, %c0_268] : memref<1x1x48x4xbf16, #tpu.memory_space<vmem>>, vector<1x1x16x4xbf16>
    %398 = vector.shape_cast %397 : vector<1x1x16x4xbf16> to vector<16x4xbf16>
    %399 = arith.extf %398 : vector<16x4xbf16> to vector<16x4xf32>
    %c0_269 = arith.constant 0 : index
    %c0_270 = arith.constant 0 : index
    %c32_271 = arith.constant 32 : index
    %400 = vector.load %arg7[%c0_269, %c0_270, %c32_271] : memref<1x1x33xf32, #tpu.memory_space<vmem>>, vector<1x1x1xf32>
    %401 = vector.shape_cast %400 : vector<1x1x1xf32> to vector<1x1xf32>
    %402 = vector.broadcast %401 : vector<1x1xf32> to vector<16x4xf32>
    %403 = arith.mulf %399, %402 : vector<16x4xf32>
    %404 = arith.addf %396, %403 : vector<16x4xf32>
    %405 = arith.addf %139, %404 : vector<16x4xf32>
    %406 = arith.truncf %405 : vector<16x4xf32> to vector<16x4xbf16>
    %c0_272 = arith.constant 0 : index
    %c0_273 = arith.constant 0 : index
    %c0_274 = arith.constant 0 : index
    %c0_275 = arith.constant 0 : index
    %407 = vector.load %arg8[%c0_272, %c0_273, %c0_274, %c0_275] : memref<1x1x16x4xbf16, #tpu.memory_space<vmem>>, vector<1x1x16x4xbf16>
    %408 = vector.shape_cast %407 : vector<1x1x16x4xbf16> to vector<16x4xbf16>
    %409 = vector.shape_cast %406 : vector<16x4xbf16> to vector<1x1x16x4xbf16>
    tpu.vector_store %arg8[%c0_272, %c0_273, %c0_274, %c0_275], %409 {strides = array<i32>} : memref<1x1x16x4xbf16, #tpu.memory_space<vmem>>, vector<1x1x16x4xbf16>,
    %410 = arith.truncf %53 : vector<16x16xf32> to vector<16x16xbf16>
    %cst_276 = arith.constant dense<0.000000e+00> : vector<16x16xf32>
    %411 = tpu.matmul %135, %410, %cst_276 {dimension_numbers = #tpu.dot_dimension_numbers<[1], [0], [0], [1], [0, 0, 1, 1], [], []>} : vector<16x16xbf16>, vector<16x16xbf16>, vector<16x16xf32> -> vector<16x16xf32>
    %c0_277 = arith.constant 0 : index
    %c0_278 = arith.constant 0 : index
    %c0_279 = arith.constant 0 : index
    %c0_280 = arith.constant 0 : index
    %412 = vector.load %arg9[%c0_277, %c0_278, %c0_279, %c0_280] : memref<1x1x16x16xf32, #tpu.memory_space<vmem>>, vector<1x1x16x16xf32>
    %413 = vector.shape_cast %412 : vector<1x1x16x16xf32> to vector<16x16xf32>
    %414 = vector.shape_cast %411 : vector<16x16xf32> to vector<1x1x16x16xf32>
    tpu.vector_store %arg9[%c0_277, %c0_278, %c0_279, %c0_280], %414 {strides = array<i32>} : memref<1x1x16x16xf32, #tpu.memory_space<vmem>>, vector<1x1x16x16xf32>,
    return
  }
  func.func @transform_0(%arg0: i32, %arg1: i32) -> (i32, i32, i32, i32) {
    %c0_i32 = arith.constant 0 : i32
    %c0_i32_0 = arith.constant 0 : i32
    %c0_i32_1 = arith.constant 0 : i32
    return %arg0, %arg1, %c0_i32, %c0_i32_0 : i32, i32, i32, i32
  }
  func.func @transform_1(%arg0: i32, %arg1: i32) -> (i32, i32, i32, i32) {
    %c0_i32 = arith.constant 0 : i32
    %c0_i32_0 = arith.constant 0 : i32
    %c0_i32_1 = arith.constant 0 : i32
    return %arg0, %arg1, %c0_i32, %c0_i32_0 : i32, i32, i32, i32
  }
  func.func @transform_2(%arg0: i32, %arg1: i32) -> (i32, i32, i32, i32) {
    %c0_i32 = arith.constant 0 : i32
    %c0_i32_0 = arith.constant 0 : i32
    %c0_i32_1 = arith.constant 0 : i32
    return %arg0, %arg1, %c0_i32, %c0_i32_0 : i32, i32, i32, i32
  }
  func.func @transform_3(%arg0: i32, %arg1: i32) -> (i32, i32, i32, i32) {
    %c0_i32 = arith.constant 0 : i32
    %c0_i32_0 = arith.constant 0 : i32
    %c0_i32_1 = arith.constant 0 : i32
    return %arg0, %arg1, %c0_i32, %c0_i32_0 : i32, i32, i32, i32
  }
  func.func @transform_4(%arg0: i32, %arg1: i32) -> (i32, i32, i32, i32) {
    %c0_i32 = arith.constant 0 : i32
    %c0_i32_0 = arith.constant 0 : i32
    %c0_i32_1 = arith.constant 0 : i32
    return %arg0, %arg1, %c0_i32, %c0_i32_0 : i32, i32, i32, i32
  }
  func.func @transform_5(%arg0: i32, %arg1: i32) -> (i32, i32, i32) {
    %c0_i32 = arith.constant 0 : i32
    %c0_i32_0 = arith.constant 0 : i32
    %c0_i32_1 = arith.constant 0 : i32
    return %arg1, %c0_i32, %c0_i32_0 : i32, i32, i32
  }
  func.func @transform_6(%arg0: i32, %arg1: i32) -> (i32, i32, i32, i32) {
    %c0_i32 = arith.constant 0 : i32
    %c0_i32_0 = arith.constant 0 : i32
    %c0_i32_1 = arith.constant 0 : i32
    return %arg0, %arg1, %c0_i32, %c0_i32_0 : i32, i32, i32, i32
  }
  func.func @transform_7(%arg0: i32, %arg1: i32) -> (i32, i32, i32, i32) {
    %c0_i32 = arith.constant 0 : i32
    %c0_i32_0 = arith.constant 0 : i32
    %c0_i32_1 = arith.constant 0 : i32
    return %arg0, %arg1, %c0_i32, %c0_i32_0 : i32, i32, i32, i32
  }
}

module attributes {stable_mosaic.version = 11 : i64} {
  func.func @_out_res_kernel(%arg0: i32, %arg1: memref<24x32xbf16, #tpu.memory_space<vmem>>, %arg2: memref<32x32xbf16, #tpu.memory_space<vmem>>, %arg3: memref<1x32xf32, #tpu.memory_space<vmem>>, %arg4: memref<24x32xf32, #tpu.memory_space<vmem>>, %arg5: memref<24x32xf32, #tpu.memory_space<vmem>>) attributes {dimension_semantics = [#tpu.dimension_semantics<parallel>], iteration_bounds = array<i64: 1>, scalar_prefetch = 0 : i64, scratch_operands = 0 : i64, tpu.core_type = #tpu.core_type<tc>, window_params = [{transform_indices = @transform_0, window_bounds = array<i64: 24, 32>}, {pipeline_mode = #tpu.pipeline_mode<synchronous>, transform_indices = @transform_1, window_bounds = array<i64: 32, 32>}, {pipeline_mode = #tpu.pipeline_mode<synchronous>, transform_indices = @transform_2, window_bounds = array<i64: 1, 32>}, {transform_indices = @transform_3, window_bounds = array<i64: 24, 32>}, {transform_indices = @transform_4, window_bounds = array<i64: 24, 32>}]} {
    %c0 = arith.constant 0 : index
    %c0_0 = arith.constant 0 : index
    %0 = vector.load %arg1[%c0, %c0_0] : memref<24x32xbf16, #tpu.memory_space<vmem>>, vector<24x32xbf16>
    %c0_1 = arith.constant 0 : index
    %c0_2 = arith.constant 0 : index
    %1 = vector.load %arg2[%c0_1, %c0_2] : memref<32x32xbf16, #tpu.memory_space<vmem>>, vector<32x32xbf16>
    %cst = arith.constant dense<0.000000e+00> : vector<24x32xf32>
    %2 = tpu.matmul %0, %1, %cst {dimension_numbers = #tpu.dot_dimension_numbers<[1], [0], [0], [1], [0, 0, 1, 1], [], []>} : vector<24x32xbf16>, vector<32x32xbf16>, vector<24x32xf32> -> vector<24x32xf32>
    %c0_3 = arith.constant 0 : index
    %c0_4 = arith.constant 0 : index
    %3 = vector.load %arg3[%c0_3, %c0_4] : memref<1x32xf32, #tpu.memory_space<vmem>>, vector<1x32xf32>
    %4 = vector.broadcast %3 : vector<1x32xf32> to vector<24x32xf32>
    %5 = arith.addf %2, %4 : vector<24x32xf32>
    %c0_5 = arith.constant 0 : index
    %c0_6 = arith.constant 0 : index
    %6 = vector.load %arg4[%c0_5, %c0_6] : memref<24x32xf32, #tpu.memory_space<vmem>>, vector<24x32xf32>
    %7 = arith.addf %5, %6 : vector<24x32xf32>
    %c0_7 = arith.constant 0 : index
    %c0_8 = arith.constant 0 : index
    %8 = vector.load %arg5[%c0_7, %c0_8] : memref<24x32xf32, #tpu.memory_space<vmem>>, vector<24x32xf32>
    tpu.vector_store %arg5[%c0_7, %c0_8], %7 {strides = array<i32>} : memref<24x32xf32, #tpu.memory_space<vmem>>, vector<24x32xf32>,
    return
  }
  func.func @transform_0(%arg0: i32) -> (i32, i32) {
    %c0_i32 = arith.constant 0 : i32
    %c0_i32_0 = arith.constant 0 : i32
    return %arg0, %c0_i32 : i32, i32
  }
  func.func @transform_1(%arg0: i32) -> (i32, i32) {
    %c0_i32 = arith.constant 0 : i32
    %c0_i32_0 = arith.constant 0 : i32
    %c0_i32_1 = arith.constant 0 : i32
    return %c0_i32, %c0_i32_0 : i32, i32
  }
  func.func @transform_2(%arg0: i32) -> (i32, i32) {
    %c0_i32 = arith.constant 0 : i32
    %c0_i32_0 = arith.constant 0 : i32
    %c0_i32_1 = arith.constant 0 : i32
    return %c0_i32, %c0_i32_0 : i32, i32
  }
  func.func @transform_3(%arg0: i32) -> (i32, i32) {
    %c0_i32 = arith.constant 0 : i32
    %c0_i32_0 = arith.constant 0 : i32
    return %arg0, %c0_i32 : i32, i32
  }
  func.func @transform_4(%arg0: i32) -> (i32, i32) {
    %c0_i32 = arith.constant 0 : i32
    %c0_i32_0 = arith.constant 0 : i32
    return %arg0, %c0_i32 : i32, i32
  }
}

module attributes {stable_mosaic.version = 11 : i64} {
  func.func @_ppeg_kernel(%arg0: i32, %arg1: memref<1x9x9x32xf32, #tpu.memory_space<vmem>>, %arg2: memref<7x7x32xf32, #tpu.memory_space<vmem>>, %arg3: memref<1x1x32xf32, #tpu.memory_space<vmem>>, %arg4: memref<1x3x3x32xf32, #tpu.memory_space<vmem>>) attributes {dimension_semantics = [#tpu.dimension_semantics<parallel>], iteration_bounds = array<i64: 2>, scalar_prefetch = 0 : i64, scratch_operands = 0 : i64, tpu.core_type = #tpu.core_type<tc>, window_params = [{transform_indices = @transform_0, window_bounds = array<i64: 1, 9, 9, 32>}, {pipeline_mode = #tpu.pipeline_mode<synchronous>, transform_indices = @transform_1, window_bounds = array<i64: 7, 7, 32>}, {pipeline_mode = #tpu.pipeline_mode<synchronous>, transform_indices = @transform_2, window_bounds = array<i64: 1, 1, 32>}, {transform_indices = @transform_3, window_bounds = array<i64: 1, 3, 3, 32>}]} {
    %cst = arith.constant 0.000000e+00 : f32
    %0 = vector.broadcast %cst : f32 to vector<3x3x32xf32>
    %c0 = arith.constant 0 : index
    %c0_0 = arith.constant 0 : index
    %c0_1 = arith.constant 0 : index
    %1 = vector.load %arg3[%c0, %c0_0, %c0_1] : memref<1x1x32xf32, #tpu.memory_space<vmem>>, vector<1x1x32xf32>
    %2 = vector.broadcast %1 : vector<1x1x32xf32> to vector<3x3x32xf32>
    %3 = arith.addf %0, %2 : vector<3x3x32xf32>
    %c0_2 = arith.constant 0 : index
    %c0_3 = arith.constant 0 : index
    %c0_4 = arith.constant 0 : index
    %c0_5 = arith.constant 0 : index
    %4 = vector.load %arg1[%c0_2, %c0_3, %c0_4, %c0_5] : memref<1x9x9x32xf32, #tpu.memory_space<vmem>>, vector<1x3x3x32xf32>
    %5 = vector.shape_cast %4 : vector<1x3x3x32xf32> to vector<3x3x32xf32>
    %c0_6 = arith.constant 0 : index
    %c0_7 = arith.constant 0 : index
    %c0_8 = arith.constant 0 : index
    %6 = vector.load %arg2[%c0_6, %c0_7, %c0_8] : memref<7x7x32xf32, #tpu.memory_space<vmem>>, vector<1x1x32xf32>
    %7 = vector.broadcast %6 : vector<1x1x32xf32> to vector<3x3x32xf32>
    %8 = arith.mulf %5, %7 : vector<3x3x32xf32>
    %9 = arith.addf %3, %8 : vector<3x3x32xf32>
    %c0_9 = arith.constant 0 : index
    %c0_10 = arith.constant 0 : index
    %c1 = arith.constant 1 : index
    %c0_11 = arith.constant 0 : index
    %10 = vector.load %arg1[%c0_9, %c0_10, %c1, %c0_11] : memref<1x9x9x32xf32, #tpu.memory_space<vmem>>, vector<1x3x3x32xf32>
    %11 = vector.shape_cast %10 : vector<1x3x3x32xf32> to vector<3x3x32xf32>
    %c0_12 = arith.constant 0 : index
    %c1_13 = arith.constant 1 : index
    %c0_14 = arith.constant 0 : index
    %12 = vector.load %arg2[%c0_12, %c1_13, %c0_14] : memref<7x7x32xf32, #tpu.memory_space<vmem>>, vector<1x1x32xf32>
    %13 = vector.broadcast %12 : vector<1x1x32xf32> to vector<3x3x32xf32>
    %14 = arith.mulf %11, %13 : vector<3x3x32xf32>
    %15 = arith.addf %9, %14 : vector<3x3x32xf32>
    %c0_15 = arith.constant 0 : index
    %c0_16 = arith.constant 0 : index
    %c2 = arith.constant 2 : index
    %c0_17 = arith.constant 0 : index
    %16 = vector.load %arg1[%c0_15, %c0_16, %c2, %c0_17] : memref<1x9x9x32xf32, #tpu.memory_space<vmem>>, vector<1x3x3x32xf32>
    %17 = vector.shape_cast %16 : vector<1x3x3x32xf32> to vector<3x3x32xf32>
    %c0_18 = arith.constant 0 : index
    %c2_19 = arith.constant 2 : index
    %c0_20 = arith.constant 0 : index
    %18 = vector.load %arg2[%c0_18, %c2_19, %c0_20] : memref<7x7x32xf32, #tpu.memory_space<vmem>>, vector<1x1x32xf32>
    %19 = vector.broadcast %18 : vector<1x1x32xf32> to vector<3x3x32xf32>
    %20 = arith.mulf %17, %19 : vector<3x3x32xf32>
    %21 = arith.addf %15, %20 : vector<3x3x32xf32>
    %c0_21 = arith.constant 0 : index
    %c0_22 = arith.constant 0 : index
    %c3 = arith.constant 3 : index
    %c0_23 = arith.constant 0 : index
    %22 = vector.load %arg1[%c0_21, %c0_22, %c3, %c0_23] : memref<1x9x9x32xf32, #tpu.memory_space<vmem>>, vector<1x3x3x32xf32>
    %23 = vector.shape_cast %22 : vector<1x3x3x32xf32> to vector<3x3x32xf32>
    %c0_24 = arith.constant 0 : index
    %c3_25 = arith.constant 3 : index
    %c0_26 = arith.constant 0 : index
    %24 = vector.load %arg2[%c0_24, %c3_25, %c0_26] : memref<7x7x32xf32, #tpu.memory_space<vmem>>, vector<1x1x32xf32>
    %25 = vector.broadcast %24 : vector<1x1x32xf32> to vector<3x3x32xf32>
    %26 = arith.mulf %23, %25 : vector<3x3x32xf32>
    %27 = arith.addf %21, %26 : vector<3x3x32xf32>
    %c0_27 = arith.constant 0 : index
    %c0_28 = arith.constant 0 : index
    %c4 = arith.constant 4 : index
    %c0_29 = arith.constant 0 : index
    %28 = vector.load %arg1[%c0_27, %c0_28, %c4, %c0_29] : memref<1x9x9x32xf32, #tpu.memory_space<vmem>>, vector<1x3x3x32xf32>
    %29 = vector.shape_cast %28 : vector<1x3x3x32xf32> to vector<3x3x32xf32>
    %c0_30 = arith.constant 0 : index
    %c4_31 = arith.constant 4 : index
    %c0_32 = arith.constant 0 : index
    %30 = vector.load %arg2[%c0_30, %c4_31, %c0_32] : memref<7x7x32xf32, #tpu.memory_space<vmem>>, vector<1x1x32xf32>
    %31 = vector.broadcast %30 : vector<1x1x32xf32> to vector<3x3x32xf32>
    %32 = arith.mulf %29, %31 : vector<3x3x32xf32>
    %33 = arith.addf %27, %32 : vector<3x3x32xf32>
    %c0_33 = arith.constant 0 : index
    %c0_34 = arith.constant 0 : index
    %c5 = arith.constant 5 : index
    %c0_35 = arith.constant 0 : index
    %34 = vector.load %arg1[%c0_33, %c0_34, %c5, %c0_35] : memref<1x9x9x32xf32, #tpu.memory_space<vmem>>, vector<1x3x3x32xf32>
    %35 = vector.shape_cast %34 : vector<1x3x3x32xf32> to vector<3x3x32xf32>
    %c0_36 = arith.constant 0 : index
    %c5_37 = arith.constant 5 : index
    %c0_38 = arith.constant 0 : index
    %36 = vector.load %arg2[%c0_36, %c5_37, %c0_38] : memref<7x7x32xf32, #tpu.memory_space<vmem>>, vector<1x1x32xf32>
    %37 = vector.broadcast %36 : vector<1x1x32xf32> to vector<3x3x32xf32>
    %38 = arith.mulf %35, %37 : vector<3x3x32xf32>
    %39 = arith.addf %33, %38 : vector<3x3x32xf32>
    %c0_39 = arith.constant 0 : index
    %c0_40 = arith.constant 0 : index
    %c6 = arith.constant 6 : index
    %c0_41 = arith.constant 0 : index
    %40 = vector.load %arg1[%c0_39, %c0_40, %c6, %c0_41] : memref<1x9x9x32xf32, #tpu.memory_space<vmem>>, vector<1x3x3x32xf32>
    %41 = vector.shape_cast %40 : vector<1x3x3x32xf32> to vector<3x3x32xf32>
    %c0_42 = arith.constant 0 : index
    %c6_43 = arith.constant 6 : index
    %c0_44 = arith.constant 0 : index
    %42 = vector.load %arg2[%c0_42, %c6_43, %c0_44] : memref<7x7x32xf32, #tpu.memory_space<vmem>>, vector<1x1x32xf32>
    %43 = vector.broadcast %42 : vector<1x1x32xf32> to vector<3x3x32xf32>
    %44 = arith.mulf %41, %43 : vector<3x3x32xf32>
    %45 = arith.addf %39, %44 : vector<3x3x32xf32>
    %c0_45 = arith.constant 0 : index
    %c1_46 = arith.constant 1 : index
    %c0_47 = arith.constant 0 : index
    %c0_48 = arith.constant 0 : index
    %46 = vector.load %arg1[%c0_45, %c1_46, %c0_47, %c0_48] : memref<1x9x9x32xf32, #tpu.memory_space<vmem>>, vector<1x3x3x32xf32>
    %47 = vector.shape_cast %46 : vector<1x3x3x32xf32> to vector<3x3x32xf32>
    %c1_49 = arith.constant 1 : index
    %c0_50 = arith.constant 0 : index
    %c0_51 = arith.constant 0 : index
    %48 = vector.load %arg2[%c1_49, %c0_50, %c0_51] : memref<7x7x32xf32, #tpu.memory_space<vmem>>, vector<1x1x32xf32>
    %49 = vector.broadcast %48 : vector<1x1x32xf32> to vector<3x3x32xf32>
    %50 = arith.mulf %47, %49 : vector<3x3x32xf32>
    %51 = arith.addf %45, %50 : vector<3x3x32xf32>
    %c0_52 = arith.constant 0 : index
    %c1_53 = arith.constant 1 : index
    %c1_54 = arith.constant 1 : index
    %c0_55 = arith.constant 0 : index
    %52 = vector.load %arg1[%c0_52, %c1_53, %c1_54, %c0_55] : memref<1x9x9x32xf32, #tpu.memory_space<vmem>>, vector<1x3x3x32xf32>
    %53 = vector.shape_cast %52 : vector<1x3x3x32xf32> to vector<3x3x32xf32>
    %c1_56 = arith.constant 1 : index
    %c1_57 = arith.constant 1 : index
    %c0_58 = arith.constant 0 : index
    %54 = vector.load %arg2[%c1_56, %c1_57, %c0_58] : memref<7x7x32xf32, #tpu.memory_space<vmem>>, vector<1x1x32xf32>
    %55 = vector.broadcast %54 : vector<1x1x32xf32> to vector<3x3x32xf32>
    %56 = arith.mulf %53, %55 : vector<3x3x32xf32>
    %57 = arith.addf %51, %56 : vector<3x3x32xf32>
    %c0_59 = arith.constant 0 : index
    %c1_60 = arith.constant 1 : index
    %c2_61 = arith.constant 2 : index
    %c0_62 = arith.constant 0 : index
    %58 = vector.load %arg1[%c0_59, %c1_60, %c2_61, %c0_62] : memref<1x9x9x32xf32, #tpu.memory_space<vmem>>, vector<1x3x3x32xf32>
    %59 = vector.shape_cast %58 : vector<1x3x3x32xf32> to vector<3x3x32xf32>
    %c1_63 = arith.constant 1 : index
    %c2_64 = arith.constant 2 : index
    %c0_65 = arith.constant 0 : index
    %60 = vector.load %arg2[%c1_63, %c2_64, %c0_65] : memref<7x7x32xf32, #tpu.memory_space<vmem>>, vector<1x1x32xf32>
    %61 = vector.broadcast %60 : vector<1x1x32xf32> to vector<3x3x32xf32>
    %62 = arith.mulf %59, %61 : vector<3x3x32xf32>
    %63 = arith.addf %57, %62 : vector<3x3x32xf32>
    %c0_66 = arith.constant 0 : index
    %c1_67 = arith.constant 1 : index
    %c3_68 = arith.constant 3 : index
    %c0_69 = arith.constant 0 : index
    %64 = vector.load %arg1[%c0_66, %c1_67, %c3_68, %c0_69] : memref<1x9x9x32xf32, #tpu.memory_space<vmem>>, vector<1x3x3x32xf32>
    %65 = vector.shape_cast %64 : vector<1x3x3x32xf32> to vector<3x3x32xf32>
    %c1_70 = arith.constant 1 : index
    %c3_71 = arith.constant 3 : index
    %c0_72 = arith.constant 0 : index
    %66 = vector.load %arg2[%c1_70, %c3_71, %c0_72] : memref<7x7x32xf32, #tpu.memory_space<vmem>>, vector<1x1x32xf32>
    %67 = vector.broadcast %66 : vector<1x1x32xf32> to vector<3x3x32xf32>
    %68 = arith.mulf %65, %67 : vector<3x3x32xf32>
    %69 = arith.addf %63, %68 : vector<3x3x32xf32>
    %c0_73 = arith.constant 0 : index
    %c1_74 = arith.constant 1 : index
    %c4_75 = arith.constant 4 : index
    %c0_76 = arith.constant 0 : index
    %70 = vector.load %arg1[%c0_73, %c1_74, %c4_75, %c0_76] : memref<1x9x9x32xf32, #tpu.memory_space<vmem>>, vector<1x3x3x32xf32>
    %71 = vector.shape_cast %70 : vector<1x3x3x32xf32> to vector<3x3x32xf32>
    %c1_77 = arith.constant 1 : index
    %c4_78 = arith.constant 4 : index
    %c0_79 = arith.constant 0 : index
    %72 = vector.load %arg2[%c1_77, %c4_78, %c0_79] : memref<7x7x32xf32, #tpu.memory_space<vmem>>, vector<1x1x32xf32>
    %73 = vector.broadcast %72 : vector<1x1x32xf32> to vector<3x3x32xf32>
    %74 = arith.mulf %71, %73 : vector<3x3x32xf32>
    %75 = arith.addf %69, %74 : vector<3x3x32xf32>
    %c0_80 = arith.constant 0 : index
    %c1_81 = arith.constant 1 : index
    %c5_82 = arith.constant 5 : index
    %c0_83 = arith.constant 0 : index
    %76 = vector.load %arg1[%c0_80, %c1_81, %c5_82, %c0_83] : memref<1x9x9x32xf32, #tpu.memory_space<vmem>>, vector<1x3x3x32xf32>
    %77 = vector.shape_cast %76 : vector<1x3x3x32xf32> to vector<3x3x32xf32>
    %c1_84 = arith.constant 1 : index
    %c5_85 = arith.constant 5 : index
    %c0_86 = arith.constant 0 : index
    %78 = vector.load %arg2[%c1_84, %c5_85, %c0_86] : memref<7x7x32xf32, #tpu.memory_space<vmem>>, vector<1x1x32xf32>
    %79 = vector.broadcast %78 : vector<1x1x32xf32> to vector<3x3x32xf32>
    %80 = arith.mulf %77, %79 : vector<3x3x32xf32>
    %81 = arith.addf %75, %80 : vector<3x3x32xf32>
    %c0_87 = arith.constant 0 : index
    %c1_88 = arith.constant 1 : index
    %c6_89 = arith.constant 6 : index
    %c0_90 = arith.constant 0 : index
    %82 = vector.load %arg1[%c0_87, %c1_88, %c6_89, %c0_90] : memref<1x9x9x32xf32, #tpu.memory_space<vmem>>, vector<1x3x3x32xf32>
    %83 = vector.shape_cast %82 : vector<1x3x3x32xf32> to vector<3x3x32xf32>
    %c1_91 = arith.constant 1 : index
    %c6_92 = arith.constant 6 : index
    %c0_93 = arith.constant 0 : index
    %84 = vector.load %arg2[%c1_91, %c6_92, %c0_93] : memref<7x7x32xf32, #tpu.memory_space<vmem>>, vector<1x1x32xf32>
    %85 = vector.broadcast %84 : vector<1x1x32xf32> to vector<3x3x32xf32>
    %86 = arith.mulf %83, %85 : vector<3x3x32xf32>
    %87 = arith.addf %81, %86 : vector<3x3x32xf32>
    %c0_94 = arith.constant 0 : index
    %c2_95 = arith.constant 2 : index
    %c0_96 = arith.constant 0 : index
    %c0_97 = arith.constant 0 : index
    %88 = vector.load %arg1[%c0_94, %c2_95, %c0_96, %c0_97] : memref<1x9x9x32xf32, #tpu.memory_space<vmem>>, vector<1x3x3x32xf32>
    %89 = vector.shape_cast %88 : vector<1x3x3x32xf32> to vector<3x3x32xf32>
    %c2_98 = arith.constant 2 : index
    %c0_99 = arith.constant 0 : index
    %c0_100 = arith.constant 0 : index
    %90 = vector.load %arg2[%c2_98, %c0_99, %c0_100] : memref<7x7x32xf32, #tpu.memory_space<vmem>>, vector<1x1x32xf32>
    %91 = vector.broadcast %90 : vector<1x1x32xf32> to vector<3x3x32xf32>
    %92 = arith.mulf %89, %91 : vector<3x3x32xf32>
    %93 = arith.addf %87, %92 : vector<3x3x32xf32>
    %c0_101 = arith.constant 0 : index
    %c2_102 = arith.constant 2 : index
    %c1_103 = arith.constant 1 : index
    %c0_104 = arith.constant 0 : index
    %94 = vector.load %arg1[%c0_101, %c2_102, %c1_103, %c0_104] : memref<1x9x9x32xf32, #tpu.memory_space<vmem>>, vector<1x3x3x32xf32>
    %95 = vector.shape_cast %94 : vector<1x3x3x32xf32> to vector<3x3x32xf32>
    %c2_105 = arith.constant 2 : index
    %c1_106 = arith.constant 1 : index
    %c0_107 = arith.constant 0 : index
    %96 = vector.load %arg2[%c2_105, %c1_106, %c0_107] : memref<7x7x32xf32, #tpu.memory_space<vmem>>, vector<1x1x32xf32>
    %97 = vector.broadcast %96 : vector<1x1x32xf32> to vector<3x3x32xf32>
    %98 = arith.mulf %95, %97 : vector<3x3x32xf32>
    %99 = arith.addf %93, %98 : vector<3x3x32xf32>
    %c0_108 = arith.constant 0 : index
    %c2_109 = arith.constant 2 : index
    %c2_110 = arith.constant 2 : index
    %c0_111 = arith.constant 0 : index
    %100 = vector.load %arg1[%c0_108, %c2_109, %c2_110, %c0_111] : memref<1x9x9x32xf32, #tpu.memory_space<vmem>>, vector<1x3x3x32xf32>
    %101 = vector.shape_cast %100 : vector<1x3x3x32xf32> to vector<3x3x32xf32>
    %c2_112 = arith.constant 2 : index
    %c2_113 = arith.constant 2 : index
    %c0_114 = arith.constant 0 : index
    %102 = vector.load %arg2[%c2_112, %c2_113, %c0_114] : memref<7x7x32xf32, #tpu.memory_space<vmem>>, vector<1x1x32xf32>
    %103 = vector.broadcast %102 : vector<1x1x32xf32> to vector<3x3x32xf32>
    %104 = arith.mulf %101, %103 : vector<3x3x32xf32>
    %105 = arith.addf %99, %104 : vector<3x3x32xf32>
    %c0_115 = arith.constant 0 : index
    %c2_116 = arith.constant 2 : index
    %c3_117 = arith.constant 3 : index
    %c0_118 = arith.constant 0 : index
    %106 = vector.load %arg1[%c0_115, %c2_116, %c3_117, %c0_118] : memref<1x9x9x32xf32, #tpu.memory_space<vmem>>, vector<1x3x3x32xf32>
    %107 = vector.shape_cast %106 : vector<1x3x3x32xf32> to vector<3x3x32xf32>
    %c2_119 = arith.constant 2 : index
    %c3_120 = arith.constant 3 : index
    %c0_121 = arith.constant 0 : index
    %108 = vector.load %arg2[%c2_119, %c3_120, %c0_121] : memref<7x7x32xf32, #tpu.memory_space<vmem>>, vector<1x1x32xf32>
    %109 = vector.broadcast %108 : vector<1x1x32xf32> to vector<3x3x32xf32>
    %110 = arith.mulf %107, %109 : vector<3x3x32xf32>
    %111 = arith.addf %105, %110 : vector<3x3x32xf32>
    %c0_122 = arith.constant 0 : index
    %c2_123 = arith.constant 2 : index
    %c4_124 = arith.constant 4 : index
    %c0_125 = arith.constant 0 : index
    %112 = vector.load %arg1[%c0_122, %c2_123, %c4_124, %c0_125] : memref<1x9x9x32xf32, #tpu.memory_space<vmem>>, vector<1x3x3x32xf32>
    %113 = vector.shape_cast %112 : vector<1x3x3x32xf32> to vector<3x3x32xf32>
    %c2_126 = arith.constant 2 : index
    %c4_127 = arith.constant 4 : index
    %c0_128 = arith.constant 0 : index
    %114 = vector.load %arg2[%c2_126, %c4_127, %c0_128] : memref<7x7x32xf32, #tpu.memory_space<vmem>>, vector<1x1x32xf32>
    %115 = vector.broadcast %114 : vector<1x1x32xf32> to vector<3x3x32xf32>
    %116 = arith.mulf %113, %115 : vector<3x3x32xf32>
    %117 = arith.addf %111, %116 : vector<3x3x32xf32>
    %c0_129 = arith.constant 0 : index
    %c2_130 = arith.constant 2 : index
    %c5_131 = arith.constant 5 : index
    %c0_132 = arith.constant 0 : index
    %118 = vector.load %arg1[%c0_129, %c2_130, %c5_131, %c0_132] : memref<1x9x9x32xf32, #tpu.memory_space<vmem>>, vector<1x3x3x32xf32>
    %119 = vector.shape_cast %118 : vector<1x3x3x32xf32> to vector<3x3x32xf32>
    %c2_133 = arith.constant 2 : index
    %c5_134 = arith.constant 5 : index
    %c0_135 = arith.constant 0 : index
    %120 = vector.load %arg2[%c2_133, %c5_134, %c0_135] : memref<7x7x32xf32, #tpu.memory_space<vmem>>, vector<1x1x32xf32>
    %121 = vector.broadcast %120 : vector<1x1x32xf32> to vector<3x3x32xf32>
    %122 = arith.mulf %119, %121 : vector<3x3x32xf32>
    %123 = arith.addf %117, %122 : vector<3x3x32xf32>
    %c0_136 = arith.constant 0 : index
    %c2_137 = arith.constant 2 : index
    %c6_138 = arith.constant 6 : index
    %c0_139 = arith.constant 0 : index
    %124 = vector.load %arg1[%c0_136, %c2_137, %c6_138, %c0_139] : memref<1x9x9x32xf32, #tpu.memory_space<vmem>>, vector<1x3x3x32xf32>
    %125 = vector.shape_cast %124 : vector<1x3x3x32xf32> to vector<3x3x32xf32>
    %c2_140 = arith.constant 2 : index
    %c6_141 = arith.constant 6 : index
    %c0_142 = arith.constant 0 : index
    %126 = vector.load %arg2[%c2_140, %c6_141, %c0_142] : memref<7x7x32xf32, #tpu.memory_space<vmem>>, vector<1x1x32xf32>
    %127 = vector.broadcast %126 : vector<1x1x32xf32> to vector<3x3x32xf32>
    %128 = arith.mulf %125, %127 : vector<3x3x32xf32>
    %129 = arith.addf %123, %128 : vector<3x3x32xf32>
    %c0_143 = arith.constant 0 : index
    %c3_144 = arith.constant 3 : index
    %c0_145 = arith.constant 0 : index
    %c0_146 = arith.constant 0 : index
    %130 = vector.load %arg1[%c0_143, %c3_144, %c0_145, %c0_146] : memref<1x9x9x32xf32, #tpu.memory_space<vmem>>, vector<1x3x3x32xf32>
    %131 = vector.shape_cast %130 : vector<1x3x3x32xf32> to vector<3x3x32xf32>
    %c3_147 = arith.constant 3 : index
    %c0_148 = arith.constant 0 : index
    %c0_149 = arith.constant 0 : index
    %132 = vector.load %arg2[%c3_147, %c0_148, %c0_149] : memref<7x7x32xf32, #tpu.memory_space<vmem>>, vector<1x1x32xf32>
    %133 = vector.broadcast %132 : vector<1x1x32xf32> to vector<3x3x32xf32>
    %134 = arith.mulf %131, %133 : vector<3x3x32xf32>
    %135 = arith.addf %129, %134 : vector<3x3x32xf32>
    %c0_150 = arith.constant 0 : index
    %c3_151 = arith.constant 3 : index
    %c1_152 = arith.constant 1 : index
    %c0_153 = arith.constant 0 : index
    %136 = vector.load %arg1[%c0_150, %c3_151, %c1_152, %c0_153] : memref<1x9x9x32xf32, #tpu.memory_space<vmem>>, vector<1x3x3x32xf32>
    %137 = vector.shape_cast %136 : vector<1x3x3x32xf32> to vector<3x3x32xf32>
    %c3_154 = arith.constant 3 : index
    %c1_155 = arith.constant 1 : index
    %c0_156 = arith.constant 0 : index
    %138 = vector.load %arg2[%c3_154, %c1_155, %c0_156] : memref<7x7x32xf32, #tpu.memory_space<vmem>>, vector<1x1x32xf32>
    %139 = vector.broadcast %138 : vector<1x1x32xf32> to vector<3x3x32xf32>
    %140 = arith.mulf %137, %139 : vector<3x3x32xf32>
    %141 = arith.addf %135, %140 : vector<3x3x32xf32>
    %c0_157 = arith.constant 0 : index
    %c3_158 = arith.constant 3 : index
    %c2_159 = arith.constant 2 : index
    %c0_160 = arith.constant 0 : index
    %142 = vector.load %arg1[%c0_157, %c3_158, %c2_159, %c0_160] : memref<1x9x9x32xf32, #tpu.memory_space<vmem>>, vector<1x3x3x32xf32>
    %143 = vector.shape_cast %142 : vector<1x3x3x32xf32> to vector<3x3x32xf32>
    %c3_161 = arith.constant 3 : index
    %c2_162 = arith.constant 2 : index
    %c0_163 = arith.constant 0 : index
    %144 = vector.load %arg2[%c3_161, %c2_162, %c0_163] : memref<7x7x32xf32, #tpu.memory_space<vmem>>, vector<1x1x32xf32>
    %145 = vector.broadcast %144 : vector<1x1x32xf32> to vector<3x3x32xf32>
    %146 = arith.mulf %143, %145 : vector<3x3x32xf32>
    %147 = arith.addf %141, %146 : vector<3x3x32xf32>
    %c0_164 = arith.constant 0 : index
    %c3_165 = arith.constant 3 : index
    %c3_166 = arith.constant 3 : index
    %c0_167 = arith.constant 0 : index
    %148 = vector.load %arg1[%c0_164, %c3_165, %c3_166, %c0_167] : memref<1x9x9x32xf32, #tpu.memory_space<vmem>>, vector<1x3x3x32xf32>
    %149 = vector.shape_cast %148 : vector<1x3x3x32xf32> to vector<3x3x32xf32>
    %c3_168 = arith.constant 3 : index
    %c3_169 = arith.constant 3 : index
    %c0_170 = arith.constant 0 : index
    %150 = vector.load %arg2[%c3_168, %c3_169, %c0_170] : memref<7x7x32xf32, #tpu.memory_space<vmem>>, vector<1x1x32xf32>
    %151 = vector.broadcast %150 : vector<1x1x32xf32> to vector<3x3x32xf32>
    %152 = arith.mulf %149, %151 : vector<3x3x32xf32>
    %153 = arith.addf %147, %152 : vector<3x3x32xf32>
    %c0_171 = arith.constant 0 : index
    %c3_172 = arith.constant 3 : index
    %c4_173 = arith.constant 4 : index
    %c0_174 = arith.constant 0 : index
    %154 = vector.load %arg1[%c0_171, %c3_172, %c4_173, %c0_174] : memref<1x9x9x32xf32, #tpu.memory_space<vmem>>, vector<1x3x3x32xf32>
    %155 = vector.shape_cast %154 : vector<1x3x3x32xf32> to vector<3x3x32xf32>
    %c3_175 = arith.constant 3 : index
    %c4_176 = arith.constant 4 : index
    %c0_177 = arith.constant 0 : index
    %156 = vector.load %arg2[%c3_175, %c4_176, %c0_177] : memref<7x7x32xf32, #tpu.memory_space<vmem>>, vector<1x1x32xf32>
    %157 = vector.broadcast %156 : vector<1x1x32xf32> to vector<3x3x32xf32>
    %158 = arith.mulf %155, %157 : vector<3x3x32xf32>
    %159 = arith.addf %153, %158 : vector<3x3x32xf32>
    %c0_178 = arith.constant 0 : index
    %c3_179 = arith.constant 3 : index
    %c5_180 = arith.constant 5 : index
    %c0_181 = arith.constant 0 : index
    %160 = vector.load %arg1[%c0_178, %c3_179, %c5_180, %c0_181] : memref<1x9x9x32xf32, #tpu.memory_space<vmem>>, vector<1x3x3x32xf32>
    %161 = vector.shape_cast %160 : vector<1x3x3x32xf32> to vector<3x3x32xf32>
    %c3_182 = arith.constant 3 : index
    %c5_183 = arith.constant 5 : index
    %c0_184 = arith.constant 0 : index
    %162 = vector.load %arg2[%c3_182, %c5_183, %c0_184] : memref<7x7x32xf32, #tpu.memory_space<vmem>>, vector<1x1x32xf32>
    %163 = vector.broadcast %162 : vector<1x1x32xf32> to vector<3x3x32xf32>
    %164 = arith.mulf %161, %163 : vector<3x3x32xf32>
    %165 = arith.addf %159, %164 : vector<3x3x32xf32>
    %c0_185 = arith.constant 0 : index
    %c3_186 = arith.constant 3 : index
    %c6_187 = arith.constant 6 : index
    %c0_188 = arith.constant 0 : index
    %166 = vector.load %arg1[%c0_185, %c3_186, %c6_187, %c0_188] : memref<1x9x9x32xf32, #tpu.memory_space<vmem>>, vector<1x3x3x32xf32>
    %167 = vector.shape_cast %166 : vector<1x3x3x32xf32> to vector<3x3x32xf32>
    %c3_189 = arith.constant 3 : index
    %c6_190 = arith.constant 6 : index
    %c0_191 = arith.constant 0 : index
    %168 = vector.load %arg2[%c3_189, %c6_190, %c0_191] : memref<7x7x32xf32, #tpu.memory_space<vmem>>, vector<1x1x32xf32>
    %169 = vector.broadcast %168 : vector<1x1x32xf32> to vector<3x3x32xf32>
    %170 = arith.mulf %167, %169 : vector<3x3x32xf32>
    %171 = arith.addf %165, %170 : vector<3x3x32xf32>
    %c0_192 = arith.constant 0 : index
    %c4_193 = arith.constant 4 : index
    %c0_194 = arith.constant 0 : index
    %c0_195 = arith.constant 0 : index
    %172 = vector.load %arg1[%c0_192, %c4_193, %c0_194, %c0_195] : memref<1x9x9x32xf32, #tpu.memory_space<vmem>>, vector<1x3x3x32xf32>
    %173 = vector.shape_cast %172 : vector<1x3x3x32xf32> to vector<3x3x32xf32>
    %c4_196 = arith.constant 4 : index
    %c0_197 = arith.constant 0 : index
    %c0_198 = arith.constant 0 : index
    %174 = vector.load %arg2[%c4_196, %c0_197, %c0_198] : memref<7x7x32xf32, #tpu.memory_space<vmem>>, vector<1x1x32xf32>
    %175 = vector.broadcast %174 : vector<1x1x32xf32> to vector<3x3x32xf32>
    %176 = arith.mulf %173, %175 : vector<3x3x32xf32>
    %177 = arith.addf %171, %176 : vector<3x3x32xf32>
    %c0_199 = arith.constant 0 : index
    %c4_200 = arith.constant 4 : index
    %c1_201 = arith.constant 1 : index
    %c0_202 = arith.constant 0 : index
    %178 = vector.load %arg1[%c0_199, %c4_200, %c1_201, %c0_202] : memref<1x9x9x32xf32, #tpu.memory_space<vmem>>, vector<1x3x3x32xf32>
    %179 = vector.shape_cast %178 : vector<1x3x3x32xf32> to vector<3x3x32xf32>
    %c4_203 = arith.constant 4 : index
    %c1_204 = arith.constant 1 : index
    %c0_205 = arith.constant 0 : index
    %180 = vector.load %arg2[%c4_203, %c1_204, %c0_205] : memref<7x7x32xf32, #tpu.memory_space<vmem>>, vector<1x1x32xf32>
    %181 = vector.broadcast %180 : vector<1x1x32xf32> to vector<3x3x32xf32>
    %182 = arith.mulf %179, %181 : vector<3x3x32xf32>
    %183 = arith.addf %177, %182 : vector<3x3x32xf32>
    %c0_206 = arith.constant 0 : index
    %c4_207 = arith.constant 4 : index
    %c2_208 = arith.constant 2 : index
    %c0_209 = arith.constant 0 : index
    %184 = vector.load %arg1[%c0_206, %c4_207, %c2_208, %c0_209] : memref<1x9x9x32xf32, #tpu.memory_space<vmem>>, vector<1x3x3x32xf32>
    %185 = vector.shape_cast %184 : vector<1x3x3x32xf32> to vector<3x3x32xf32>
    %c4_210 = arith.constant 4 : index
    %c2_211 = arith.constant 2 : index
    %c0_212 = arith.constant 0 : index
    %186 = vector.load %arg2[%c4_210, %c2_211, %c0_212] : memref<7x7x32xf32, #tpu.memory_space<vmem>>, vector<1x1x32xf32>
    %187 = vector.broadcast %186 : vector<1x1x32xf32> to vector<3x3x32xf32>
    %188 = arith.mulf %185, %187 : vector<3x3x32xf32>
    %189 = arith.addf %183, %188 : vector<3x3x32xf32>
    %c0_213 = arith.constant 0 : index
    %c4_214 = arith.constant 4 : index
    %c3_215 = arith.constant 3 : index
    %c0_216 = arith.constant 0 : index
    %190 = vector.load %arg1[%c0_213, %c4_214, %c3_215, %c0_216] : memref<1x9x9x32xf32, #tpu.memory_space<vmem>>, vector<1x3x3x32xf32>
    %191 = vector.shape_cast %190 : vector<1x3x3x32xf32> to vector<3x3x32xf32>
    %c4_217 = arith.constant 4 : index
    %c3_218 = arith.constant 3 : index
    %c0_219 = arith.constant 0 : index
    %192 = vector.load %arg2[%c4_217, %c3_218, %c0_219] : memref<7x7x32xf32, #tpu.memory_space<vmem>>, vector<1x1x32xf32>
    %193 = vector.broadcast %192 : vector<1x1x32xf32> to vector<3x3x32xf32>
    %194 = arith.mulf %191, %193 : vector<3x3x32xf32>
    %195 = arith.addf %189, %194 : vector<3x3x32xf32>
    %c0_220 = arith.constant 0 : index
    %c4_221 = arith.constant 4 : index
    %c4_222 = arith.constant 4 : index
    %c0_223 = arith.constant 0 : index
    %196 = vector.load %arg1[%c0_220, %c4_221, %c4_222, %c0_223] : memref<1x9x9x32xf32, #tpu.memory_space<vmem>>, vector<1x3x3x32xf32>
    %197 = vector.shape_cast %196 : vector<1x3x3x32xf32> to vector<3x3x32xf32>
    %c4_224 = arith.constant 4 : index
    %c4_225 = arith.constant 4 : index
    %c0_226 = arith.constant 0 : index
    %198 = vector.load %arg2[%c4_224, %c4_225, %c0_226] : memref<7x7x32xf32, #tpu.memory_space<vmem>>, vector<1x1x32xf32>
    %199 = vector.broadcast %198 : vector<1x1x32xf32> to vector<3x3x32xf32>
    %200 = arith.mulf %197, %199 : vector<3x3x32xf32>
    %201 = arith.addf %195, %200 : vector<3x3x32xf32>
    %c0_227 = arith.constant 0 : index
    %c4_228 = arith.constant 4 : index
    %c5_229 = arith.constant 5 : index
    %c0_230 = arith.constant 0 : index
    %202 = vector.load %arg1[%c0_227, %c4_228, %c5_229, %c0_230] : memref<1x9x9x32xf32, #tpu.memory_space<vmem>>, vector<1x3x3x32xf32>
    %203 = vector.shape_cast %202 : vector<1x3x3x32xf32> to vector<3x3x32xf32>
    %c4_231 = arith.constant 4 : index
    %c5_232 = arith.constant 5 : index
    %c0_233 = arith.constant 0 : index
    %204 = vector.load %arg2[%c4_231, %c5_232, %c0_233] : memref<7x7x32xf32, #tpu.memory_space<vmem>>, vector<1x1x32xf32>
    %205 = vector.broadcast %204 : vector<1x1x32xf32> to vector<3x3x32xf32>
    %206 = arith.mulf %203, %205 : vector<3x3x32xf32>
    %207 = arith.addf %201, %206 : vector<3x3x32xf32>
    %c0_234 = arith.constant 0 : index
    %c4_235 = arith.constant 4 : index
    %c6_236 = arith.constant 6 : index
    %c0_237 = arith.constant 0 : index
    %208 = vector.load %arg1[%c0_234, %c4_235, %c6_236, %c0_237] : memref<1x9x9x32xf32, #tpu.memory_space<vmem>>, vector<1x3x3x32xf32>
    %209 = vector.shape_cast %208 : vector<1x3x3x32xf32> to vector<3x3x32xf32>
    %c4_238 = arith.constant 4 : index
    %c6_239 = arith.constant 6 : index
    %c0_240 = arith.constant 0 : index
    %210 = vector.load %arg2[%c4_238, %c6_239, %c0_240] : memref<7x7x32xf32, #tpu.memory_space<vmem>>, vector<1x1x32xf32>
    %211 = vector.broadcast %210 : vector<1x1x32xf32> to vector<3x3x32xf32>
    %212 = arith.mulf %209, %211 : vector<3x3x32xf32>
    %213 = arith.addf %207, %212 : vector<3x3x32xf32>
    %c0_241 = arith.constant 0 : index
    %c5_242 = arith.constant 5 : index
    %c0_243 = arith.constant 0 : index
    %c0_244 = arith.constant 0 : index
    %214 = vector.load %arg1[%c0_241, %c5_242, %c0_243, %c0_244] : memref<1x9x9x32xf32, #tpu.memory_space<vmem>>, vector<1x3x3x32xf32>
    %215 = vector.shape_cast %214 : vector<1x3x3x32xf32> to vector<3x3x32xf32>
    %c5_245 = arith.constant 5 : index
    %c0_246 = arith.constant 0 : index
    %c0_247 = arith.constant 0 : index
    %216 = vector.load %arg2[%c5_245, %c0_246, %c0_247] : memref<7x7x32xf32, #tpu.memory_space<vmem>>, vector<1x1x32xf32>
    %217 = vector.broadcast %216 : vector<1x1x32xf32> to vector<3x3x32xf32>
    %218 = arith.mulf %215, %217 : vector<3x3x32xf32>
    %219 = arith.addf %213, %218 : vector<3x3x32xf32>
    %c0_248 = arith.constant 0 : index
    %c5_249 = arith.constant 5 : index
    %c1_250 = arith.constant 1 : index
    %c0_251 = arith.constant 0 : index
    %220 = vector.load %arg1[%c0_248, %c5_249, %c1_250, %c0_251] : memref<1x9x9x32xf32, #tpu.memory_space<vmem>>, vector<1x3x3x32xf32>
    %221 = vector.shape_cast %220 : vector<1x3x3x32xf32> to vector<3x3x32xf32>
    %c5_252 = arith.constant 5 : index
    %c1_253 = arith.constant 1 : index
    %c0_254 = arith.constant 0 : index
    %222 = vector.load %arg2[%c5_252, %c1_253, %c0_254] : memref<7x7x32xf32, #tpu.memory_space<vmem>>, vector<1x1x32xf32>
    %223 = vector.broadcast %222 : vector<1x1x32xf32> to vector<3x3x32xf32>
    %224 = arith.mulf %221, %223 : vector<3x3x32xf32>
    %225 = arith.addf %219, %224 : vector<3x3x32xf32>
    %c0_255 = arith.constant 0 : index
    %c5_256 = arith.constant 5 : index
    %c2_257 = arith.constant 2 : index
    %c0_258 = arith.constant 0 : index
    %226 = vector.load %arg1[%c0_255, %c5_256, %c2_257, %c0_258] : memref<1x9x9x32xf32, #tpu.memory_space<vmem>>, vector<1x3x3x32xf32>
    %227 = vector.shape_cast %226 : vector<1x3x3x32xf32> to vector<3x3x32xf32>
    %c5_259 = arith.constant 5 : index
    %c2_260 = arith.constant 2 : index
    %c0_261 = arith.constant 0 : index
    %228 = vector.load %arg2[%c5_259, %c2_260, %c0_261] : memref<7x7x32xf32, #tpu.memory_space<vmem>>, vector<1x1x32xf32>
    %229 = vector.broadcast %228 : vector<1x1x32xf32> to vector<3x3x32xf32>
    %230 = arith.mulf %227, %229 : vector<3x3x32xf32>
    %231 = arith.addf %225, %230 : vector<3x3x32xf32>
    %c0_262 = arith.constant 0 : index
    %c5_263 = arith.constant 5 : index
    %c3_264 = arith.constant 3 : index
    %c0_265 = arith.constant 0 : index
    %232 = vector.load %arg1[%c0_262, %c5_263, %c3_264, %c0_265] : memref<1x9x9x32xf32, #tpu.memory_space<vmem>>, vector<1x3x3x32xf32>
    %233 = vector.shape_cast %232 : vector<1x3x3x32xf32> to vector<3x3x32xf32>
    %c5_266 = arith.constant 5 : index
    %c3_267 = arith.constant 3 : index
    %c0_268 = arith.constant 0 : index
    %234 = vector.load %arg2[%c5_266, %c3_267, %c0_268] : memref<7x7x32xf32, #tpu.memory_space<vmem>>, vector<1x1x32xf32>
    %235 = vector.broadcast %234 : vector<1x1x32xf32> to vector<3x3x32xf32>
    %236 = arith.mulf %233, %235 : vector<3x3x32xf32>
    %237 = arith.addf %231, %236 : vector<3x3x32xf32>
    %c0_269 = arith.constant 0 : index
    %c5_270 = arith.constant 5 : index
    %c4_271 = arith.constant 4 : index
    %c0_272 = arith.constant 0 : index
    %238 = vector.load %arg1[%c0_269, %c5_270, %c4_271, %c0_272] : memref<1x9x9x32xf32, #tpu.memory_space<vmem>>, vector<1x3x3x32xf32>
    %239 = vector.shape_cast %238 : vector<1x3x3x32xf32> to vector<3x3x32xf32>
    %c5_273 = arith.constant 5 : index
    %c4_274 = arith.constant 4 : index
    %c0_275 = arith.constant 0 : index
    %240 = vector.load %arg2[%c5_273, %c4_274, %c0_275] : memref<7x7x32xf32, #tpu.memory_space<vmem>>, vector<1x1x32xf32>
    %241 = vector.broadcast %240 : vector<1x1x32xf32> to vector<3x3x32xf32>
    %242 = arith.mulf %239, %241 : vector<3x3x32xf32>
    %243 = arith.addf %237, %242 : vector<3x3x32xf32>
    %c0_276 = arith.constant 0 : index
    %c5_277 = arith.constant 5 : index
    %c5_278 = arith.constant 5 : index
    %c0_279 = arith.constant 0 : index
    %244 = vector.load %arg1[%c0_276, %c5_277, %c5_278, %c0_279] : memref<1x9x9x32xf32, #tpu.memory_space<vmem>>, vector<1x3x3x32xf32>
    %245 = vector.shape_cast %244 : vector<1x3x3x32xf32> to vector<3x3x32xf32>
    %c5_280 = arith.constant 5 : index
    %c5_281 = arith.constant 5 : index
    %c0_282 = arith.constant 0 : index
    %246 = vector.load %arg2[%c5_280, %c5_281, %c0_282] : memref<7x7x32xf32, #tpu.memory_space<vmem>>, vector<1x1x32xf32>
    %247 = vector.broadcast %246 : vector<1x1x32xf32> to vector<3x3x32xf32>
    %248 = arith.mulf %245, %247 : vector<3x3x32xf32>
    %249 = arith.addf %243, %248 : vector<3x3x32xf32>
    %c0_283 = arith.constant 0 : index
    %c5_284 = arith.constant 5 : index
    %c6_285 = arith.constant 6 : index
    %c0_286 = arith.constant 0 : index
    %250 = vector.load %arg1[%c0_283, %c5_284, %c6_285, %c0_286] : memref<1x9x9x32xf32, #tpu.memory_space<vmem>>, vector<1x3x3x32xf32>
    %251 = vector.shape_cast %250 : vector<1x3x3x32xf32> to vector<3x3x32xf32>
    %c5_287 = arith.constant 5 : index
    %c6_288 = arith.constant 6 : index
    %c0_289 = arith.constant 0 : index
    %252 = vector.load %arg2[%c5_287, %c6_288, %c0_289] : memref<7x7x32xf32, #tpu.memory_space<vmem>>, vector<1x1x32xf32>
    %253 = vector.broadcast %252 : vector<1x1x32xf32> to vector<3x3x32xf32>
    %254 = arith.mulf %251, %253 : vector<3x3x32xf32>
    %255 = arith.addf %249, %254 : vector<3x3x32xf32>
    %c0_290 = arith.constant 0 : index
    %c6_291 = arith.constant 6 : index
    %c0_292 = arith.constant 0 : index
    %c0_293 = arith.constant 0 : index
    %256 = vector.load %arg1[%c0_290, %c6_291, %c0_292, %c0_293] : memref<1x9x9x32xf32, #tpu.memory_space<vmem>>, vector<1x3x3x32xf32>
    %257 = vector.shape_cast %256 : vector<1x3x3x32xf32> to vector<3x3x32xf32>
    %c6_294 = arith.constant 6 : index
    %c0_295 = arith.constant 0 : index
    %c0_296 = arith.constant 0 : index
    %258 = vector.load %arg2[%c6_294, %c0_295, %c0_296] : memref<7x7x32xf32, #tpu.memory_space<vmem>>, vector<1x1x32xf32>
    %259 = vector.broadcast %258 : vector<1x1x32xf32> to vector<3x3x32xf32>
    %260 = arith.mulf %257, %259 : vector<3x3x32xf32>
    %261 = arith.addf %255, %260 : vector<3x3x32xf32>
    %c0_297 = arith.constant 0 : index
    %c6_298 = arith.constant 6 : index
    %c1_299 = arith.constant 1 : index
    %c0_300 = arith.constant 0 : index
    %262 = vector.load %arg1[%c0_297, %c6_298, %c1_299, %c0_300] : memref<1x9x9x32xf32, #tpu.memory_space<vmem>>, vector<1x3x3x32xf32>
    %263 = vector.shape_cast %262 : vector<1x3x3x32xf32> to vector<3x3x32xf32>
    %c6_301 = arith.constant 6 : index
    %c1_302 = arith.constant 1 : index
    %c0_303 = arith.constant 0 : index
    %264 = vector.load %arg2[%c6_301, %c1_302, %c0_303] : memref<7x7x32xf32, #tpu.memory_space<vmem>>, vector<1x1x32xf32>
    %265 = vector.broadcast %264 : vector<1x1x32xf32> to vector<3x3x32xf32>
    %266 = arith.mulf %263, %265 : vector<3x3x32xf32>
    %267 = arith.addf %261, %266 : vector<3x3x32xf32>
    %c0_304 = arith.constant 0 : index
    %c6_305 = arith.constant 6 : index
    %c2_306 = arith.constant 2 : index
    %c0_307 = arith.constant 0 : index
    %268 = vector.load %arg1[%c0_304, %c6_305, %c2_306, %c0_307] : memref<1x9x9x32xf32, #tpu.memory_space<vmem>>, vector<1x3x3x32xf32>
    %269 = vector.shape_cast %268 : vector<1x3x3x32xf32> to vector<3x3x32xf32>
    %c6_308 = arith.constant 6 : index
    %c2_309 = arith.constant 2 : index
    %c0_310 = arith.constant 0 : index
    %270 = vector.load %arg2[%c6_308, %c2_309, %c0_310] : memref<7x7x32xf32, #tpu.memory_space<vmem>>, vector<1x1x32xf32>
    %271 = vector.broadcast %270 : vector<1x1x32xf32> to vector<3x3x32xf32>
    %272 = arith.mulf %269, %271 : vector<3x3x32xf32>
    %273 = arith.addf %267, %272 : vector<3x3x32xf32>
    %c0_311 = arith.constant 0 : index
    %c6_312 = arith.constant 6 : index
    %c3_313 = arith.constant 3 : index
    %c0_314 = arith.constant 0 : index
    %274 = vector.load %arg1[%c0_311, %c6_312, %c3_313, %c0_314] : memref<1x9x9x32xf32, #tpu.memory_space<vmem>>, vector<1x3x3x32xf32>
    %275 = vector.shape_cast %274 : vector<1x3x3x32xf32> to vector<3x3x32xf32>
    %c6_315 = arith.constant 6 : index
    %c3_316 = arith.constant 3 : index
    %c0_317 = arith.constant 0 : index
    %276 = vector.load %arg2[%c6_315, %c3_316, %c0_317] : memref<7x7x32xf32, #tpu.memory_space<vmem>>, vector<1x1x32xf32>
    %277 = vector.broadcast %276 : vector<1x1x32xf32> to vector<3x3x32xf32>
    %278 = arith.mulf %275, %277 : vector<3x3x32xf32>
    %279 = arith.addf %273, %278 : vector<3x3x32xf32>
    %c0_318 = arith.constant 0 : index
    %c6_319 = arith.constant 6 : index
    %c4_320 = arith.constant 4 : index
    %c0_321 = arith.constant 0 : index
    %280 = vector.load %arg1[%c0_318, %c6_319, %c4_320, %c0_321] : memref<1x9x9x32xf32, #tpu.memory_space<vmem>>, vector<1x3x3x32xf32>
    %281 = vector.shape_cast %280 : vector<1x3x3x32xf32> to vector<3x3x32xf32>
    %c6_322 = arith.constant 6 : index
    %c4_323 = arith.constant 4 : index
    %c0_324 = arith.constant 0 : index
    %282 = vector.load %arg2[%c6_322, %c4_323, %c0_324] : memref<7x7x32xf32, #tpu.memory_space<vmem>>, vector<1x1x32xf32>
    %283 = vector.broadcast %282 : vector<1x1x32xf32> to vector<3x3x32xf32>
    %284 = arith.mulf %281, %283 : vector<3x3x32xf32>
    %285 = arith.addf %279, %284 : vector<3x3x32xf32>
    %c0_325 = arith.constant 0 : index
    %c6_326 = arith.constant 6 : index
    %c5_327 = arith.constant 5 : index
    %c0_328 = arith.constant 0 : index
    %286 = vector.load %arg1[%c0_325, %c6_326, %c5_327, %c0_328] : memref<1x9x9x32xf32, #tpu.memory_space<vmem>>, vector<1x3x3x32xf32>
    %287 = vector.shape_cast %286 : vector<1x3x3x32xf32> to vector<3x3x32xf32>
    %c6_329 = arith.constant 6 : index
    %c5_330 = arith.constant 5 : index
    %c0_331 = arith.constant 0 : index
    %288 = vector.load %arg2[%c6_329, %c5_330, %c0_331] : memref<7x7x32xf32, #tpu.memory_space<vmem>>, vector<1x1x32xf32>
    %289 = vector.broadcast %288 : vector<1x1x32xf32> to vector<3x3x32xf32>
    %290 = arith.mulf %287, %289 : vector<3x3x32xf32>
    %291 = arith.addf %285, %290 : vector<3x3x32xf32>
    %c0_332 = arith.constant 0 : index
    %c6_333 = arith.constant 6 : index
    %c6_334 = arith.constant 6 : index
    %c0_335 = arith.constant 0 : index
    %292 = vector.load %arg1[%c0_332, %c6_333, %c6_334, %c0_335] : memref<1x9x9x32xf32, #tpu.memory_space<vmem>>, vector<1x3x3x32xf32>
    %293 = vector.shape_cast %292 : vector<1x3x3x32xf32> to vector<3x3x32xf32>
    %c6_336 = arith.constant 6 : index
    %c6_337 = arith.constant 6 : index
    %c0_338 = arith.constant 0 : index
    %294 = vector.load %arg2[%c6_336, %c6_337, %c0_338] : memref<7x7x32xf32, #tpu.memory_space<vmem>>, vector<1x1x32xf32>
    %295 = vector.broadcast %294 : vector<1x1x32xf32> to vector<3x3x32xf32>
    %296 = arith.mulf %293, %295 : vector<3x3x32xf32>
    %297 = arith.addf %291, %296 : vector<3x3x32xf32>
    %c0_339 = arith.constant 0 : index
    %c0_340 = arith.constant 0 : index
    %c0_341 = arith.constant 0 : index
    %c0_342 = arith.constant 0 : index
    %298 = vector.load %arg4[%c0_339, %c0_340, %c0_341, %c0_342] : memref<1x3x3x32xf32, #tpu.memory_space<vmem>>, vector<1x3x3x32xf32>
    %299 = vector.shape_cast %298 : vector<1x3x3x32xf32> to vector<3x3x32xf32>
    %300 = vector.shape_cast %297 : vector<3x3x32xf32> to vector<1x3x3x32xf32>
    tpu.vector_store %arg4[%c0_339, %c0_340, %c0_341, %c0_342], %300 {strides = array<i32>} : memref<1x3x3x32xf32, #tpu.memory_space<vmem>>, vector<1x3x3x32xf32>,
    return
  }
  func.func @transform_0(%arg0: i32) -> (i32, i32, i32, i32) {
    %c0_i32 = arith.constant 0 : i32
    %c0_i32_0 = arith.constant 0 : i32
    %c0_i32_1 = arith.constant 0 : i32
    %c0_i32_2 = arith.constant 0 : i32
    return %arg0, %c0_i32, %c0_i32_0, %c0_i32_1 : i32, i32, i32, i32
  }
  func.func @transform_1(%arg0: i32) -> (i32, i32, i32) {
    %c0_i32 = arith.constant 0 : i32
    %c0_i32_0 = arith.constant 0 : i32
    %c0_i32_1 = arith.constant 0 : i32
    %c0_i32_2 = arith.constant 0 : i32
    return %c0_i32, %c0_i32_0, %c0_i32_1 : i32, i32, i32
  }
  func.func @transform_2(%arg0: i32) -> (i32, i32, i32) {
    %c0_i32 = arith.constant 0 : i32
    %c0_i32_0 = arith.constant 0 : i32
    %c0_i32_1 = arith.constant 0 : i32
    %c0_i32_2 = arith.constant 0 : i32
    return %c0_i32, %c0_i32_0, %c0_i32_1 : i32, i32, i32
  }
  func.func @transform_3(%arg0: i32) -> (i32, i32, i32, i32) {
    %c0_i32 = arith.constant 0 : i32
    %c0_i32_0 = arith.constant 0 : i32
    %c0_i32_1 = arith.constant 0 : i32
    %c0_i32_2 = arith.constant 0 : i32
    return %arg0, %c0_i32, %c0_i32_0, %c0_i32_1 : i32, i32, i32, i32
  }
}

module attributes {stable_mosaic.version = 11 : i64} {
  func.func @_layernorm_kernel(%arg0: memref<2x32xf32, #tpu.memory_space<vmem>>, %arg1: memref<1x32xf32, #tpu.memory_space<vmem>>, %arg2: memref<1x32xf32, #tpu.memory_space<vmem>>, %arg3: memref<2x32xf32, #tpu.memory_space<vmem>>) attributes {dimension_semantics = [], scalar_prefetch = 0 : i64, scratch_operands = 0 : i64, tpu.core_type = #tpu.core_type<tc>} {
    %c0 = arith.constant 0 : index
    %c0_0 = arith.constant 0 : index
    %0 = vector.load %arg0[%c0, %c0_0] : memref<2x32xf32, #tpu.memory_space<vmem>>, vector<2x32xf32>
    %cst = arith.constant dense<0.000000e+00> : vector<2xf32>
    %1 = vector.multi_reduction <add>, %0, %cst [1] : vector<2x32xf32> to vector<2xf32>
    %2 = vector.shape_cast %1 : vector<2xf32> to vector<2x1xf32>
    %cst_1 = arith.constant 3.200000e+01 : f32
    %3 = vector.broadcast %cst_1 : f32 to vector<2x1xf32>
    %4 = arith.divf %2, %3 : vector<2x1xf32>
    %5 = vector.broadcast %4 : vector<2x1xf32> to vector<2x32xf32>
    %6 = arith.subf %0, %5 : vector<2x32xf32>
    %7 = arith.mulf %6, %6 : vector<2x32xf32>
    %cst_2 = arith.constant dense<0.000000e+00> : vector<2xf32>
    %8 = vector.multi_reduction <add>, %7, %cst_2 [1] : vector<2x32xf32> to vector<2xf32>
    %9 = vector.shape_cast %8 : vector<2xf32> to vector<2x1xf32>
    %cst_3 = arith.constant 3.200000e+01 : f32
    %10 = vector.broadcast %cst_3 : f32 to vector<2x1xf32>
    %11 = arith.divf %9, %10 : vector<2x1xf32>
    %cst_4 = arith.constant 9.99999974E-6 : f32
    %12 = vector.broadcast %cst_4 : f32 to vector<2x1xf32>
    %13 = arith.addf %11, %12 : vector<2x1xf32>
    %14 = math.rsqrt %13 : vector<2x1xf32>
    %15 = vector.broadcast %14 : vector<2x1xf32> to vector<2x32xf32>
    %16 = arith.mulf %6, %15 : vector<2x32xf32>
    %c0_5 = arith.constant 0 : index
    %c0_6 = arith.constant 0 : index
    %17 = vector.load %arg1[%c0_5, %c0_6] : memref<1x32xf32, #tpu.memory_space<vmem>>, vector<1x32xf32>
    %18 = vector.broadcast %17 : vector<1x32xf32> to vector<2x32xf32>
    %19 = arith.mulf %16, %18 : vector<2x32xf32>
    %c0_7 = arith.constant 0 : index
    %c0_8 = arith.constant 0 : index
    %20 = vector.load %arg2[%c0_7, %c0_8] : memref<1x32xf32, #tpu.memory_space<vmem>>, vector<1x32xf32>
    %21 = vector.broadcast %20 : vector<1x32xf32> to vector<2x32xf32>
    %22 = arith.addf %19, %21 : vector<2x32xf32>
    %c0_9 = arith.constant 0 : index
    %c0_10 = arith.constant 0 : index
    %23 = vector.load %arg3[%c0_9, %c0_10] : memref<2x32xf32, #tpu.memory_space<vmem>>, vector<2x32xf32>
    tpu.vector_store %arg3[%c0_9, %c0_10], %22 {strides = array<i32>} : memref<2x32xf32, #tpu.memory_space<vmem>>, vector<2x32xf32>,
    return
  }
}

</mosaic_0001>

<bundles_post_ra>
// kernel: _lambda_.9
= control target key start
LH: loop header
LB: loop body
LE: loop exit
PB: predicated region body
PF: predicated region fallthrough
CT: control target
= control target key end

     0   :  { %v127_v0 = vmov 0.0   ;;  %vm128_vm0 = vmmov 0   ;;  %vm49_vm1 = vcmask 392192   ;;  %vm96_vm2 = vcmask 261120   ;;  %s173_s1 = inlined_call_operand.vmem [shape: bf16[48,32], index: 1, kind: input, shape index: {}]   ;;  %s174_s0 = inlined_call_operand.vmem [shape: f32[16,48], index: 0, kind: input, shape index: {}]   ;;  %s175_s2 = inlined_call_operand.vmem [shape: f32[1,32], index: 2, kind: input, shape index: {}]   ;;  %s176_s3 = inlined_call_operand.vmem [shape: f32[16,32], index: 3, kind: output, shape index: {}]  }
   0x1   :  { %112 = vmatprep.subr.bf16.mxu0 %v127_v0  ;;  %v124_v1 = vld [vmem:[%s173_s1] sm:$0xff]   ;;  %118 = vmatprep.mubr.msk.bf16.mxu0 %vm128_vm0, %v127_v0  ;;  %v125_v2 = vld [vmem:[%s173_s1 + $0x8] sm:$0xff]   ;;  %v126_v3 = vld [vmem:[%s173_s1 + $0x10] sm:$0xff]  }
   0x2   :  { %113 = vmatpush3.bf16.msra.mxu0 %v124_v1  ;;  %v15_v4 = vld [vmem:[%s174_s0] sm:$0xff]  ;;  %v16_v5 = vld [vmem:[%s174_s0 + $0x8] sm:$0xff] }
   0x3   :  { %114 = vmatprep.subr.bf16.mxu0 %v127_v0  ;;  %v17_v6 = vpack.c.bf16 %v16_v5, %v15_v4  ;;  %v103_v7 = vld [vmem:[%s175_s2] ss:$0 sm:$0xff] }
   0x6   :  { %115 = vmatpush3.bf16.msra.mxu0 %v125_v2 }
   0x7   :  { %116 = vmatprep.subr.bf16.mxu0 %v127_v0 }
   0xa   :  { %117 = vmatpush3.bf16.msra.mxu0 %v126_v3 }
   0xd   :  { %119 = vmatmul.mubr.msk.bf16.vlgmr.msra.gmra.mrb[0].mxu0 %vm49_vm1, %v17_v6 }
  0xe0   :  { %v87_v8 = vpop.f32.mrb[0].mxu0 }
  0xe1   :  { %v88_v9 = vadd.f32 %v103_v7, %v87_v8  ;;  %v120_v10 = vpop.f32.mrb[1].mxu0 }
  0xe2   :  { %v90_v11 = vpop.f32.mrb[2].mxu0 }
  0xe3   :  { %v94_v12 = vmax.f32 %v88_v9, 0.0  ;;  %v91_v13 = vadd.f32 %v103_v7, %v90_v11  ;;  %v121_v14 = vpop.f32.mrb[3].mxu0 }
  0xe5   :  { %97 = vst.msk [vmem:[%s176_s3] sm:$0xff] %vm96_vm2, %v94_v12  ;;  %v95_v15 = vmax.f32 %v91_v13, 0.0 }
  0xe7   :  { %98 = vst.msk [vmem:[%s176_s3 + $0x8] sm:$0xff] %vm96_vm2, %v95_v15 }

// kernel: _lambda_.10
= control target key start
LH: loop header
LB: loop body
LE: loop exit
PB: predicated region body
PF: predicated region fallthrough
CT: control target
= control target key end

     0   :  { %vm21_vm0 = vcmask 261120   ;;  %vm167_vm1 = vcmask 781312   ;;  %s270_s0 = inlined_call_operand.vmem [shape: f32[24,32], index: 0, kind: input, shape index: {}]   ;;  %s271_s3 = inlined_call_operand.vmem [shape: bf16[32,96], index: 3, kind: input, shape index: {}]   ;;  %s272_s1 = inlined_call_operand.vmem [shape: f32[1,32], index: 1, kind: input, shape index: {}]   ;;  %s273_s2 = inlined_call_operand.vmem [shape: f32[1,32], index: 2, kind: input, shape index: {}]   ;;  %s274_s4 = inlined_call_operand.vmem [shape: bf16[24,96], index: 4, kind: output, shape index: {}]  }
   0x1   :  { %v18_v0 = vld [vmem:[%s270_s0] sm:$0xff]  ;;  %v20_v1 = vld [vmem:[%s270_s0 + $0x10] sm:$0xff]  ;;  %v19_v2 = vld [vmem:[%s270_s0 + $0x8] sm:$0xff] }
   0x2   :  { %v22_v3 = vsel %vm21_vm0, %v18_v0, 0.0  ;;  %v28_v4 = vsel %vm21_vm0, %v20_v1, 0.0  ;;  %v25_v5 = vsel %vm21_vm0, %v19_v2, 0.0  ;;  %v199_v21 = vld [vmem:[%s271_s3] sm:$0xff]   ;;  %v200_v22 = vld [vmem:[%s271_s3 + $0x8] sm:$0xff]  }
   0x3   :  { %23 = vadd.xlane.f32.xlu0 %v22_v3  ;;  %29 = vadd.xlane.f32.xlu1 %v28_v4  ;;  %v175_v34 = vld [vmem:[%s272_s1] ss:$0 sm:$0xff] }
   0x4   :  { %191 = vmatprep.subr.bf16.mxu0 %v199_v21  ;;  %v176_v40 = vld [vmem:[%s273_s2] ss:$0 sm:$0xff] }
   0x5   :  { %192 = vmatpush3.bf16.msra.mxu0 %v199_v21 }
   0x6   :  { %193 = vmatprep.subr.bf16.mxu0 %v200_v22 }
   0x7   :  { %26 = vadd.xlane.f32.xlu0 %v25_v5 }
   0x9   :  { %194 = vmatpush3.bf16.msra.mxu0 %v200_v22 }
  0x90   :  { %v24_v6 = vpop.xlane.xlu0 %23  ;;  %v30_v7 = vpop.xlane.xlu1 %29 }
  0x91   :  { %v32_v8 = vmul.f32 0.03125, %v24_v6  ;;  %v34_v9 = vmul.f32 0.03125, %v30_v7 }
  0x93   :  { %v35_v10 = vsub.f32 %v18_v0, %v32_v8  ;;  %v37_v11 = vsub.f32 %v20_v1, %v34_v9 }
  0x94   :  { %v27_v12 = vpop.xlane.xlu0 %26 }
  0x95   :  { %v33_v13 = vmul.f32 0.03125, %v27_v12  ;;  %v38_v14 = vmul.f32 %v35_v10, %v35_v10  ;;  %v40_v15 = vmul.f32 %v37_v11, %v37_v11 }
  0x97   :  { %v36_v16 = vsub.f32 %v19_v2, %v33_v13  ;;  %v41_v17 = vsel %vm21_vm0, %v38_v14, 0.0  ;;  %v47_v18 = vsel %vm21_vm0, %v40_v15, 0.0 }
  0x98   :  { %42 = vadd.xlane.f32.xlu1 %v41_v17 }
  0x99   :  { %v39_v19 = vmul.f32 %v36_v16, %v36_v16 }
  0x9b   :  { %v44_v20 = vsel %vm21_vm0, %v39_v19, 0.0 }
  0x9c   :  { %48 = vadd.xlane.f32.xlu1 %v47_v18  ;;  %45 = vadd.xlane.f32.xlu0 %v44_v20 }
 0x125   :  { %v43_v23 = vpop.xlane.xlu1 %42 }
 0x126   :  { %v50_v24 = vmul.f32 0.03125, %v43_v23 }
 0x128   :  { %v53_v25 = vadd.f32 1e-05, %v50_v24 }
 0x129   :  { %v49_v26 = vpop.xlane.xlu1 %48  ;;  %v46_v27 = vpop.xlane.xlu0 %45 }
 0x12a   :  { %201 = vrsqrt.f32 %v53_v25  ;;  %v52_v28 = vmul.f32 0.03125, %v49_v26  ;;  %v51_v29 = vmul.f32 0.03125, %v46_v27 }
 0x12c   :  { %v55_v30 = vadd.f32 1e-05, %v52_v28  ;;  %v54_v31 = vadd.f32 1e-05, %v51_v29 }
 0x12e   :  { %203 = vrsqrt.f32 %v55_v30 }
 0x12f   :  { %205 = vrsqrt.f32 %v54_v31 }
 0x134   :  { %v202_v32 = vpop.eup %201 }
 0x135   :  { %v59_v33 = vmul.f32 %v202_v32, %v35_v10 }
 0x137   :  { %v69_v39 = vmul.f32 %v175_v34, %v59_v33 }
 0x138   :  { %v204_v35 = vpop.eup %203 }
 0x139   :  { %v206_v36 = vpop.eup %205  ;;  %v61_v37 = vmul.f32 %v204_v35, %v37_v11  ;;  %v79_v44 = vadd.f32 %v176_v40, %v69_v39 }
 0x13a   :  { %v60_v38 = vmul.f32 %v206_v36, %v36_v16 }
 0x13b   :  { %v71_v41 = vmul.f32 %v175_v34, %v61_v37 }
 0x13c   :  { %v70_v42 = vmul.f32 %v175_v34, %v60_v38 }
 0x13d   :  { %v81_v43 = vadd.f32 %v176_v40, %v71_v41 }
 0x13e   :  { %v80_v45 = vadd.f32 %v176_v40, %v70_v42 }
 0x13f   :  { %v83_v46 = vpack.c.bf16 %v81_v43, %v81_v43 }
 0x140   :  { %v82_v47 = vpack.c.bf16 %v80_v45, %v79_v44 }
 0x142   :  { %195 = vmatprep.mubr.msk.bf16.mxu0 %vm21_vm0, %v82_v47 }
 0x143   :  { %196 = vmatmul.mubr.msk.bf16.vlgmr.msra.gmra.mrb[0].mxu0 %vm21_vm0, %v83_v46 }
 0x216   :  { %v197_v48 = vpop.f32.mrb[0].mxu0 }
 0x217   :  { %v186_v49 = vpack.c.bf16 %v197_v48, %v197_v48  ;;  %v140_v50 = vpop.f32.mrb[1].mxu0 }
 0x218   :  { %v184_v51 = vpack.c.bf16 %v140_v50, %v140_v50  ;;  %v198_v52 = vpop.f32.mrb[2].mxu0 }
 0x219   :  { %170 = vst.msk [vmem:[%s274_s4 + $0x8] sm:$0xf] %vm167_vm1, %v186_v49  ;;  %v143_v53 = vpop.f32.mrb[3].mxu0 }
 0x21a   :  { %168 = vst.msk [vmem:[%s274_s4] sm:$0xf] %vm167_vm1, %v184_v51  ;;  %v185_v54 = vpack.c.bf16 %v143_v53, %v143_v53 }
 0x21c   :  { %169 = vst.msk [vmem:[%s274_s4 + $0x4] sm:$0xf] %vm167_vm1, %v185_v54 }

// kernel: _lambda_.12
= control target key start
LH: loop header
LB: loop body
LE: loop exit
PB: predicated region body
PF: predicated region fallthrough
CT: control target
= control target key end

     0   :  { %vm52_vm0 = vcmask 261120   ;;  %s206_s1 = inlined_call_operand.vmem [shape: bf16[32,32], index: 1, kind: input, shape index: {}]   ;;  %s207_s0 = inlined_call_operand.vmem [shape: bf16[24,32], index: 0, kind: input, shape index: {}]   ;;  %s208_s2 = inlined_call_operand.vmem [shape: f32[1,32], index: 2, kind: input, shape index: {}]   ;;  %s209_s3 = inlined_call_operand.vmem [shape: f32[24,32], index: 3, kind: input, shape index: {}]   ;;  %s210_s4 = inlined_call_operand.vmem [shape: f32[24,32], index: 4, kind: output, shape index: {}]  }
   0x1   :  { %v139_v0 = vld [vmem:[%s206_s1] sm:$0xff]   ;;  %v140_v1 = vld [vmem:[%s206_s1 + $0x8] sm:$0xff]   ;;  %v109_v6 = vld [vmem:[%s209_s3 + $0x10] sm:$0xff] }
   0x2   :  { %131 = vmatprep.subr.bf16.mxu0 %v139_v0  ;;  %v141_v2 = vld [vmem:[%s207_s0] sm:$0xff]   ;;  %v142_v3 = vld [vmem:[%s207_s0 + $0x8] ss:$0 sps:$4 sm:$0xff]  }
   0x3   :  { %132 = vmatpush3.bf16.msra.mxu0 %v139_v0  ;;  %135 = vmatprep.mubr.msk.bf16.mxu0 %vm52_vm0, %v141_v2  ;;  %v120_v4 = vld [vmem:[%s208_s2] ss:$0 sm:$0xff]  ;;  %v108_v14 = vld [vmem:[%s209_s3 + $0x8] sm:$0xff] }
   0x4   :  { %133 = vmatprep.subr.bf16.mxu0 %v140_v1  ;;  %v107_v9 = vld [vmem:[%s209_s3] sm:$0xff] }
   0x7   :  { %134 = vmatpush3.bf16.msra.mxu0 %v140_v1 }
   0xa   :  { %136 = vmatmul.mubr.msk.bf16.vlgmr.msra.gmra.mrb[0].mxu0 %vm52_vm0, %v142_v3 }
  0xdd   :  { %v137_v5 = vpop.f32.mrb[0].mxu0 }
  0xde   :  { %v102_v7 = vadd.f32 %v137_v5, %v120_v4  ;;  %v93_v8 = vpop.f32.mrb[1].mxu0 }
  0xdf   :  { %v94_v10 = vadd.f32 %v120_v4, %v93_v8  ;;  %v138_v11 = vpop.f32.mrb[2].mxu0 }
  0xe0   :  { %v112_v12 = vadd.f32 %v109_v6, %v102_v7  ;;  %v96_v13 = vpop.f32.mrb[3].mxu0 }
  0xe1   :  { %v110_v15 = vadd.f32 %v107_v9, %v94_v10  ;;  %v97_v16 = vadd.f32 %v120_v4, %v96_v13 }
  0xe2   :  { %115 = vst.msk [vmem:[%s210_s4 + $0x10] sm:$0xff] %vm52_vm0, %v112_v12 }
  0xe3   :  { %113 = vst.msk [vmem:[%s210_s4] sm:$0xff] %vm52_vm0, %v110_v15  ;;  %v111_v17 = vadd.f32 %v108_v14, %v97_v16 }
  0xe5   :  { %114 = vst.msk [vmem:[%s210_s4 + $0x8] sm:$0xff] %vm52_vm0, %v111_v17 }

// kernel: _lambda_.17
= control target key start
LH: loop header
LB: loop body
LE: loop exit
PB: predicated region body
PF: predicated region fallthrough
CT: control target
= control target key end

     0   :  { %vm16_vm0 = vcmask 254976   ;;  %s136_s0 = inlined_call_operand.vmem [shape: f32[2,32], index: 0, kind: input, shape index: {}]   ;;  %s137_s1 = inlined_call_operand.vmem [shape: f32[1,32], index: 1, kind: input, shape index: {}]   ;;  %s138_s2 = inlined_call_operand.vmem [shape: f32[1,32], index: 2, kind: input, shape index: {}]   ;;  %s139_s3 = inlined_call_operand.hbm [shape: f32[2,32], index: 3, kind: output, shape index: {}]  }
   0x1   :  { %v15_v0 = vld [vmem:[%s136_s0] sm:$0x3] }
   0x2   :  { %8 = vsyncpa [#allocation3], 0  ;;  %v17_v1 = vsel %vm16_vm0, %v15_v0, 0.0  ;;  %v62_v11 = vld [vmem:[%s137_s1] ss:$0 sm:$0xff]  ;;  %s91_s17 = smov [#allocation2]  }
   0x3   :  { %18 = vadd.xlane.f32.xlu0 %v17_v1  ;;  %v63_v13 = vld [vmem:[%s138_s2] ss:$0 sm:$0xff]  ;;  %s54_s18 = sshll.u32 %s91_s17, 4  ;;  %s55_s18 = int_to_ptr.vmem [resolvable:$true] %s54_s18 }
   0x4   :  { %s67_s19 = scalar_lea.vmem %s55_s18, 32  ;;  %p72_p1 = scmp.lt.s32.totalorder %s55_s18, %s55_s18 }
   0x5   :  { %p68_p0 = scmp.ne.s32.totalorder %s55_s18, %s67_s19  ;;  %p73_p2 = scmp.lt.s32.totalorder %s67_s19, %s67_s19 }
   0x7   :  { %p74_p3 = por %p73_p2, %p72_p1 }
   0x9   :  { %p75_p4 = pnand %p74_p3, %p68_p0 }
  0x90   :  { %v19_v2 = vpop.xlane.xlu0 %18 }
  0x91   :  { %v21_v3 = vmul.f32 0.03125, %v19_v2 }
  0x93   :  { %v22_v4 = vsub.f32 %v15_v0, %v21_v3 }
  0x95   :  { %v23_v5 = vmul.f32 %v22_v4, %v22_v4 }
  0x97   :  { %v24_v6 = vsel %vm16_vm0, %v23_v5, 0.0 }
  0x98   :  { %25 = vadd.xlane.f32.xlu0 %v24_v6 }
 0x125   :  { %v26_v7 = vpop.xlane.xlu0 %25 }
 0x126   :  { %v27_v8 = vmul.f32 0.03125, %v26_v7 }
 0x128   :  { %v28_v9 = vadd.f32 1e-05, %v27_v8 }
 0x12a   :  { %65 = vrsqrt.f32 %v28_v9 }
 0x134   :  { %v66_v10 = vpop.eup %65 }
 0x135   :  { %v30_v12 = vmul.f32 %v66_v10, %v22_v4 }
 0x137   :  { %v38_v14 = vmul.f32 %v62_v11, %v30_v12 }
 0x139   :  { %v46_v15 = vadd.f32 %v63_v13, %v38_v14 }
 0x13b   :  { %47 = vst.msk [vmem:[#allocation2] sm:$0x3] %vm16_vm0, %v46_v15 }
 0x13c   :  { %78 = shalt.err (!%p75_p4)
}
 0x13d   :  { %s79_s21 = scalar_lea.hbm %s139_s3, 32 }
 0x13e   :  { %p80_p5 = scmp.ne.s32.totalorder %s139_s3, %s79_s21  ;;  %p83_p6 = scmp.lt.u32.totalorder %s79_s21, %s139_s3 }
 0x140   :  { %p85_p7 = pnand %p83_p6, %p80_p5 }
 0x142   :  { %88 = shalt.err (!%p85_p7)
}
 0x143   :  { %57 = dma.vmem_to_hbm [thread:$0]  %s55_s18, 32, %s139_s3, [#allocation3]  }
 0x144   :  { %89 = dma.done.wait [#allocation3], 32  }
 0x145   :  { %90 = vsyncadd [#allocation3], 4294967264 }
 0x146   :  { %61 = vsyncpa [#allocation3], 1 }

// kernel: _lambda_.13
= control target key start
LH: loop header
LB: loop body
LE: loop exit
PB: predicated region body
PF: predicated region fallthrough
CT: control target
= control target key end

     0   :  { %s1201_s12 = smov 0   ;;  %s1521_s0 = inlined_call_operand.vmem [shape: f32[2,9,9,32], index: 0, kind: input, shape index: {}]   ;;  %s1522_s1 = inlined_call_operand.vmem [shape: f32[7,7,32], index: 1, kind: input, shape index: {}]   ;;  %s1523_s2 = inlined_call_operand.vmem [shape: f32[1,1,32], index: 2, kind: input, shape index: {}]   ;;  %s1524_s3 = inlined_call_operand.vmem [shape: f32[2,3,3,32], index: 3, kind: output, shape index: {}]  }
   0x1 LB: > { %s936_s13 = sadd.s32 4294967295, %s1179_s12   ;;  %p940_p0 = scmp.ge.s32.totalorder %s1179_s12, 1  ;;  %s1179_s12 = sphi %s1201_s12, %s13_s12  }
   0x2   : > { %p137_p1 = scmp.lt.s32.totalorder %s1179_s12, 3 }
   0x4   : > { %p138_p2 = pnand %p940_p0, %p137_p1 }
   0x5   : > { %p161_p3 = scmp.lt.s32.totalorder (!%p138_p2), %s936_s13, 1  ;;  %v943_v0 = vld [vmem:[%s1523_s2] ss:$0 sm:$0xff] (!%p138_p2)  ;;  %v945_v2 = vld [vmem:[%s1522_s1 + $0x1] ss:$0 sm:$0xff] (!%p138_p2)  ;;  %vm877_vm0 = vcmask (!%p138_p2), 256000  }
   0x6   : > { %141 = sbr.rel (%p138_p2) target bundleno = 120 (0x78), region = 32  ;;  %v944_v1 = vld [vmem:[%s1522_s1] ss:$0 sm:$0xff] (!%p138_p2)  ;;  %v946_v3 = vld [vmem:[%s1522_s1 + $0x2] ss:$0 sm:$0xff] (!%p138_p2) }
   0x7   : > { %v947_v4 = vld [vmem:[%s1522_s1 + $0x3] ss:$0 sm:$0xff] (!%p138_p2)  ;;  %v948_v14 = vld [vmem:[%s1522_s1 + $0x4] ss:$0 sm:$0xff] (!%p138_p2)  ;;  %v949_v41 = vld [vmem:[%s1522_s1 + $0x5] ss:$0 sm:$0xff] (!%p138_p2) }
   0x8   : > { %v950_v51 = vld [vmem:[%s1522_s1 + $0x6] ss:$0 sm:$0xff] (!%p138_p2)  ;;  %v955_v61 = vld [vmem:[%s1522_s1 + $0x8] ss:$0 sm:$0xff] (!%p138_p2) }
   0xd   : > { %s1526_s13 = smov (!%p161_p3, %s936_s13), 1 }
   0xe   : > { %s1163_s14 = smul.u32 144, %s1526_s13 }
   0xf   : > { %s1164_s22 = smul.u32 12, %s1526_s13 }
  0x10   : > { %s1221_s21 = scalar_lea.vmem %s1521_s0, %s1163_s14 }
  0x11   : > { %v179_v5 = vld [vmem:[%s1221_s21] sm:$0x7]  ;;  %v180_v6 = vld [vmem:[%s1221_s21 + $0x10] sm:$0x7]  ;;  %v221_v25 = vld [vmem:[%s1221_s21 + $0x3] sm:$0x7]  ;;  %s170_s25 = scalar_lea.vmem %s1524_s3, %s1164_s22 }
  0x12   : > { %v181_v7 = vld [vmem:[%s1221_s21 + $0x20] sm:$0x7]  ;;  %v187_v8 = vmul.f32 %v944_v1, %v179_v5  ;;  %v188_v9 = vmul.f32 %v944_v1, %v180_v6  ;;  %v194_v12 = vld [vmem:[%s1221_s21 + $0x11] sm:$0x7]  ;;  %v223_v27 = vld [vmem:[%s1221_s21 + $0x23] sm:$0x7]  ;;  %v229_v30 = vmul.f32 %v947_v4, %v221_v25 }
  0x13   : > { %v189_v10 = vmul.f32 %v944_v1, %v181_v7  ;;  %v193_v11 = vld [vmem:[%s1221_s21 + $0x1] sm:$0x7]  ;;  %v202_v16 = vmul.f32 %v945_v2, %v194_v12  ;;  %v208_v19 = vld [vmem:[%s1221_s21 + $0x12] sm:$0x7]  ;;  %v235_v32 = vld [vmem:[%s1221_s21 + $0x4] sm:$0x7]  ;;  %v231_v38 = vmul.f32 %v947_v4, %v223_v27 }
  0x14   : > { %v195_v13 = vld [vmem:[%s1221_s21 + $0x21] sm:$0x7]  ;;  %v201_v15 = vmul.f32 %v945_v2, %v193_v11  ;;  %v190_v21 = vadd.f32 %v943_v0, %v187_v8  ;;  %v191_v22 = vadd.f32 %v943_v0, %v188_v9  ;;  %v222_v26 = vld [vmem:[%s1221_s21 + $0x13] sm:$0x7]  ;;  %v216_v28 = vmul.f32 %v946_v3, %v208_v19  ;;  %v237_v34 = vld [vmem:[%s1221_s21 + $0x24] sm:$0x7] }
  0x15   : > { %v203_v17 = vmul.f32 %v945_v2, %v195_v13  ;;  %v207_v18 = vld [vmem:[%s1221_s21 + $0x2] sm:$0x7]  ;;  %v192_v23 = vadd.f32 %v943_v0, %v189_v10  ;;  %v230_v31 = vmul.f32 %v947_v4, %v222_v26  ;;  %v236_v33 = vld [vmem:[%s1221_s21 + $0x14] sm:$0x7]  ;;  %v249_v39 = vld [vmem:[%s1221_s21 + $0x5] sm:$0x7]  ;;  %v243_v42 = vmul.f32 %v948_v14, %v235_v32 }
  0x16   : > { %v209_v20 = vld [vmem:[%s1221_s21 + $0x22] sm:$0x7]  ;;  %v215_v24 = vmul.f32 %v946_v3, %v207_v18  ;;  %v204_v35 = vadd.f32 %v201_v15, %v190_v21  ;;  %v205_v36 = vadd.f32 %v202_v16, %v191_v22  ;;  %v250_v40 = vld [vmem:[%s1221_s21 + $0x15] sm:$0x7]  ;;  %v244_v43 = vmul.f32 %v948_v14, %v236_v33  ;;  %v251_v44 = vld [vmem:[%s1221_s21 + $0x25] sm:$0x7] }
  0x17   : > { %v217_v29 = vmul.f32 %v946_v3, %v209_v20  ;;  %v206_v37 = vadd.f32 %v203_v17, %v192_v23  ;;  %v245_v48 = vmul.f32 %v948_v14, %v237_v34  ;;  %v263_v49 = vld [vmem:[%s1221_s21 + $0x6] sm:$0x7]  ;;  %v264_v50 = vld [vmem:[%s1221_s21 + $0x16] sm:$0x7]  ;;  %v257_v52 = vmul.f32 %v949_v41, %v249_v39  ;;  %v951_v59 = vld [vmem:[%s1221_s21 + $0x10] sm:$0x7] }
  0x18   : > { %v218_v45 = vadd.f32 %v215_v24, %v204_v35  ;;  %v219_v46 = vadd.f32 %v216_v28, %v205_v36  ;;  %v258_v53 = vmul.f32 %v949_v41, %v250_v40  ;;  %v265_v54 = vld [vmem:[%s1221_s21 + $0x26] sm:$0x7]  ;;  %v259_v58 = vmul.f32 %v949_v41, %v251_v44  ;;  %v952_v60 = vld [vmem:[%s1221_s21 + $0x20] sm:$0x7]  ;;  %v953_v0 = vld [vmem:[%s1221_s21 + $0x30] sm:$0x7] }
  0x19   : > { %v220_v47 = vadd.f32 %v217_v29, %v206_v37  ;;  %v271_v62 = vmul.f32 %v950_v51, %v263_v49  ;;  %v272_v63 = vmul.f32 %v950_v51, %v264_v50  ;;  %v273_v4 = vmul.f32 %v950_v51, %v265_v54  ;;  %v956_v5 = vld [vmem:[%s1221_s21 + $0x11] sm:$0x7]  ;;  %v957_v6 = vld [vmem:[%s1221_s21 + $0x21] sm:$0x7]  ;;  %v960_v7 = vld [vmem:[%s1522_s1 + $0x9] ss:$0 sm:$0xff] }
  0x1a   : > { %v232_v55 = vadd.f32 %v229_v30, %v218_v45  ;;  %v233_v56 = vadd.f32 %v230_v31, %v219_v46  ;;  %v287_v8 = vmul.f32 %v955_v61, %v951_v59  ;;  %v288_v9 = vmul.f32 %v955_v61, %v952_v60  ;;  %v958_v10 = vld [vmem:[%s1221_s21 + $0x31] sm:$0x7]  ;;  %v962_v16 = vld [vmem:[%s1221_s21 + $0x22] sm:$0x7]  ;;  %v965_v17 = vld [vmem:[%s1522_s1 + $0xa] ss:$0 sm:$0xff] }
  0x1b   : > { %v234_v57 = vadd.f32 %v231_v38, %v220_v47  ;;  %v289_v14 = vmul.f32 %v955_v61, %v953_v0  ;;  %v961_v15 = vld [vmem:[%s1221_s21 + $0x12] sm:$0x7]  ;;  %v301_v18 = vmul.f32 %v960_v7, %v956_v5  ;;  %v302_v19 = vmul.f32 %v960_v7, %v957_v6  ;;  %v967_v26 = vld [vmem:[%s1221_s21 + $0x23] sm:$0x7]  ;;  %v970_v27 = vld [vmem:[%s1522_s1 + $0xb] ss:$0 sm:$0xff] }
  0x1c   : > { %v246_v1 = vadd.f32 %v243_v42, %v232_v55  ;;  %v247_v2 = vadd.f32 %v244_v43, %v233_v56  ;;  %v963_v20 = vld [vmem:[%s1221_s21 + $0x32] sm:$0x7]  ;;  %v303_v24 = vmul.f32 %v960_v7, %v958_v10  ;;  %v315_v28 = vmul.f32 %v965_v17, %v961_v15  ;;  %v972_v36 = vld [vmem:[%s1221_s21 + $0x24] sm:$0x7]  ;;  %v975_v37 = vld [vmem:[%s1522_s1 + $0xc] ss:$0 sm:$0xff] }
  0x1d   : > { %v248_v3 = vadd.f32 %v245_v48, %v234_v57  ;;  %v966_v25 = vld [vmem:[%s1221_s21 + $0x13] sm:$0x7]  ;;  %v316_v29 = vmul.f32 %v965_v17, %v962_v16  ;;  %v317_v34 = vmul.f32 %v965_v17, %v963_v20  ;;  %v330_v39 = vmul.f32 %v970_v27, %v967_v26  ;;  %v977_v46 = vld [vmem:[%s1221_s21 + $0x25] sm:$0x7]  ;;  %v980_v47 = vld [vmem:[%s1522_s1 + $0xd] ss:$0 sm:$0xff] }
  0x1e   : > { %v260_v11 = vadd.f32 %v257_v52, %v246_v1  ;;  %v261_v12 = vadd.f32 %v258_v53, %v247_v2  ;;  %v968_v30 = vld [vmem:[%s1221_s21 + $0x33] sm:$0x7]  ;;  %v329_v38 = vmul.f32 %v970_v27, %v966_v25  ;;  %v344_v49 = vmul.f32 %v975_v37, %v972_v36  ;;  %v981_v55 = vld [vmem:[%s1221_s21 + $0x16] sm:$0x7]  ;;  %v982_v56 = vld [vmem:[%s1221_s21 + $0x26] sm:$0x7] }
  0x1f   : > { %v262_v13 = vadd.f32 %v259_v58, %v248_v3  ;;  %v971_v35 = vld [vmem:[%s1221_s21 + $0x14] sm:$0x7]  ;;  %v331_v44 = vmul.f32 %v970_v27, %v968_v30  ;;  %v985_v57 = vld [vmem:[%s1522_s1 + $0xe] ss:$0 sm:$0xff]  ;;  %v358_v59 = vmul.f32 %v980_v47, %v977_v46  ;;  %v986_v1 = vld [vmem:[%s1221_s21 + $0x20] sm:$0x7] }
  0x20   : > { %v274_v21 = vadd.f32 %v271_v62, %v260_v11  ;;  %v275_v22 = vadd.f32 %v272_v63, %v261_v12  ;;  %v973_v40 = vld [vmem:[%s1221_s21 + $0x34] sm:$0x7]  ;;  %v343_v48 = vmul.f32 %v975_v37, %v971_v35  ;;  %v987_v2 = vld [vmem:[%s1221_s21 + $0x30] sm:$0x7]  ;;  %v372_v5 = vmul.f32 %v985_v57, %v982_v56  ;;  %v988_v6 = vld [vmem:[%s1221_s21 + $0x40] sm:$0x7] }
  0x21   : > { %v276_v23 = vadd.f32 %v273_v4, %v262_v13  ;;  %v976_v45 = vld [vmem:[%s1221_s21 + $0x15] sm:$0x7]  ;;  %v345_v54 = vmul.f32 %v975_v37, %v973_v40  ;;  %v990_v3 = vld [vmem:[%s1522_s1 + $0x10] ss:$0 sm:$0xff]  ;;  %v371_v4 = vmul.f32 %v985_v57, %v981_v55  ;;  %v991_v11 = vld [vmem:[%s1221_s21 + $0x21] sm:$0x7] }
  0x22   : > { %v290_v31 = vadd.f32 %v287_v8, %v274_v21  ;;  %v291_v32 = vadd.f32 %v288_v9, %v275_v22  ;;  %v978_v50 = vld [vmem:[%s1221_s21 + $0x35] sm:$0x7]  ;;  %v357_v58 = vmul.f32 %v980_v47, %v976_v45  ;;  %v992_v12 = vld [vmem:[%s1221_s21 + $0x31] sm:$0x7]  ;;  %v388_v15 = vmul.f32 %v990_v3, %v987_v2  ;;  %v993_v16 = vld [vmem:[%s1221_s21 + $0x41] sm:$0x7] }
  0x23   : > { %v292_v33 = vadd.f32 %v289_v14, %v276_v23  ;;  %v983_v60 = vld [vmem:[%s1221_s21 + $0x36] sm:$0x7]  ;;  %v359_v0 = vmul.f32 %v980_v47, %v978_v50  ;;  %v995_v13 = vld [vmem:[%s1522_s1 + $0x11] ss:$0 sm:$0xff]  ;;  %v387_v14 = vmul.f32 %v990_v3, %v986_v1  ;;  %v389_v20 = vmul.f32 %v990_v3, %v988_v6  ;;  %v996_v21 = vld [vmem:[%s1221_s21 + $0x22] sm:$0x7] }
  0x24   : > { %v304_v41 = vadd.f32 %v301_v18, %v290_v31  ;;  %v305_v42 = vadd.f32 %v302_v19, %v291_v32  ;;  %v373_v10 = vmul.f32 %v985_v57, %v983_v60  ;;  %v997_v22 = vld [vmem:[%s1221_s21 + $0x32] sm:$0x7]  ;;  %v402_v25 = vmul.f32 %v995_v13, %v992_v12  ;;  %v998_v26 = vld [vmem:[%s1221_s21 + $0x42] sm:$0x7]  ;;  %v1013_v56 = vld [vmem:[%s1221_s21 + $0x45] sm:$0x7] }
  0x25   : > { %v306_v43 = vadd.f32 %v303_v24, %v292_v33  ;;  %v1000_v23 = vld [vmem:[%s1522_s1 + $0x12] ss:$0 sm:$0xff]  ;;  %v401_v24 = vmul.f32 %v995_v13, %v991_v11  ;;  %v403_v30 = vmul.f32 %v995_v13, %v993_v16  ;;  %v1001_v31 = vld [vmem:[%s1221_s21 + $0x23] sm:$0x7]  ;;  %v1002_v32 = vld [vmem:[%s1221_s21 + $0x33] sm:$0x7] }
  0x26   : > { %v318_v51 = vadd.f32 %v315_v28, %v304_v41  ;;  %v319_v52 = vadd.f32 %v316_v29, %v305_v42  ;;  %v1005_v33 = vld [vmem:[%s1522_s1 + $0x13] ss:$0 sm:$0xff]  ;;  %v416_v35 = vmul.f32 %v1000_v23, %v997_v22  ;;  %v1003_v36 = vld [vmem:[%s1221_s21 + $0x43] sm:$0x7]  ;;  %v417_v40 = vmul.f32 %v1000_v23, %v998_v26  ;;  %v1007_v42 = vld [vmem:[%s1221_s21 + $0x34] sm:$0x7] }
  0x27   : > { %v320_v53 = vadd.f32 %v317_v34, %v306_v43  ;;  %v415_v34 = vmul.f32 %v1000_v23, %v996_v21  ;;  %v1006_v41 = vld [vmem:[%s1221_s21 + $0x24] sm:$0x7]  ;;  %v1010_v43 = vld [vmem:[%s1522_s1 + $0x14] ss:$0 sm:$0xff]  ;;  %v430_v45 = vmul.f32 %v1005_v33, %v1002_v32  ;;  %v431_v50 = vmul.f32 %v1005_v33, %v1003_v36  ;;  %v1023_v12 = vld [vmem:[%s1221_s21 + $0x50] sm:$0x7] }
  0x28   : > { %v332_v61 = vadd.f32 %v329_v38, %v318_v51  ;;  %v333_v62 = vadd.f32 %v330_v39, %v319_v52  ;;  %v1008_v46 = vld [vmem:[%s1221_s21 + $0x44] sm:$0x7]  ;;  %v1012_v52 = vld [vmem:[%s1221_s21 + $0x35] sm:$0x7]  ;;  %v444_v55 = vmul.f32 %v1010_v43, %v1007_v42  ;;  %v1028_v22 = vld [vmem:[%s1221_s21 + $0x51] sm:$0x7] }
  0x29   : > { %v334_v63 = vadd.f32 %v331_v44, %v320_v53  ;;  %v429_v44 = vmul.f32 %v1005_v33, %v1001_v31  ;;  %v1011_v51 = vld [vmem:[%s1221_s21 + $0x25] sm:$0x7]  ;;  %v1015_v53 = vld [vmem:[%s1522_s1 + $0x15] ss:$0 sm:$0xff]  ;;  %v445_v60 = vmul.f32 %v1010_v43, %v1008_v46  ;;  %v1033_v32 = vld [vmem:[%s1221_s21 + $0x52] sm:$0x7] }
  0x2a   : > { %v346_v7 = vadd.f32 %v343_v48, %v332_v61  ;;  %v347_v8 = vadd.f32 %v344_v49, %v333_v62  ;;  %v1016_v61 = vld [vmem:[%s1221_s21 + $0x26] sm:$0x7]  ;;  %v1017_v62 = vld [vmem:[%s1221_s21 + $0x36] sm:$0x7]  ;;  %v458_v1 = vmul.f32 %v1015_v53, %v1012_v52  ;;  %v459_v6 = vmul.f32 %v1015_v53, %v1013_v56  ;;  %v1038_v42 = vld [vmem:[%s1221_s21 + $0x53] sm:$0x7] }
  0x2b   : > { %v348_v9 = vadd.f32 %v345_v54, %v334_v63  ;;  %v443_v54 = vmul.f32 %v1010_v43, %v1006_v41  ;;  %v1020_v63 = vld [vmem:[%s1522_s1 + $0x16] ss:$0 sm:$0xff]  ;;  %v1018_v2 = vld [vmem:[%s1221_s21 + $0x46] sm:$0x7] }
  0x2c   : > { %v360_v17 = vadd.f32 %v357_v58, %v346_v7  ;;  %v361_v18 = vadd.f32 %v358_v59, %v347_v8  ;;  %v1021_v7 = vld [vmem:[%s1221_s21 + $0x30] sm:$0x7]  ;;  %v1022_v8 = vld [vmem:[%s1221_s21 + $0x40] sm:$0x7]  ;;  %v472_v11 = vmul.f32 %v1020_v63, %v1017_v62  ;;  %v473_v16 = vmul.f32 %v1020_v63, %v1018_v2  ;;  %v1043_v52 = vld [vmem:[%s1221_s21 + $0x54] sm:$0x7] }
  0x2d   : > { %v362_v19 = vadd.f32 %v359_v0, %v348_v9  ;;  %v457_v0 = vmul.f32 %v1015_v53, %v1011_v51  ;;  %v1025_v9 = vld [vmem:[%s1522_s1 + $0x18] ss:$0 sm:$0xff]  ;;  %v1048_v62 = vld [vmem:[%s1221_s21 + $0x55] sm:$0x7] }
  0x2e   : > { %v374_v27 = vadd.f32 %v371_v4, %v360_v17  ;;  %v375_v28 = vadd.f32 %v372_v5, %v361_v18  ;;  %v1026_v17 = vld [vmem:[%s1221_s21 + $0x31] sm:$0x7]  ;;  %v1027_v18 = vld [vmem:[%s1221_s21 + $0x41] sm:$0x7]  ;;  %v488_v21 = vmul.f32 %v1025_v9, %v1022_v8  ;;  %v489_v26 = vmul.f32 %v1025_v9, %v1023_v12  ;;  %v1053_v8 = vld [vmem:[%s1221_s21 + $0x56] sm:$0x7] }
  0x2f   : > { %v376_v29 = vadd.f32 %v373_v10, %v362_v19  ;;  %v471_v10 = vmul.f32 %v1020_v63, %v1016_v61  ;;  %v1030_v19 = vld [vmem:[%s1522_s1 + $0x19] ss:$0 sm:$0xff] }
  0x30   : > { %v390_v37 = vadd.f32 %v387_v14, %v374_v27  ;;  %v391_v38 = vadd.f32 %v388_v15, %v375_v28  ;;  %v1031_v27 = vld [vmem:[%s1221_s21 + $0x32] sm:$0x7]  ;;  %v1032_v28 = vld [vmem:[%s1221_s21 + $0x42] sm:$0x7]  ;;  %v502_v31 = vmul.f32 %v1030_v19, %v1027_v18  ;;  %v503_v36 = vmul.f32 %v1030_v19, %v1028_v22 }
  0x31   : > { %v392_v39 = vadd.f32 %v389_v20, %v376_v29  ;;  %v487_v20 = vmul.f32 %v1025_v9, %v1021_v7  ;;  %v1035_v29 = vld [vmem:[%s1522_s1 + $0x1a] ss:$0 sm:$0xff]  ;;  %v1058_v18 = vld [vmem:[%s1221_s21 + $0x60] sm:$0x7] }
  0x32   : > { %v404_v47 = vadd.f32 %v401_v24, %v390_v37  ;;  %v405_v48 = vadd.f32 %v402_v25, %v391_v38  ;;  %v1036_v37 = vld [vmem:[%s1221_s21 + $0x33] sm:$0x7]  ;;  %v1037_v38 = vld [vmem:[%s1221_s21 + $0x43] sm:$0x7]  ;;  %v516_v41 = vmul.f32 %v1035_v29, %v1032_v28  ;;  %v517_v46 = vmul.f32 %v1035_v29, %v1033_v32 }
  0x33   : > { %v406_v49 = vadd.f32 %v403_v30, %v392_v39  ;;  %v501_v30 = vmul.f32 %v1030_v19, %v1026_v17  ;;  %v1040_v39 = vld [vmem:[%s1522_s1 + $0x1b] ss:$0 sm:$0xff]  ;;  %v1063_v28 = vld [vmem:[%s1221_s21 + $0x61] sm:$0x7] }
  0x34   : > { %v418_v57 = vadd.f32 %v415_v34, %v404_v47  ;;  %v419_v58 = vadd.f32 %v416_v35, %v405_v48  ;;  %v1041_v47 = vld [vmem:[%s1221_s21 + $0x34] sm:$0x7]  ;;  %v1042_v48 = vld [vmem:[%s1221_s21 + $0x44] sm:$0x7]  ;;  %v530_v51 = vmul.f32 %v1040_v39, %v1037_v38  ;;  %v531_v56 = vmul.f32 %v1040_v39, %v1038_v42 }
  0x35   : > { %v420_v59 = vadd.f32 %v417_v40, %v406_v49  ;;  %v515_v40 = vmul.f32 %v1035_v29, %v1031_v27  ;;  %v1045_v49 = vld [vmem:[%s1522_s1 + $0x1c] ss:$0 sm:$0xff]  ;;  %v1068_v38 = vld [vmem:[%s1221_s21 + $0x62] sm:$0x7] }
  0x36   : > { %v432_v3 = vadd.f32 %v429_v44, %v418_v57  ;;  %v433_v4 = vadd.f32 %v430_v45, %v419_v58  ;;  %v1046_v57 = vld [vmem:[%s1221_s21 + $0x35] sm:$0x7]  ;;  %v1047_v58 = vld [vmem:[%s1221_s21 + $0x45] sm:$0x7]  ;;  %v544_v61 = vmul.f32 %v1045_v49, %v1042_v48  ;;  %v545_v2 = vmul.f32 %v1045_v49, %v1043_v52 }
  0x37   : > { %v434_v5 = vadd.f32 %v431_v50, %v420_v59  ;;  %v529_v50 = vmul.f32 %v1040_v39, %v1036_v37  ;;  %v1050_v59 = vld [vmem:[%s1522_s1 + $0x1d] ss:$0 sm:$0xff]  ;;  %v1073_v48 = vld [vmem:[%s1221_s21 + $0x63] sm:$0x7] }
  0x38   : > { %v446_v13 = vadd.f32 %v443_v54, %v432_v3  ;;  %v447_v14 = vadd.f32 %v444_v55, %v433_v4  ;;  %v1051_v3 = vld [vmem:[%s1221_s21 + $0x36] sm:$0x7]  ;;  %v1052_v4 = vld [vmem:[%s1221_s21 + $0x46] sm:$0x7]  ;;  %v558_v7 = vmul.f32 %v1050_v59, %v1047_v58  ;;  %v559_v12 = vmul.f32 %v1050_v59, %v1048_v62 }
  0x39   : > { %v448_v15 = vadd.f32 %v445_v60, %v434_v5  ;;  %v543_v60 = vmul.f32 %v1045_v49, %v1041_v47  ;;  %v1055_v5 = vld [vmem:[%s1522_s1 + $0x1e] ss:$0 sm:$0xff]  ;;  %v1078_v58 = vld [vmem:[%s1221_s21 + $0x64] sm:$0x7] }
  0x3a   : > { %v460_v23 = vadd.f32 %v457_v0, %v446_v13  ;;  %v461_v24 = vadd.f32 %v458_v1, %v447_v14  ;;  %v1056_v13 = vld [vmem:[%s1221_s21 + $0x40] sm:$0x7]  ;;  %v1057_v14 = vld [vmem:[%s1221_s21 + $0x50] sm:$0x7]  ;;  %v572_v17 = vmul.f32 %v1055_v5, %v1052_v4  ;;  %v573_v22 = vmul.f32 %v1055_v5, %v1053_v8  ;;  %v1083_v4 = vld [vmem:[%s1221_s21 + $0x65] sm:$0x7] }
  0x3b   : > { %v462_v25 = vadd.f32 %v459_v6, %v448_v15  ;;  %v557_v6 = vmul.f32 %v1050_v59, %v1046_v57  ;;  %v1060_v15 = vld [vmem:[%s1522_s1 + $0x20] ss:$0 sm:$0xff] }
  0x3c   : > { %v474_v33 = vadd.f32 %v471_v10, %v460_v23  ;;  %v475_v34 = vadd.f32 %v472_v11, %v461_v24  ;;  %v1061_v23 = vld [vmem:[%s1221_s21 + $0x41] sm:$0x7]  ;;  %v1062_v24 = vld [vmem:[%s1221_s21 + $0x51] sm:$0x7]  ;;  %v588_v27 = vmul.f32 %v1060_v15, %v1057_v14  ;;  %v589_v32 = vmul.f32 %v1060_v15, %v1058_v18  ;;  %v1088_v14 = vld [vmem:[%s1221_s21 + $0x66] sm:$0x7] }
  0x3d   : > { %v476_v35 = vadd.f32 %v473_v16, %v462_v25  ;;  %v571_v16 = vmul.f32 %v1055_v5, %v1051_v3  ;;  %v1065_v25 = vld [vmem:[%s1522_s1 + $0x21] ss:$0 sm:$0xff] }
  0x3e   : > { %v490_v43 = vadd.f32 %v487_v20, %v474_v33  ;;  %v491_v44 = vadd.f32 %v488_v21, %v475_v34  ;;  %v1066_v33 = vld [vmem:[%s1221_s21 + $0x42] sm:$0x7]  ;;  %v1067_v34 = vld [vmem:[%s1221_s21 + $0x52] sm:$0x7]  ;;  %v602_v37 = vmul.f32 %v1065_v25, %v1062_v24  ;;  %v603_v42 = vmul.f32 %v1065_v25, %v1063_v28 }
  0x3f   : > { %v492_v45 = vadd.f32 %v489_v26, %v476_v35  ;;  %v587_v26 = vmul.f32 %v1060_v15, %v1056_v13  ;;  %v1070_v35 = vld [vmem:[%s1522_s1 + $0x22] ss:$0 sm:$0xff]  ;;  %v1093_v24 = vld [vmem:[%s1221_s21 + $0x70] sm:$0x7] }
  0x40   : > { %v504_v53 = vadd.f32 %v501_v30, %v490_v43  ;;  %v505_v54 = vadd.f32 %v502_v31, %v491_v44  ;;  %v1071_v43 = vld [vmem:[%s1221_s21 + $0x43] sm:$0x7]  ;;  %v1072_v44 = vld [vmem:[%s1221_s21 + $0x53] sm:$0x7]  ;;  %v616_v47 = vmul.f32 %v1070_v35, %v1067_v34  ;;  %v617_v52 = vmul.f32 %v1070_v35, %v1068_v38 }
  0x41   : > { %v506_v55 = vadd.f32 %v503_v36, %v492_v45  ;;  %v601_v36 = vmul.f32 %v1065_v25, %v1061_v23  ;;  %v1075_v45 = vld [vmem:[%s1522_s1 + $0x23] ss:$0 sm:$0xff]  ;;  %v1098_v34 = vld [vmem:[%s1221_s21 + $0x71] sm:$0x7] }
  0x42   : > { %v518_v63 = vadd.f32 %v515_v40, %v504_v53  ;;  %v519_v0 = vadd.f32 %v516_v41, %v505_v54  ;;  %v1076_v53 = vld [vmem:[%s1221_s21 + $0x44] sm:$0x7]  ;;  %v1077_v54 = vld [vmem:[%s1221_s21 + $0x54] sm:$0x7]  ;;  %v630_v57 = vmul.f32 %v1075_v45, %v1072_v44  ;;  %v631_v62 = vmul.f32 %v1075_v45, %v1073_v48 }
  0x43   : > { %v520_v1 = vadd.f32 %v517_v46, %v506_v55  ;;  %v615_v46 = vmul.f32 %v1070_v35, %v1066_v33  ;;  %v1080_v55 = vld [vmem:[%s1522_s1 + $0x24] ss:$0 sm:$0xff]  ;;  %v1103_v44 = vld [vmem:[%s1221_s21 + $0x72] sm:$0x7] }
  0x44   : > { %v532_v9 = vadd.f32 %v529_v50, %v518_v63  ;;  %v533_v10 = vadd.f32 %v530_v51, %v519_v0  ;;  %v1081_v63 = vld [vmem:[%s1221_s21 + $0x45] sm:$0x7]  ;;  %v1082_v0 = vld [vmem:[%s1221_s21 + $0x55] sm:$0x7]  ;;  %v644_v3 = vmul.f32 %v1080_v55, %v1077_v54  ;;  %v645_v8 = vmul.f32 %v1080_v55, %v1078_v58 }
  0x45   : > { %v534_v11 = vadd.f32 %v531_v56, %v520_v1  ;;  %v629_v56 = vmul.f32 %v1075_v45, %v1071_v43  ;;  %v1085_v1 = vld [vmem:[%s1522_s1 + $0x25] ss:$0 sm:$0xff]  ;;  %v1108_v54 = vld [vmem:[%s1221_s21 + $0x73] sm:$0x7] }
  0x46   : > { %v546_v19 = vadd.f32 %v543_v60, %v532_v9  ;;  %v547_v20 = vadd.f32 %v544_v61, %v533_v10  ;;  %v1086_v9 = vld [vmem:[%s1221_s21 + $0x46] sm:$0x7]  ;;  %v1087_v10 = vld [vmem:[%s1221_s21 + $0x56] sm:$0x7]  ;;  %v658_v13 = vmul.f32 %v1085_v1, %v1082_v0  ;;  %v659_v18 = vmul.f32 %v1085_v1, %v1083_v4 }
  0x47   : > { %v548_v21 = vadd.f32 %v545_v2, %v534_v11  ;;  %v643_v2 = vmul.f32 %v1080_v55, %v1076_v53  ;;  %v1090_v11 = vld [vmem:[%s1522_s1 + $0x26] ss:$0 sm:$0xff]  ;;  %v1113_v0 = vld [vmem:[%s1221_s21 + $0x74] sm:$0x7] }
  0x48   : > { %v560_v29 = vadd.f32 %v557_v6, %v546_v19  ;;  %v561_v30 = vadd.f32 %v558_v7, %v547_v20  ;;  %v1091_v19 = vld [vmem:[%s1221_s21 + $0x50] sm:$0x7]  ;;  %v1092_v20 = vld [vmem:[%s1221_s21 + $0x60] sm:$0x7]  ;;  %v672_v23 = vmul.f32 %v1090_v11, %v1087_v10  ;;  %v673_v28 = vmul.f32 %v1090_v11, %v1088_v14  ;;  %v1118_v10 = vld [vmem:[%s1221_s21 + $0x75] sm:$0x7] }
  0x49   : > { %v562_v31 = vadd.f32 %v559_v12, %v548_v21  ;;  %v657_v12 = vmul.f32 %v1085_v1, %v1081_v63  ;;  %v1095_v21 = vld [vmem:[%s1522_s1 + $0x28] ss:$0 sm:$0xff] }
  0x4a   : > { %v574_v39 = vadd.f32 %v571_v16, %v560_v29  ;;  %v575_v40 = vadd.f32 %v572_v17, %v561_v30  ;;  %v1096_v29 = vld [vmem:[%s1221_s21 + $0x51] sm:$0x7]  ;;  %v1097_v30 = vld [vmem:[%s1221_s21 + $0x61] sm:$0x7]  ;;  %v688_v33 = vmul.f32 %v1095_v21, %v1092_v20  ;;  %v689_v38 = vmul.f32 %v1095_v21, %v1093_v24  ;;  %v1123_v20 = vld [vmem:[%s1221_s21 + $0x76] sm:$0x7] }
  0x4b   : > { %v576_v41 = vadd.f32 %v573_v22, %v562_v31  ;;  %v671_v22 = vmul.f32 %v1090_v11, %v1086_v9  ;;  %v1100_v31 = vld [vmem:[%s1522_s1 + $0x29] ss:$0 sm:$0xff] }
  0x4c   : > { %v590_v49 = vadd.f32 %v587_v26, %v574_v39  ;;  %v591_v50 = vadd.f32 %v588_v27, %v575_v40  ;;  %v1101_v39 = vld [vmem:[%s1221_s21 + $0x52] sm:$0x7]  ;;  %v1102_v40 = vld [vmem:[%s1221_s21 + $0x62] sm:$0x7]  ;;  %v702_v43 = vmul.f32 %v1100_v31, %v1097_v30  ;;  %v703_v48 = vmul.f32 %v1100_v31, %v1098_v34 }
  0x4d   : > { %v592_v51 = vadd.f32 %v589_v32, %v576_v41  ;;  %v687_v32 = vmul.f32 %v1095_v21, %v1091_v19  ;;  %v1105_v41 = vld [vmem:[%s1522_s1 + $0x2a] ss:$0 sm:$0xff]  ;;  %v1128_v30 = vld [vmem:[%s1221_s21 + $0x80] sm:$0x7] }
  0x4e   : > { %v604_v59 = vadd.f32 %v601_v36, %v590_v49  ;;  %v605_v60 = vadd.f32 %v602_v37, %v591_v50  ;;  %v1106_v49 = vld [vmem:[%s1221_s21 + $0x53] sm:$0x7]  ;;  %v1107_v50 = vld [vmem:[%s1221_s21 + $0x63] sm:$0x7]  ;;  %v716_v53 = vmul.f32 %v1105_v41, %v1102_v40  ;;  %v717_v58 = vmul.f32 %v1105_v41, %v1103_v44 }
  0x4f   : > { %v606_v61 = vadd.f32 %v603_v42, %v592_v51  ;;  %v701_v42 = vmul.f32 %v1100_v31, %v1096_v29  ;;  %v1110_v51 = vld [vmem:[%s1522_s1 + $0x2b] ss:$0 sm:$0xff]  ;;  %v1133_v40 = vld [vmem:[%s1221_s21 + $0x81] sm:$0x7] }
  0x50   : > { %v618_v5 = vadd.f32 %v615_v46, %v604_v59  ;;  %v619_v6 = vadd.f32 %v616_v47, %v605_v60  ;;  %v1111_v59 = vld [vmem:[%s1221_s21 + $0x54] sm:$0x7]  ;;  %v1112_v60 = vld [vmem:[%s1221_s21 + $0x64] sm:$0x7]  ;;  %v730_v63 = vmul.f32 %v1110_v51, %v1107_v50  ;;  %v731_v4 = vmul.f32 %v1110_v51, %v1108_v54 }
  0x51   : > { %v620_v7 = vadd.f32 %v617_v52, %v606_v61  ;;  %v715_v52 = vmul.f32 %v1105_v41, %v1101_v39  ;;  %v1115_v61 = vld [vmem:[%s1522_s1 + $0x2c] ss:$0 sm:$0xff]  ;;  %v1138_v50 = vld [vmem:[%s1221_s21 + $0x82] sm:$0x7] }
  0x52   : > { %v632_v15 = vadd.f32 %v629_v56, %v618_v5  ;;  %v633_v16 = vadd.f32 %v630_v57, %v619_v6  ;;  %v1116_v5 = vld [vmem:[%s1221_s21 + $0x55] sm:$0x7]  ;;  %v1117_v6 = vld [vmem:[%s1221_s21 + $0x65] sm:$0x7]  ;;  %v744_v9 = vmul.f32 %v1115_v61, %v1112_v60  ;;  %v745_v14 = vmul.f32 %v1115_v61, %v1113_v0 }
  0x53   : > { %v634_v17 = vadd.f32 %v631_v62, %v620_v7  ;;  %v729_v62 = vmul.f32 %v1110_v51, %v1106_v49  ;;  %v1120_v7 = vld [vmem:[%s1522_s1 + $0x2d] ss:$0 sm:$0xff]  ;;  %v1143_v60 = vld [vmem:[%s1221_s21 + $0x83] sm:$0x7] }
  0x54   : > { %v646_v25 = vadd.f32 %v643_v2, %v632_v15  ;;  %v647_v26 = vadd.f32 %v644_v3, %v633_v16  ;;  %v1121_v15 = vld [vmem:[%s1221_s21 + $0x56] sm:$0x7]  ;;  %v1122_v16 = vld [vmem:[%s1221_s21 + $0x66] sm:$0x7]  ;;  %v758_v19 = vmul.f32 %v1120_v7, %v1117_v6  ;;  %v759_v24 = vmul.f32 %v1120_v7, %v1118_v10 }
  0x55   : > { %v648_v27 = vadd.f32 %v645_v8, %v634_v17  ;;  %v743_v8 = vmul.f32 %v1115_v61, %v1111_v59  ;;  %v1125_v17 = vld [vmem:[%s1522_s1 + $0x2e] ss:$0 sm:$0xff]  ;;  %v1148_v6 = vld [vmem:[%s1221_s21 + $0x84] sm:$0x7] }
  0x56   : > { %v660_v35 = vadd.f32 %v657_v12, %v646_v25  ;;  %v661_v36 = vadd.f32 %v658_v13, %v647_v26  ;;  %v1126_v25 = vld [vmem:[%s1221_s21 + $0x60] sm:$0x7]  ;;  %v1127_v26 = vld [vmem:[%s1221_s21 + $0x70] sm:$0x7]  ;;  %v772_v29 = vmul.f32 %v1125_v17, %v1122_v16  ;;  %v773_v34 = vmul.f32 %v1125_v17, %v1123_v20  ;;  %v1153_v16 = vld [vmem:[%s1221_s21 + $0x85] sm:$0x7] }
  0x57   : > { %v662_v37 = vadd.f32 %v659_v18, %v648_v27  ;;  %v757_v18 = vmul.f32 %v1120_v7, %v1116_v5  ;;  %v1130_v27 = vld [vmem:[%s1522_s1 + $0x30] ss:$0 sm:$0xff] }
  0x58   : > { %v674_v45 = vadd.f32 %v671_v22, %v660_v35  ;;  %v675_v46 = vadd.f32 %v672_v23, %v661_v36  ;;  %v1131_v35 = vld [vmem:[%s1221_s21 + $0x61] sm:$0x7]  ;;  %v1132_v36 = vld [vmem:[%s1221_s21 + $0x71] sm:$0x7]  ;;  %v788_v39 = vmul.f32 %v1130_v27, %v1127_v26  ;;  %v789_v44 = vmul.f32 %v1130_v27, %v1128_v30  ;;  %v1158_v26 = vld [vmem:[%s1221_s21 + $0x86] sm:$0x7] }
  0x59   : > { %v676_v47 = vadd.f32 %v673_v28, %v662_v37  ;;  %v771_v28 = vmul.f32 %v1125_v17, %v1121_v15  ;;  %v1135_v37 = vld [vmem:[%s1522_s1 + $0x31] ss:$0 sm:$0xff] }
  0x5a   : > { %v690_v55 = vadd.f32 %v687_v32, %v674_v45  ;;  %v691_v56 = vadd.f32 %v688_v33, %v675_v46  ;;  %v1136_v45 = vld [vmem:[%s1221_s21 + $0x62] sm:$0x7]  ;;  %v1137_v46 = vld [vmem:[%s1221_s21 + $0x72] sm:$0x7]  ;;  %v802_v49 = vmul.f32 %v1135_v37, %v1132_v36  ;;  %v803_v54 = vmul.f32 %v1135_v37, %v1133_v40 }
  0x5b   : > { %v692_v57 = vadd.f32 %v689_v38, %v676_v47  ;;  %v787_v38 = vmul.f32 %v1130_v27, %v1126_v25  ;;  %v1140_v47 = vld [vmem:[%s1522_s1 + $0x32] ss:$0 sm:$0xff] }
  0x5c   : > { %v704_v1 = vadd.f32 %v701_v42, %v690_v55  ;;  %v705_v2 = vadd.f32 %v702_v43, %v691_v56  ;;  %v1141_v55 = vld [vmem:[%s1221_s21 + $0x63] sm:$0x7]  ;;  %v1142_v56 = vld [vmem:[%s1221_s21 + $0x73] sm:$0x7]  ;;  %v816_v59 = vmul.f32 %v1140_v47, %v1137_v46  ;;  %v817_v0 = vmul.f32 %v1140_v47, %v1138_v50 }
  0x5d   : > { %v706_v3 = vadd.f32 %v703_v48, %v692_v57  ;;  %v801_v48 = vmul.f32 %v1135_v37, %v1131_v35  ;;  %v1145_v57 = vld [vmem:[%s1522_s1 + $0x33] ss:$0 sm:$0xff] }
  0x5e   : > { %v718_v11 = vadd.f32 %v715_v52, %v704_v1  ;;  %v719_v12 = vadd.f32 %v716_v53, %v705_v2  ;;  %v1146_v1 = vld [vmem:[%s1221_s21 + $0x64] sm:$0x7]  ;;  %v1147_v2 = vld [vmem:[%s1221_s21 + $0x74] sm:$0x7]  ;;  %v830_v5 = vmul.f32 %v1145_v57, %v1142_v56  ;;  %v831_v10 = vmul.f32 %v1145_v57, %v1143_v60 }
  0x5f   : > { %v720_v13 = vadd.f32 %v717_v58, %v706_v3  ;;  %v815_v58 = vmul.f32 %v1140_v47, %v1136_v45  ;;  %v1150_v3 = vld [vmem:[%s1522_s1 + $0x34] ss:$0 sm:$0xff] }
  0x60   : > { %v732_v21 = vadd.f32 %v729_v62, %v718_v11  ;;  %v733_v22 = vadd.f32 %v730_v63, %v719_v12  ;;  %v1151_v11 = vld [vmem:[%s1221_s21 + $0x65] sm:$0x7]  ;;  %v1152_v12 = vld [vmem:[%s1221_s21 + $0x75] sm:$0x7]  ;;  %v844_v15 = vmul.f32 %v1150_v3, %v1147_v2  ;;  %v845_v20 = vmul.f32 %v1150_v3, %v1148_v6 }
  0x61   : > { %v734_v23 = vadd.f32 %v731_v4, %v720_v13  ;;  %v829_v4 = vmul.f32 %v1145_v57, %v1141_v55  ;;  %v1155_v13 = vld [vmem:[%s1522_s1 + $0x35] ss:$0 sm:$0xff] }
  0x62   : > { %v746_v31 = vadd.f32 %v743_v8, %v732_v21  ;;  %v747_v32 = vadd.f32 %v744_v9, %v733_v22  ;;  %v1156_v21 = vld [vmem:[%s1221_s21 + $0x66] sm:$0x7]  ;;  %v1157_v22 = vld [vmem:[%s1221_s21 + $0x76] sm:$0x7]  ;;  %v858_v25 = vmul.f32 %v1155_v13, %v1152_v12  ;;  %v859_v30 = vmul.f32 %v1155_v13, %v1153_v16 }
  0x63   : > { %v748_v33 = vadd.f32 %v745_v14, %v734_v23  ;;  %v843_v14 = vmul.f32 %v1150_v3, %v1146_v1  ;;  %v1160_v23 = vld [vmem:[%s1522_s1 + $0x36] ss:$0 sm:$0xff] }
  0x64   : > { %v760_v41 = vadd.f32 %v757_v18, %v746_v31  ;;  %v761_v42 = vadd.f32 %v758_v19, %v747_v32  ;;  %v871_v31 = vmul.f32 %v1160_v23, %v1156_v21  ;;  %v872_v32 = vmul.f32 %v1160_v23, %v1157_v22 }
  0x65   : > { %v762_v43 = vadd.f32 %v759_v24, %v748_v33  ;;  %v857_v24 = vmul.f32 %v1155_v13, %v1151_v11  ;;  %v873_v36 = vmul.f32 %v1160_v23, %v1158_v26 }
  0x66   : > { %v774_v51 = vadd.f32 %v771_v28, %v760_v41  ;;  %v775_v52 = vadd.f32 %v772_v29, %v761_v42 }
  0x67   : > { %v776_v53 = vadd.f32 %v773_v34, %v762_v43 }
  0x68   : > { %v790_v61 = vadd.f32 %v787_v38, %v774_v51  ;;  %v791_v62 = vadd.f32 %v788_v39, %v775_v52 }
  0x69   : > { %v792_v63 = vadd.f32 %v789_v44, %v776_v53 }
  0x6a   : > { %v804_v7 = vadd.f32 %v801_v48, %v790_v61  ;;  %v805_v8 = vadd.f32 %v802_v49, %v791_v62 }
  0x6b   : > { %v806_v9 = vadd.f32 %v803_v54, %v792_v63 }
  0x6c   : > { %v818_v17 = vadd.f32 %v815_v58, %v804_v7  ;;  %v819_v18 = vadd.f32 %v816_v59, %v805_v8 }
  0x6d   : > { %v820_v19 = vadd.f32 %v817_v0, %v806_v9 }
  0x6e   : > { %v832_v27 = vadd.f32 %v829_v4, %v818_v17  ;;  %v833_v28 = vadd.f32 %v830_v5, %v819_v18 }
  0x6f   : > { %v834_v29 = vadd.f32 %v831_v10, %v820_v19 }
  0x70   : > { %v846_v33 = vadd.f32 %v843_v14, %v832_v27  ;;  %v847_v34 = vadd.f32 %v844_v15, %v833_v28 }
  0x71   : > { %v848_v35 = vadd.f32 %v845_v20, %v834_v29 }
  0x72   : > { %v860_v37 = vadd.f32 %v857_v24, %v846_v33  ;;  %v861_v38 = vadd.f32 %v858_v25, %v847_v34 }
  0x73   : > { %v862_v39 = vadd.f32 %v859_v30, %v848_v35 }
  0x74   : > { %v874_v40 = vadd.f32 %v871_v31, %v860_v37  ;;  %v875_v41 = vadd.f32 %v872_v32, %v861_v38 }
  0x75   : > { %v876_v42 = vadd.f32 %v873_v36, %v862_v39 }
  0x76   : > { %878 = vst.msk [vmem:[%s170_s25] sm:$0x7] %vm877_vm0, %v874_v40  ;;  %879 = vst.msk [vmem:[%s170_s25 + $0x4] sm:$0x7] %vm877_vm0, %v875_v41 }
  0x77   : > { %880 = vst.msk [vmem:[%s170_s25 + $0x8] sm:$0x7] %vm877_vm0, %v876_v42 }
  0x78 PF: > { %s13_s12 = sadd.s32 1, %s1179_s12  }
  0x79   : > { %p10_p4 = scmp.ge.s32.totalorder %s13_s12, 4  }
  0x7b   :  { %12 = sbr.rel (!%p10_p4) target bundleno = 1 (0x1), region = 74 }

// kernel: _lambda_.11
= control target key start
LH: loop header
LB: loop body
LE: loop exit
PB: predicated region body
PF: predicated region fallthrough
CT: control target
= control target key end

     0   :  { %13 = vsyncpa [#allocation3], 0  ;;  %s5308_s0 = inlined_call_operand.vmem [shape: bf16[2,8,16,4], index: 0, kind: input, shape index: {}, may-alias: {0,3}]   ;;  %s5309_s1 = inlined_call_operand.vmem [shape: bf16[2,8,16,4], index: 1, kind: input, shape index: {}, may-alias: {1,4}]   ;;  %s5310_s2 = inlined_call_operand.vmem [shape: bf16[2,8,48,4], index: 2, kind: input, shape index: {}]   ;;  %s5311_s3 = inlined_call_operand.vmem [shape: bf16[2,8,16,4], index: 3, kind: input, shape index: {}, may-alias: {0,3}]   ;;  %s5312_s4 = inlined_call_operand.vmem [shape: bf16[2,8,16,4], index: 4, kind: input, shape index: {}, may-alias: {1,4}]   ;;  %s5313_s5 = inlined_call_operand.vmem [shape: f32[8,1,33], index: 5, kind: input, shape index: {}]   ;;  %s5314_s6 = inlined_call_operand.vmem [shape: bf16[2,8,16,4], index: 6, kind: output, shape index: {0}]   ;;  %s5315_s7 = inlined_call_operand.hbm [shape: f32[2,8,16,16], index: 7, kind: output, shape index: {1}]  }
   0x1   :  { %15 = vsyncpa [#allocation3 + $0x1], 0  ;;  %s4740_s24 = smov 0   ;;  %s4742_s25 = smov 0  }
   0x2   :  { %s4744_s26 = smov 0   ;;  %s4746_s27 = smov 0  }
   0x3   :  { %s4748_s28 = smov 0   ;;  %s4750_s29 = smov 0  }
   0x4   :  { %s4752_s30 = smov 0   ;;  %s4754_s8 = smov 0  }
   0x5 LB: > { %5320 = sst [smem:[#allocation5_spill]] %s4652_s29  ;;  %s3853_s9 = sadd.s32 4294967295, %s4660_s8   ;;  %s4660_s8 = sphi %s4754_s8, %s21_s8   ;;  %s4656_s30 = sphi %s4752_s30, %s5329_s30   ;;  %s4652_s29 = sphi %s4750_s29, %s5328_s29   ;;  %s4648_s28 = sphi %s4748_s28, %s5327_s28   ;;  %s4644_s27 = sphi %s4746_s27, %s5326_s27   ;;  %s4640_s26 = sphi %s4744_s26, %s5332_s26   ;;  %s4636_s25 = sphi %s4742_s25, %s5331_s25   ;;  %s4632_s24 = sphi %s4740_s24, %s5330_s24  }
   0x6   : > { %5321 = sst [smem:[#allocation6_spill]] %s4656_s30  ;;  %s3854_s10 = sadd.s32 4294967294, %s4660_s8  }
   0x7   : > { %s30_s11 = sadd.s32 1, %s4652_s29  ;;  %s33_s12 = sadd.s32 1, %s4656_s30 }
   0x8   : > { %p31_p0 = scmp.ge.s32.totalorder %s30_s11, 8  ;;  %p246_p1 = scmp.ne.s32.totalorder %s4640_s26, %s4636_s25 }
   0x9   : > { %p247_p2 = scmp.eq.s32.totalorder %s3853_s9, 15  ;;  %p252_p5 = scmp.ne.s32.totalorder %s4636_s25, %s4632_s24 }
   0xa   : > { %s5334_s11 = smov (%p31_p0, %s30_s11), 0  ;;  %s5336_s12 = smov (!%p31_p0, %s33_s12), %s4656_s30 }
   0xb   : > { %5322 = sst [smem:[#allocation7_spill]] %s5334_s11  ;;  %s232_s13 = ssub.s32 %s4652_s29, %s5334_s11 }
   0xc   : > { %p4791_p3 = por %p247_p2, %p246_p1  ;;  %p35_p4 = scmp.ge.s32.totalorder %s5336_s12, 2 }
   0xd   : > { %p253_p6 = scmp.eq.s32.totalorder %s3854_s10, 15  ;;  %p3857_p7 = scmp.ge.s32.totalorder %s4660_s8, 1 }
   0xe   : > { %s5338_s12 = smov (%p35_p4, %s5336_s12), 0  ;;  %p337_p9 = scmp.lt.s32.totalorder %s4660_s8, 17 }
   0xf   : > { %5324 = sst [smem:[#allocation8_spill]] %s5338_s12  ;;  %p4800_p8 = por %p253_p6, %p252_p5 }
  0x10   : > { %s231_s16 = ssub.s32 %s4656_s30, %s5338_s12  ;;  %s236_s17 = sadd.s32 1, %s4640_s26 }
  0x11   : > { %s233_s18 = sor.u32 %s232_s13, %s231_s16  ;;  %p338_p10 = pnand %p3857_p7, %p337_p9 }
  0x12   : > { %p234_p11 = scmp.eq.s32.totalorder %s233_s18, 0  ;;  %p421_p12 = scmp.lt.s32.totalorder (!%p338_p10), %s4648_s28, 1  ;;  %v4662_v0 = vmov (!%p338_p10), 0.0   ;;  %vm4663_vm0 = vmmov (!%p338_p10), 0   ;;  %vm499_vm1 = vcmask (!%p338_p10), 31744   ;;  %vm547_vm2 = vcmask (!%p338_p10), 130048  }
  0x13   : > { %341 = sbr.rel (%p338_p10) target bundleno = 6502 (0x1966), region = 44  ;;  %p423_p13 = scmp.lt.s32.totalorder (!%p338_p10), %s4644_s27, 7  ;;  %4078 = vmatprep.subr.bf16.mxu1 (!%p338_p10), %v4662_v0  ;;  %4080 = vmatprep.mubr.msk.bf16.mxu1 (!%p338_p10), %vm4663_vm0, %v4662_v0  ;;  %vm2883_vm5 = vcmask (!%p338_p10), 1046528   ;;  %vm2905_vm6 = vcmask (!%p338_p10), 1045504   ;;  %vm2927_vm7 = vcmask (!%p338_p10), 1044480   ;;  %vm2949_vm8 = vcmask (!%p338_p10), 1043456  }
  0x14   : > { %s4809_s19 = scalar_select %p234_p11, %s4640_s26, %s236_s17  }
  0x15   : > { %4072 = vmatprep.subr.bf16.mxu0 (!%p338_p10), %v4662_v0  ;;  %4074 = vmatprep.mubr.msk.bf16.mxu0 (!%p338_p10), %vm4663_vm0, %v4662_v0  ;;  %vm2971_vm9 = vcmask (!%p338_p10), 1042432   ;;  %vm2993_vm10 = vcmask (!%p338_p10), 1041408   ;;  %vm3015_vm11 = vcmask (!%p338_p10), 1040384   ;;  %vm3560_vm12 = vcmask (!%p338_p10), 27648  }
  0x1a   : > { %s422_s20 = scalar_select %p421_p12, %s4648_s28, 1 }
  0x1b   : > { %s4821_s21 = scalar_select %p423_p13, %s4644_s27, 7 }
  0x1c   : > { %s3860_s22 = sshll.u32 %s422_s20, 4  ;;  %s4385_s23 = smul.u32 48, %s422_s20 }
  0x1d   : > { %s3859_s9 = sshll.u32 %s4821_s21, 1  ;;  %s4384_s10 = smul.u32 6, %s4821_s21 }
  0x1e   : > { %s427_s13 = sadd.s32 %s3860_s22, %s3859_s9  ;;  %s468_s12 = scalar_lea.vmem %s5313_s5, %s4821_s21 }
  0x1f   : > { %s4825_s16 = sshll.u32 %s427_s13, 2  ;;  %s4827_s17 = sadd.s32 %s4385_s23, %s4384_s10 }
  0x20   : > { %s465_s11 = scalar_lea.vmem %s5312_s4, %s4825_s16  ;;  %s456_s20 = scalar_lea.vmem %s5311_s3, %s4825_s16 }
  0x21   : > { %v4528_v1 = vld [vmem:[%s465_s11] sm:$0xff]   ;;  %s438_s22 = scalar_lea.vmem %s5309_s1, %s4825_s16  ;;  %s429_s23 = scalar_lea.vmem %s5308_s0, %s4825_s16 }
  0x22   : > { %v504_v2 = vsel %vm499_vm1, %v4528_v1, 0  ;;  %v4529_v3 = vld [vmem:[%s456_s20] sm:$0xff]   ;;  %s3865_s9 = sshll.u32 %s4827_s17, 2  ;;  %s418_s21 = sand.u32 1, %s4636_s25  }
  0x23   : > { %4079 = vmatpush3.bf16.xpose.msra.mxu1 %v504_v2  ;;  %4073 = vmatpush3.bf16.xpose.msra.mxu0 %v504_v2  ;;  %v4530_v4 = vld [vmem:[%s438_s22] sm:$0xff]   ;;  %v576_v13 = vsel %vm499_vm1, %v4529_v3, 0  ;;  %s5025_s18 = scalar_lea.vmem %s5310_s2, %s3865_s9  ;;  %s3940_s11 = sshll.u32 %s4644_s27, 1 }
  0x24   : > { %4090 = vmatprep.subr.bf16.mxu1 %v4662_v0  ;;  %4084 = vmatprep.subr.bf16.mxu0 %v4662_v0  ;;  %v4531_v5 = vld [vmem:[%s429_s23] sm:$0xff]   ;;  %v715_v6 = vsel %vm499_vm1, %v4530_v4, 0  ;;  %s3941_s22 = sshll.u32 %s4648_s28, 4  ;;  %s3858_s29 = sshll.u32 %s418_s21, 4 }
  0x25   : > { %s3631_s30 = sadd.s32 %s3941_s22, %s3940_s11  ;;  %s420_s23 = scalar_lea.vmem [#allocation2], %s3858_s29 }
  0x26   : > { %s3634_s9 = sshll.u32 %s420_s23, 4  ;;  %s3942_s10 = sshll.u32 %s3631_s30, 7  ;;  %s5235_s9 = int_to_ptr.vmem [resolvable:$true] %s3634_s9 }
  0x27   : > { %s5240_s13 = scalar_lea.hbm %s5315_s7, %s3942_s10  ;;  %s5247_s20 = scalar_lea.vmem %s5314_s6, %s4825_s16 }
  0x28   : > { %s4566_s11 = scalar_lea.vmem %s5235_s9, 256  ;;  %s4697_s16 = smov [#allocation2]  }
  0x29   : > { %p4567_p0 = scmp.ne.s32.totalorder %s5235_s9, %s4566_s11  ;;  %s4570_s22 = sshll.u32 %s4697_s16, 4  ;;  %s4571_s22 = int_to_ptr.vmem [resolvable:$false] %s4570_s22 }
  0x2a   : > { %4081 = vmatmul.mubr.msk.bf16.vlgmr.msra.gmra.mrb[0].mxu1 %vm499_vm1, %v4529_v3  ;;  %4075 = vmatmul.mubr.msk.bf16.vlgmr.msra.gmra.mrb[0].mxu0 %vm499_vm1, %v4531_v5  ;;  %s4572_s29 = scalar_lea.vmem %s4571_s22, 512  ;;  %p4573_p4 = scmp.lt.s32.totalorder %s5235_s9, %s4571_s22 }
  0x2b   : > { %4092 = vmatprep.mubr.msk.bf16.mxu1 %vm4663_vm0, %v4662_v0  ;;  %4091 = vmatpush3.bf16.xpose.msra.mxu1 %v715_v6  ;;  %p4568_p1 = pnand %p4567_p0, %p4791_p3  ;;  %p4574_p5 = scmp.lt.s32.totalorder %s4572_s29, %s4566_s11 }
  0x2c   : > { %4086 = vmatprep.mubr.msk.bf16.mxu0 %vm4663_vm0, %v4662_v0  ;;  %4085 = vmatpush3.bf16.xpose.msra.mxu0 %v576_v13 }
  0x2d   : > { %p4569_p2 = pneg %p4568_p1  ;;  %p4575_p6 = por %p4574_p5, %p4573_p4 }
  0x2f   : > { %p4576_p7 = pnand %p4575_p6, %p4569_p2 }
  0x32   : > { %4093 = vmatmul.mubr.msk.bf16.vlgmr.msra.gmra.mrb[4].mxu1 %vm499_vm1, %v4529_v3 }
  0x33   : > { %4087 = vmatmul.mubr.msk.bf16.vlgmr.msra.gmra.mrb[4].mxu0 %vm499_vm1, %v4528_v1 }
  0xfd   : > { %v612_v7 = vpop.f32.mrb[0].mxu1  ;;  %v4864_v26 = vpop.f32.mrb[0].mxu0 }
  0xfe   : > { %v4082_v8 = vpop.f32.mrb[1].mxu1  ;;  %v660_v9 = vsel %vm547_vm2, %v612_v7, -inf  ;;  %v4076_v27 = vpop.f32.mrb[1].mxu0 }
  0xff   : > { %661 = vmax.xlane.f32.xlu0 %v660_v9  ;;  %v615_v10 = vpop.f32.mrb[2].mxu1  ;;  %v4868_v30 = vpop.f32.mrb[2].mxu0 }
 0x100   : > { %v4083_v11 = vpop.f32.mrb[3].mxu1  ;;  %v663_v12 = vsel %vm547_vm2, %v615_v10, -inf  ;;  %v4077_v31 = vpop.f32.mrb[3].mxu0 }
 0x103   : > { %664 = vmax.xlane.f32.xlu0 %v663_v12 }
 0x105   : > { %v4862_v24 = vpop.f32.mrb[4].mxu1 }
 0x106   : > { %v4094_v25 = vpop.f32.mrb[5].mxu1  ;;  %v653_v32 = vpop.f32.mrb[4].mxu0  ;;  %v758_v11 = vsel %vm547_vm2, %v4862_v24, -inf }
 0x107   : > { %v4866_v28 = vpop.f32.mrb[6].mxu1  ;;  %v682_v33 = vsel %vm547_vm2, %v653_v32, -inf  ;;  %v4088_v34 = vpop.f32.mrb[5].mxu0 }
 0x108   : > { %v4095_v29 = vpop.f32.mrb[7].mxu1  ;;  %v656_v35 = vpop.f32.mrb[6].mxu0 }
 0x109   : > { %v683_v36 = vsel %vm547_vm2, %v656_v35, -inf  ;;  %v4089_v37 = vpop.f32.mrb[7].mxu0 }
 0x10a   : > { %v684_v38 = vmax.f32 %v682_v33, %v683_v36 }
 0x10c   : > { %v685_v39 = vrot.slane %v684_v38, 4 }
 0x10e   : > { %v686_v40 = vmax.f32 %v684_v38, %v685_v39 }
 0x110   : > { %v687_v41 = vrot.slane %v686_v40, 2 }
 0x112   : > { %v688_v42 = vmax.f32 %v686_v40, %v687_v41 }
 0x114   : > { %v689_v43 = vrot.slane %v688_v42, 1 }
 0x116   : > { %v690_v44 = vmax.f32 %v688_v42, %v689_v43 }
 0x118   : > { %v691_v45 = vsub.f32 %v653_v32, %v690_v44  ;;  %v692_v46 = vsub.f32 %v656_v35, %v690_v44 }
 0x11a   : > { %v693_v47 = vmul.f32 1.442695, %v691_v45  ;;  %v695_v48 = vmul.f32 1.442695, %v692_v46 }
 0x18c   : > { %v662_v14 = vpop.xlane.xlu0 %661 }
 0x18d   : > { %v666_v15 = vsub.f32 %v612_v7, %v662_v14  ;;  %v548_v14 = vsel %vm547_vm2, %v4864_v26, -inf }
 0x18f   : > { %v668_v16 = vmul.f32 1.442695, %v666_v15 }
 0x190   : > { %v665_v17 = vpop.xlane.xlu0 %664 }
 0x191   : > { %4534 = vpow2.f32 %v668_v16  ;;  %v667_v18 = vsub.f32 %v615_v10, %v665_v17 }
 0x193   : > { %v670_v19 = vmul.f32 1.442695, %v667_v18 }
 0x195   : > { %4536 = vpow2.f32 %v670_v19 }
 0x196   : > { %4538 = vpow2.f32 %v693_v47 }
 0x197   : > { %4540 = vpow2.f32 %v695_v48 }
 0x19b   : > { %v4535_v20 = vpop.eup %4534 }
 0x19c   : > { %v672_v21 = vsel %vm547_vm2, %v4535_v20, 0.0 }
 0x19d   : > { %673 = vadd.xlane.f32.xlu1 %v672_v21  ;;  %v551_v21 = vsel %vm547_vm2, %v4868_v30, -inf }
 0x19f   : > { %v4537_v22 = vpop.eup %4536 }
 0x1a0   : > { %v675_v23 = vsel %vm547_vm2, %v4537_v22, 0.0  ;;  %v4539_v49 = vpop.eup %4538 }
 0x1a1   : > { %676 = vadd.xlane.f32.xlu1 %v675_v23  ;;  %v4541_v50 = vpop.eup %4540  ;;  %v697_v51 = vsel %vm547_vm2, %v4539_v49, 0.0 }
 0x1a2   : > { %v698_v52 = vsel %vm547_vm2, %v4541_v50, 0.0 }
 0x1a3   : > { %v699_v53 = vadd.f32 %v698_v52, %v697_v51 }
 0x1a5   : > { %v700_v54 = vrot.slane %v699_v53, 4 }
 0x1a7   : > { %v701_v55 = vadd.f32 %v700_v54, %v699_v53 }
 0x1a9   : > { %v702_v56 = vrot.slane %v701_v55, 2 }
 0x1ab   : > { %v703_v57 = vadd.f32 %v702_v56, %v701_v55 }
 0x1ad   : > { %v704_v59 = vrot.slane %v703_v57, 1 }
 0x1af   : > { %v705_v61 = vadd.f32 %v704_v59, %v703_v57  ;;  %v780_v57 = vlaneseq }
 0x22a   : > { %v674_v58 = vpop.xlane.xlu1 %673 }
 0x22b   : > { %4542 = vrcp.f32 %v674_v58  ;;  %v781_v58 = vshrl.u32 %v780_v57, 7 }
 0x22d   : > { %v782_v59 = vadd.s32 8, %v781_v58 }
 0x22e   : > { %v677_v60 = vpop.xlane.xlu1 %676 }
 0x22f   : > { %4544 = vrcp.f32 %v677_v60  ;;  %v784_v60 = vand.u32 127, %v780_v57 }
 0x230   : > { %4546 = vrcp.f32 %v705_v61 }
 0x231   : > { %vm786_vm3 = vcmp.eq.s32.totalorder %v782_v59, %v784_v60  ;;  %vm785_vm4 = vcmp.eq.s32.totalorder %v781_v58, %v784_v60 }
 0x232   : > { %v788_v61 = vsel %vm786_vm3, 1.0, %v4662_v0 }
 0x235   : > { %v4543_v62 = vpop.eup %4542 }
 0x236   : > { %v4874_v63 = vmul.f32 %v4543_v62, %v4535_v20  ;;  %v761_v20 = vsel %vm547_vm2, %v4866_v28, -inf  ;;  %v787_v62 = vsel %vm785_vm4, 1.0, %v4662_v0 }
 0x238   : > { %4100 = vmatprep.mubr.msk.f32.mxu0 %vm547_vm2, %v4874_v63  ;;  %v795_v1 = vand.u32 2147483647, %v4874_v63 }
 0x239   : > { %v4545_v2 = vpop.eup %4544 }
 0x23a   : > { %v4879_v3 = vmul.f32 %v4545_v2, %v4537_v22  ;;  %v797_v4 = vsel %vm547_vm2, %v795_v1, 0.0  ;;  %v4547_v5 = vpop.eup %4546  ;;  %v4917_v1 = vmul.f32 7.0, %v788_v61  ;;  %v4919_v2 = vmul.f32 7.0, %v787_v62 }
 0x23b   : > { %798 = vadd.xlane.f32.xlu0 %v797_v4  ;;  %v707_v7 = vmul.f32 %v4547_v5, %v4539_v49  ;;  %v708_v8 = vmul.f32 %v4547_v5, %v4541_v50 }
 0x23c   : > { %v796_v6 = vand.u32 2147483647, %v4879_v3 }
 0x23e   : > { %v800_v9 = vsel %vm547_vm2, %v796_v6, 0.0 }
 0x23f   : > { %801 = vadd.xlane.f32.xlu1 %v800_v9  ;;  %v803_v10 = vadd.f32 %v800_v9, %v797_v4  ;;  %v4927_v9 = vmul.f32 15.0, %v788_v61 }
 0x241   : > { %v804_v12 = vrot.slane %v803_v10, 4 }
 0x243   : > { %v805_v13 = vadd.f32 %v804_v12, %v803_v10  ;;  %759 = vmax.xlane.f32.xlu1 %v758_v11  ;;  %v4929_v10 = vmul.f32 15.0, %v787_v62 }
 0x245   : > { %v806_v15 = vrot.slane %v805_v13, 2 }
 0x247   : > { %549 = vmax.xlane.f32.xlu1 %v548_v14  ;;  %v807_v16 = vadd.f32 %v806_v15, %v805_v13 }
 0x249   : > { %v808_v17 = vrot.slane %v807_v16, 1 }
 0x24b   : > { %v809_v18 = vadd.f32 %v808_v17, %v807_v16  ;;  %v4936_v16 = vmul.f32 13.0, %v788_v61  ;;  %v4938_v17 = vmul.f32 13.0, %v787_v62 }
 0x24d   : > { %v817_v19 = vsel %vm547_vm2, %v809_v18, -inf }
 0x24e   : > { %818 = vmax.xlane.f32.xlu0 %v817_v19 }
 0x252   : > { %762 = vmax.xlane.f32.xlu0 %v761_v20 }
 0x256   : > { %552 = vmax.xlane.f32.xlu0 %v551_v21 }
 0x2c8   : > { %v799_v22 = vpop.xlane.xlu0 %798 }
 0x2cc   : > { %v802_v23 = vpop.xlane.xlu1 %801 }
 0x2cd   : > { %v810_v25 = vmax.f32 %v799_v22, %v802_v23 }
 0x2cf   : > { %v811_v27 = vrot.slane %v810_v25, 4 }
 0x2d0   : > { %v760_v29 = vpop.xlane.xlu1 %759 }
 0x2d1   : > { %v812_v31 = vmax.f32 %v810_v25, %v811_v27  ;;  %v764_v32 = vsub.f32 %v4862_v24, %v760_v29 }
 0x2d3   : > { %v813_v33 = vrot.slane %v812_v31, 2  ;;  %v766_v34 = vmul.f32 1.442695, %v764_v32 }
 0x2d4   : > { %v550_v35 = vpop.xlane.xlu1 %549 }
 0x2d5   : > { %4548 = vpow2.f32 %v766_v34  ;;  %v554_v36 = vsub.f32 %v4864_v26, %v550_v35  ;;  %v814_v37 = vmax.f32 %v812_v31, %v813_v33 }
 0x2d7   : > { %v556_v38 = vmul.f32 1.442695, %v554_v36  ;;  %v815_v39 = vrot.slane %v814_v37, 1 }
 0x2d9   : > { %4550 = vpow2.f32 %v556_v38  ;;  %v816_v40 = vmax.f32 %v814_v37, %v815_v39 }
 0x2db   : > { %v819_v41 = vpop.xlane.xlu0 %818 }
 0x2dc   : > { %v820_v42 = vmul.f32 %v819_v41, %v816_v40 }
 0x2de   : > { %4552 = vrcp.f32 %v820_v42 }
 0x2df   : > { %v4895_v43 = vpop.eup %4548  ;;  %v763_v44 = vpop.xlane.xlu0 %762 }
 0x2e0   : > { %v765_v45 = vsub.f32 %v4866_v28, %v763_v44  ;;  %v770_v24 = vsel %vm547_vm2, %v4895_v43, 0.0 }
 0x2e1   : > { %771 = vadd.xlane.f32.xlu1 %v770_v24 }
 0x2e2   : > { %v768_v46 = vmul.f32 1.442695, %v765_v45 }
 0x2e3   : > { %v4900_v47 = vpop.eup %4550  ;;  %v553_v26 = vpop.xlane.xlu0 %552 }
 0x2e4   : > { %4554 = vpow2.f32 %v768_v46  ;;  %v555_v48 = vsub.f32 %v4868_v30, %v553_v26  ;;  %v560_v49 = vsel %vm547_vm2, %v4900_v47, 0.0 }
 0x2e5   : > { %561 = vadd.xlane.f32.xlu1 %v560_v49 }
 0x2e6   : > { %v558_v50 = vmul.f32 1.442695, %v555_v48 }
 0x2e8   : > { %v4553_v51 = vpop.eup %4552  ;;  %4556 = vpow2.f32 %v558_v50 }
 0x2e9   : > { %v822_v52 = vmul.f32 %v4553_v51, %v707_v7  ;;  %v823_v28 = vmul.f32 %v4553_v51, %v708_v8 }
 0x2eb   : > { %v4288_v53 = vpack.c.bf16 %v823_v28, %v822_v52 }
 0x2ed   : > { %4289 = vmatprep.subr.bf16.mxu0 %v4288_v53 }
 0x2ee   : > { %v4905_v54 = vpop.eup %4554  ;;  %4291 = vmatpush3.bf16.msra.mxu0 %v4288_v53 }
 0x2ef   : > { %v773_v55 = vsel %vm547_vm2, %v4905_v54, 0.0 }
 0x2f0   : > { %774 = vadd.xlane.f32.xlu0 %v773_v55 }
 0x2f1   : > { %4101 = vmatmul.mubr.msk.f32.vlgmr.msra.gmra.mrb[8].mxu0 %vm547_vm2, %v4879_v3 }
 0x2f2   : > { %v4911_v30 = vpop.eup %4556 }
 0x2f3   : > { %v563_v56 = vsel %vm547_vm2, %v4911_v30, 0.0 }
 0x2f4   : > { %564 = vadd.xlane.f32.xlu0 %v563_v56 }
 0x3c4   : > { %v4102_v4 = vpop.f32.mrb[8].mxu0 }
 0x3c5   : > { %v906_v5 = vsub.f32 %v4917_v1, %v4102_v4  ;;  %v896_v6 = vpop.f32.mrb[9].mxu0 }
 0x3c6   : > { %v905_v7 = vsub.f32 %v4919_v2, %v896_v6  ;;  %4107 = vmatprep.mubr.msk.f32.mxu1 %vm547_vm2, %v896_v6  ;;  %4114 = vmatprep.mubr.msk.f32.mxu0 %vm547_vm2, %v896_v6 }
 0x3c8   : > { %v4292_v8 = vpack.c.bf16 %v906_v5, %v905_v7 }
 0x3ca   : > { %4293 = vmatprep.subr.bf16.mxu1 %v4292_v8 }
 0x3cb   : > { %4295 = vmatpush3.bf16.msra.mxu1 %v4292_v8 }
 0x3ce   : > { %4108 = vmatmul.mubr.msk.f32.vlgmr.msra.gmra.mrb[8].mxu1 %vm547_vm2, %v4102_v4 }
 0x3cf   : > { %4121 = vmatprep.mubr.msk.f32.mxu1 %vm547_vm2, %v822_v52 }
 0x4a1   : > { %v4109_v11 = vpop.f32.mrb[8].mxu1 }
 0x4a2   : > { %v989_v12 = vsub.f32 %v4927_v9, %v4109_v11  ;;  %v979_v13 = vpop.f32.mrb[9].mxu1 }
 0x4a3   : > { %v988_v14 = vsub.f32 %v4929_v10, %v979_v13 }
 0x4a5   : > { %v4296_v15 = vpack.c.bf16 %v989_v12, %v988_v14 }
 0x4a7   : > { %4297 = vmatprep.subr.bf16.mxu0 %v4296_v15 }
 0x4a8   : > { %4299 = vmatpush3.bf16.msra.mxu0 %v4296_v15 }
 0x4ab   : > { %4115 = vmatmul.mubr.msk.f32.vlgmr.msra.gmra.mrb[10].mxu0 %vm547_vm2, %v4102_v4 }
 0x4ac   : > { %4128 = vmatprep.mubr.msk.f32.mxu0 %vm547_vm2, %v4874_v63 }
 0x57e   : > { %v4116_v18 = vpop.f32.mrb[10].mxu0 }
 0x57f   : > { %v1066_v19 = vsub.f32 %v4936_v16, %v4116_v18  ;;  %v1056_v20 = vpop.f32.mrb[11].mxu0 }
 0x580   : > { %v1065_v21 = vsub.f32 %v4938_v17, %v1056_v20 }
 0x582   : > { %v4300_v22 = vpack.c.bf16 %v1066_v19, %v1065_v21 }
 0x584   : > { %4301 = vmatprep.subr.bf16.mxu1 %v4300_v22 }
 0x585   : > { %4303 = vmatpush3.bf16.msra.mxu1 %v4300_v22 }
 0x588   : > { %4122 = vmatmul.mubr.msk.f32.vlgmr.msra.gmra.mrb[10].mxu1 %vm547_vm2, %v823_v28 }
 0x65b   : > { %v4123_v23 = vpop.f32.mrb[10].mxu1 }
 0x65c   : > { %v1149_v25 = vmul.f32 0.25, %v4123_v23  ;;  %v1139_v27 = vpop.f32.mrb[11].mxu1 }
 0x65d   : > { %v1148_v29 = vmul.f32 0.25, %v1139_v27 }
 0x65f   : > { %v4304_v31 = vpack.c.bf16 %v1149_v25, %v1148_v29 }
 0x661   : > { %4305 = vmatprep.subr.bf16.mxu0 %v4304_v31 }
 0x662   : > { %4307 = vmatpush3.bf16.msra.mxu0 %v4304_v31 }
 0x665   : > { %4129 = vmatmul.mubr.msk.f32.vlgmr.msra.gmra.mrb[12].mxu0 %vm547_vm2, %v4879_v3 }
 0x738   : > { %v4130_v32 = vpop.f32.mrb[12].mxu0 }
 0x739   : > { %v1226_v33 = vsub.f32 %v4917_v1, %v4130_v32  ;;  %v1216_v34 = vpop.f32.mrb[13].mxu0 }
 0x73a   : > { %v1225_v35 = vsub.f32 %v4919_v2, %v1216_v34  ;;  %4135 = vmatprep.mubr.msk.f32.mxu1 %vm547_vm2, %v1216_v34  ;;  %4142 = vmatprep.mubr.msk.f32.mxu0 %vm547_vm2, %v1216_v34 }
 0x73c   : > { %v4308_v36 = vpack.c.bf16 %v1226_v33, %v1225_v35 }
 0x73e   : > { %4309 = vmatprep.subr.bf16.mxu1 %v4308_v36 }
 0x73f   : > { %4311 = vmatpush3.bf16.msra.mxu1 %v4308_v36 }
 0x742   : > { %4136 = vmatmul.mubr.msk.f32.vlgmr.msra.gmra.mrb[12].mxu1 %vm547_vm2, %v4130_v32 }
 0x743   : > { %4149 = vmatprep.mubr.msk.f32.mxu1 %vm547_vm2, %v1148_v29 }
 0x815   : > { %v4137_v37 = vpop.f32.mrb[12].mxu1 }
 0x816   : > { %v1309_v38 = vsub.f32 %v4927_v9, %v4137_v37  ;;  %v1299_v39 = vpop.f32.mrb[13].mxu1 }
 0x817   : > { %v1308_v40 = vsub.f32 %v4929_v10, %v1299_v39 }
 0x819   : > { %v4312_v41 = vpack.c.bf16 %v1309_v38, %v1308_v40 }
 0x81b   : > { %4313 = vmatprep.subr.bf16.mxu0 %v4312_v41 }
 0x81c   : > { %4315 = vmatpush3.bf16.msra.mxu0 %v4312_v41 }
 0x81f   : > { %4143 = vmatmul.mubr.msk.f32.vlgmr.msra.gmra.mrb[14].mxu0 %vm547_vm2, %v4130_v32 }
 0x820   : > { %4156 = vmatprep.mubr.msk.f32.mxu0 %vm547_vm2, %v4874_v63 }
 0x8f2   : > { %v4144_v42 = vpop.f32.mrb[14].mxu0 }
 0x8f3   : > { %v1386_v44 = vsub.f32 %v4936_v16, %v4144_v42  ;;  %v1376_v45 = vpop.f32.mrb[15].mxu0 }
 0x8f4   : > { %v1385_v24 = vsub.f32 %v4938_v17, %v1376_v45 }
 0x8f6   : > { %v4316_v46 = vpack.c.bf16 %v1386_v44, %v1385_v24 }
 0x8f8   : > { %4317 = vmatprep.subr.bf16.mxu1 %v4316_v46 }
 0x8f9   : > { %4319 = vmatpush3.bf16.msra.mxu1 %v4316_v46 }
 0x8fc   : > { %4150 = vmatmul.mubr.msk.f32.vlgmr.msra.gmra.mrb[14].mxu1 %vm547_vm2, %v1149_v25 }
 0x9cf   : > { %v4151_v26 = vpop.f32.mrb[14].mxu1 }
 0x9d0   : > { %v1469_v48 = vmul.f32 0.25, %v4151_v26  ;;  %v1459_v49 = vpop.f32.mrb[15].mxu1 }
 0x9d1   : > { %v1468_v50 = vmul.f32 0.25, %v1459_v49 }
 0x9d3   : > { %v4320_v51 = vpack.c.bf16 %v1469_v48, %v1468_v50 }
 0x9d5   : > { %4321 = vmatprep.subr.bf16.mxu0 %v4320_v51 }
 0x9d6   : > { %4323 = vmatpush3.bf16.msra.mxu0 %v4320_v51 }
 0x9d9   : > { %4157 = vmatmul.mubr.msk.f32.vlgmr.msra.gmra.mrb[16].mxu0 %vm547_vm2, %v4879_v3 }
 0xaac   : > { %v4158_v52 = vpop.f32.mrb[16].mxu0 }
 0xaad   : > { %v1546_v28 = vsub.f32 %v4917_v1, %v4158_v52  ;;  %v1536_v53 = vpop.f32.mrb[17].mxu0 }
 0xaae   : > { %v1545_v55 = vsub.f32 %v4919_v2, %v1536_v53  ;;  %4163 = vmatprep.mubr.msk.f32.mxu1 %vm547_vm2, %v1536_v53  ;;  %4170 = vmatprep.mubr.msk.f32.mxu0 %vm547_vm2, %v1536_v53 }
 0xab0   : > { %v4324_v56 = vpack.c.bf16 %v1546_v28, %v1545_v55 }
 0xab2   : > { %4325 = vmatprep.subr.bf16.mxu1 %v4324_v56 }
 0xab3   : > { %4327 = vmatpush3.bf16.msra.mxu1 %v4324_v56 }
 0xab6   : > { %4164 = vmatmul.mubr.msk.f32.vlgmr.msra.gmra.mrb[16].mxu1 %vm547_vm2, %v4158_v52 }
 0xab7   : > { %4177 = vmatprep.mubr.msk.f32.mxu1 %vm547_vm2, %v1468_v50 }
 0xb89   : > { %v4165_v57 = vpop.f32.mrb[16].mxu1 }
 0xb8a   : > { %v1629_v58 = vsub.f32 %v4927_v9, %v4165_v57  ;;  %v1619_v59 = vpop.f32.mrb[17].mxu1 }
 0xb8b   : > { %v1628_v60 = vsub.f32 %v4929_v10, %v1619_v59 }
 0xb8d   : > { %v4328_v61 = vpack.c.bf16 %v1629_v58, %v1628_v60 }
 0xb8f   : > { %4329 = vmatprep.subr.bf16.mxu0 %v4328_v61 }
 0xb90   : > { %4331 = vmatpush3.bf16.msra.mxu0 %v4328_v61 }
 0xb93   : > { %4171 = vmatmul.mubr.msk.f32.vlgmr.msra.gmra.mrb[18].mxu0 %vm547_vm2, %v4158_v52 }
 0xb94   : > { %4184 = vmatprep.mubr.msk.f32.mxu0 %vm547_vm2, %v4874_v63 }
 0xc66   : > { %v4172_v62 = vpop.f32.mrb[18].mxu0 }
 0xc67   : > { %v1706_v4 = vsub.f32 %v4936_v16, %v4172_v62  ;;  %v1696_v5 = vpop.f32.mrb[19].mxu0 }
 0xc68   : > { %v1705_v6 = vsub.f32 %v4938_v17, %v1696_v5 }
 0xc6a   : > { %v4332_v7 = vpack.c.bf16 %v1706_v4, %v1705_v6 }
 0xc6c   : > { %4333 = vmatprep.subr.bf16.mxu1 %v4332_v7 }
 0xc6d   : > { %4335 = vmatpush3.bf16.msra.mxu1 %v4332_v7 }
 0xc70   : > { %4178 = vmatmul.mubr.msk.f32.vlgmr.msra.gmra.mrb[18].mxu1 %vm547_vm2, %v1469_v48 }
 0xd43   : > { %v4179_v8 = vpop.f32.mrb[18].mxu1 }
 0xd44   : > { %v1789_v11 = vmul.f32 0.25, %v4179_v8  ;;  %v1779_v12 = vpop.f32.mrb[19].mxu1 }
 0xd45   : > { %v1788_v13 = vmul.f32 0.25, %v1779_v12 }
 0xd47   : > { %v4336_v14 = vpack.c.bf16 %v1789_v11, %v1788_v13 }
 0xd49   : > { %4337 = vmatprep.subr.bf16.mxu0 %v4336_v14 }
 0xd4a   : > { %4339 = vmatpush3.bf16.msra.mxu0 %v4336_v14 }
 0xd4d   : > { %4185 = vmatmul.mubr.msk.f32.vlgmr.msra.gmra.mrb[20].mxu0 %vm547_vm2, %v4879_v3 }
 0xe20   : > { %v4186_v15 = vpop.f32.mrb[20].mxu0 }
 0xe21   : > { %v1866_v18 = vsub.f32 %v4917_v1, %v4186_v15  ;;  %v1856_v19 = vpop.f32.mrb[21].mxu0 }
 0xe22   : > { %v1865_v20 = vsub.f32 %v4919_v2, %v1856_v19  ;;  %4191 = vmatprep.mubr.msk.f32.mxu1 %vm547_vm2, %v1856_v19  ;;  %4198 = vmatprep.mubr.msk.f32.mxu0 %vm547_vm2, %v1856_v19 }
 0xe24   : > { %v4340_v21 = vpack.c.bf16 %v1866_v18, %v1865_v20  ;;  %v5030_v18 = vld [vmem:[%s5025_s18 + $0x8] sm:$0xff]  }
 0xe26   : > { %4341 = vmatprep.subr.bf16.mxu1 %v4340_v21 }
 0xe27   : > { %4343 = vmatpush3.bf16.msra.mxu1 %v4340_v21 }
 0xe2a   : > { %4192 = vmatmul.mubr.msk.f32.vlgmr.msra.gmra.mrb[20].mxu1 %vm547_vm2, %v4186_v15 }
 0xe2b   : > { %4205 = vmatprep.mubr.msk.f32.mxu1 %vm547_vm2, %v1788_v13 }
 0xefd   : > { %v4193_v22 = vpop.f32.mrb[20].mxu1 }
 0xefe   : > { %v1949_v23 = vsub.f32 %v4927_v9, %v4193_v22  ;;  %v1939_v25 = vpop.f32.mrb[21].mxu1  ;;  %v4666_v22 = vmov 2  }
 0xeff   : > { %v1948_v27 = vsub.f32 %v4929_v10, %v1939_v25  ;;  %v4668_v25 = vmov 3  }
 0xf01   : > { %v4344_v29 = vpack.c.bf16 %v1949_v23, %v1948_v27  ;;  %v4667_v23 = vmov 10   ;;  %v4669_v27 = vmov 13  }
 0xf03   : > { %4345 = vmatprep.subr.bf16.mxu0 %v4344_v29 }
 0xf04   : > { %4347 = vmatpush3.bf16.msra.mxu0 %v4344_v29  ;;  %v4670_v29 = vmov 4  }
 0xf07   : > { %4199 = vmatmul.mubr.msk.f32.vlgmr.msra.gmra.mrb[22].mxu0 %vm547_vm2, %v4186_v15 }
 0xf08   : > { %4212 = vmatprep.mubr.msk.f32.mxu0 %vm547_vm2, %v4874_v63 }
 0xfda   : > { %v4200_v31 = vpop.f32.mrb[22].mxu0 }
 0xfdb   : > { %v2026_v32 = vsub.f32 %v4936_v16, %v4200_v31  ;;  %v2016_v33 = vpop.f32.mrb[23].mxu0  ;;  %v4671_v31 = vmov 5  }
 0xfdc   : > { %v2025_v34 = vsub.f32 %v4938_v17, %v2016_v33  ;;  %v4673_v33 = vmov 7  }
 0xfde   : > { %v4348_v35 = vpack.c.bf16 %v2026_v32, %v2025_v34  ;;  %v4672_v32 = vmov 6   ;;  %v4674_v34 = vmov 9  }
 0xfe0   : > { %4349 = vmatprep.subr.bf16.mxu1 %v4348_v35 }
 0xfe1   : > { %4351 = vmatpush3.bf16.msra.mxu1 %v4348_v35  ;;  %v4675_v35 = vmov 8  }
 0xfe4   : > { %4206 = vmatmul.mubr.msk.f32.vlgmr.msra.gmra.mrb[22].mxu1 %vm547_vm2, %v1789_v11  ;;  %v775_v11 = vpop.xlane.xlu0 %774 }
0x10b7   : > { %v4207_v36 = vpop.f32.mrb[22].mxu1 }
0x10b8   : > { %v2109_v37 = vmul.f32 0.25, %v4207_v36  ;;  %v2099_v38 = vpop.f32.mrb[23].mxu1  ;;  %v4676_v36 = vmov 11  }
0x10b9   : > { %v2108_v39 = vmul.f32 0.25, %v2099_v38  ;;  %v4678_v38 = vmov 14  }
0x10bb   : > { %v4352_v40 = vpack.c.bf16 %v2109_v37, %v2108_v39 }
0x10bd   : > { %4353 = vmatprep.subr.bf16.mxu0 %v4352_v40 }
0x10be   : > { %4355 = vmatpush3.bf16.msra.mxu0 %v4352_v40  ;;  %v4680_v40 = vmov 16  }
0x10c1   : > { %4213 = vmatmul.mubr.msk.f32.vlgmr.msra.gmra.mrb[24].mxu0 %vm547_vm2, %v4879_v3 }
0x1194   : > { %v4214_v41 = vpop.f32.mrb[24].mxu0 }
0x1195   : > { %v2186_v42 = vsub.f32 %v4917_v1, %v4214_v41  ;;  %v2176_v44 = vpop.f32.mrb[25].mxu0 }
0x1196   : > { %v2185_v45 = vsub.f32 %v4919_v2, %v2176_v44  ;;  %4219 = vmatprep.mubr.msk.f32.mxu1 %vm547_vm2, %v2176_v44  ;;  %4226 = vmatprep.mubr.msk.f32.mxu0 %vm547_vm2, %v2176_v44  ;;  %v4683_v44 = vmov 21  }
0x1198   : > { %v4356_v24 = vpack.c.bf16 %v2186_v42, %v2185_v45  ;;  %v4682_v42 = vmov 20   ;;  %v565_v45 = vpop.xlane.xlu0 %564 }
0x119a   : > { %4357 = vmatprep.subr.bf16.mxu1 %v4356_v24 }
0x119b   : > { %4359 = vmatpush3.bf16.msra.mxu1 %v4356_v24 }
0x119e   : > { %4220 = vmatmul.mubr.msk.f32.vlgmr.msra.gmra.mrb[24].mxu1 %vm547_vm2, %v4214_v41 }
0x119f   : > { %4233 = vmatprep.mubr.msk.f32.mxu1 %vm547_vm2, %v2108_v39  ;;  %v4679_v39 = vmov 15  }
0x1271   : > { %v4221_v46 = vpop.f32.mrb[24].mxu1 }
0x1272   : > { %v2269_v26 = vsub.f32 %v4927_v9, %v4221_v46  ;;  %v2259_v48 = vpop.f32.mrb[25].mxu1 }
0x1273   : > { %v2268_v49 = vsub.f32 %v4929_v10, %v2259_v48 }
0x1275   : > { %v4360_v50 = vpack.c.bf16 %v2269_v26, %v2268_v49 }
0x1277   : > { %4361 = vmatprep.subr.bf16.mxu0 %v4360_v50 }
0x1278   : > { %4363 = vmatpush3.bf16.msra.mxu0 %v4360_v50 }
0x127b   : > { %4227 = vmatmul.mubr.msk.f32.vlgmr.msra.gmra.mrb[26].mxu0 %vm547_vm2, %v4214_v41  ;;  %v4681_v41 = vmov 18  }
0x127c   : > { %4240 = vmatprep.mubr.msk.f32.mxu0 %vm547_vm2, %v4874_v63 }
0x134e   : > { %v4228_v51 = vpop.f32.mrb[26].mxu0 }
0x134f   : > { %v2346_v52 = vsub.f32 %v4936_v16, %v4228_v51  ;;  %v2336_v28 = vpop.f32.mrb[27].mxu0 }
0x1350   : > { %v2345_v53 = vsub.f32 %v4938_v17, %v2336_v28 }
0x1352   : > { %v4364_v55 = vpack.c.bf16 %v2346_v52, %v2345_v53 }
0x1354   : > { %4365 = vmatprep.subr.bf16.mxu1 %v4364_v55 }
0x1355   : > { %4367 = vmatpush3.bf16.msra.mxu1 %v4364_v55 }
0x1358   : > { %4234 = vmatmul.mubr.msk.f32.vlgmr.msra.gmra.mrb[26].mxu1 %vm547_vm2, %v2109_v37  ;;  %v4677_v37 = vmov 12  }
0x142b   : > { %v4235_v56 = vpop.f32.mrb[26].mxu1 }
0x142c   : > { %v2429_v57 = vmul.f32 0.25, %v4235_v56  ;;  %v2419_v58 = vpop.f32.mrb[27].mxu1 }
0x142d   : > { %v2428_v59 = vmul.f32 0.25, %v2419_v58 }
0x142f   : > { %v4368_v60 = vpack.c.bf16 %v2429_v57, %v2428_v59 }
0x1431   : > { %4369 = vmatprep.subr.bf16.mxu0 %v4368_v60 }
0x1432   : > { %4371 = vmatpush3.bf16.msra.mxu0 %v4368_v60 }
0x1435   : > { %4241 = vmatmul.mubr.msk.f32.vlgmr.msra.gmra.mrb[28].mxu0 %vm547_vm2, %v4879_v3 }
0x1508   : > { %v4242_v63 = vpop.f32.mrb[28].mxu0 }
0x1509   : > { %v2506_v61 = vsub.f32 %v4917_v1, %v4242_v63  ;;  %v2496_v62 = vpop.f32.mrb[29].mxu0 }
0x150a   : > { %v2505_v4 = vsub.f32 %v4919_v2, %v2496_v62  ;;  %4247 = vmatprep.mubr.msk.f32.mxu1 %vm547_vm2, %v2496_v62  ;;  %4254 = vmatprep.mubr.msk.f32.mxu0 %vm547_vm2, %v2496_v62  ;;  %v772_v2 = vpop.xlane.xlu1 %771  ;;  %v4688_v62 = vmov 22  }
0x150b   : > { %4558 = vrcp.f32 %v772_v2 }
0x150c   : > { %v4372_v5 = vpack.c.bf16 %v2506_v61, %v2505_v4  ;;  %4560 = vrcp.f32 %v775_v11  ;;  %v4687_v61 = vmov 25   ;;  %v4690_v4 = vmov 24  }
0x150d   : > { %4562 = vrcp.f32 %v565_v45 }
0x150e   : > { %4373 = vmatprep.subr.bf16.mxu1 %v4372_v5  ;;  %v562_v24 = vpop.xlane.xlu1 %561 }
0x150f   : > { %4375 = vmatpush3.bf16.msra.mxu1 %v4372_v5  ;;  %4564 = vrcp.f32 %v562_v24  ;;  %v4691_v5 = vmov 27  }
0x1512   : > { %4248 = vmatmul.mubr.msk.f32.vlgmr.msra.gmra.mrb[28].mxu1 %vm547_vm2, %v4242_v63 }
0x1513   : > { %4261 = vmatprep.mubr.msk.f32.mxu1 %vm547_vm2, %v2428_v59 }
0x1515   : > { %v4559_v14 = vpop.eup %4558 }
0x1516   : > { %v4561_v19 = vpop.eup %4560  ;;  %v778_v20 = vmul.f32 %v4559_v14, %v4895_v43  ;;  %v5047_v43 = vld [vmem:[%s468_s12] ss:$0 sm:$0xff]  ;;  %s5252_s12 = scalar_lea.sflag [#allocation3], %s418_s21 }
0x1517   : > { %v779_v21 = vmul.f32 %v4561_v19, %v4905_v54  ;;  %v4664_v54 = vmov 0   ;;  %v4563_v46 = vpop.eup %4562 }
0x1518   : > { %4494 = vset.pattern.permute.xlu1 %v4664_v54  ;;  %v569_v52 = vmul.f32 %v4563_v46, %v4911_v30  ;;  %v4685_v30 = vmov 23  }
0x1519   : > { %2860 = vperm.xlu1 %4494, %v5047_v43   ;;  %v4565_v50 = vpop.eup %4564 }
0x151a   : > { %v568_v55 = vmul.f32 %v4565_v50, %v4900_v47  ;;  %v4686_v47 = vmov 19  }
0x151c   : > { %v2750_v60 = vpack.c.bf16 %v569_v52, %v568_v55 }
0x151d   : > { %4496 = vset.pattern.permute.xlu1 %v4666_v22 }
0x151e   : > { %2896 = vperm.xlu1 %4496, %v5047_v43  }
0x1522   : > { %4497 = vset.pattern.permute.xlu1 %v4668_v25 }
0x1523   : > { %2918 = vperm.xlu1 %4497, %v5047_v43  }
0x1527   : > { %4498 = vset.pattern.permute.xlu1 %v4670_v29 }
0x1528   : > { %2940 = vperm.xlu1 %4498, %v5047_v43  }
0x152c   : > { %4499 = vset.pattern.permute.xlu1 %v4671_v31 }
0x152d   : > { %2962 = vperm.xlu1 %4499, %v5047_v43  }
0x1531   : > { %4500 = vset.pattern.permute.xlu1 %v4672_v32 }
0x1532   : > { %2984 = vperm.xlu1 %4500, %v5047_v43  }
0x1536   : > { %4501 = vset.pattern.permute.xlu1 %v4673_v33  ;;  %v2915_v33 = vld [vmem:[%s5025_s18 + $0x8] sm:$0x3] }
0x1537   : > { %3006 = vperm.xlu1 %4501, %v5047_v43  }
0x153b   : > { %4502 = vset.pattern.permute.xlu1 %v4674_v34 }
0x153c   : > { %3039 = vperm.xlu1 %4502, %v5047_v43  }
0x1540   : > { %4503 = vset.pattern.permute.xlu1 %v4675_v35 }
0x1541   : > { %3026 = vperm.xlu1 %4503, %v5047_v43  }
0x1545   : > { %4505 = vset.pattern.permute.xlu1 %v4676_v36  ;;  %v2937_v36 = vld [vmem:[%s5025_s18] sm:$0xc] }
0x1546   : > { %3081 = vperm.xlu1 %4505, %v5047_v43   ;;  %v2938_v46 = vunpack.c.l.bf16 %v2937_v36 }
0x154a   : > { %4506 = vset.pattern.permute.xlu1 %v4677_v37 }
0x154b   : > { %3102 = vperm.xlu1 %4506, %v5047_v43  }
0x154f   : > { %4508 = vset.pattern.permute.xlu1 %v4678_v38 }
0x1550   : > { %3144 = vperm.xlu1 %4508, %v5047_v43  }
0x1554   : > { %4509 = vset.pattern.permute.xlu1 %v4679_v39  ;;  %v2916_v39 = vunpack.c.l.bf16 %v2915_v33 }
0x1555   : > { %3164 = vperm.xlu1 %4509, %v5047_v43  }
0x1559   : > { %4511 = vset.pattern.permute.xlu1 %v4680_v40 }
0x155a   : > { %3183 = vperm.xlu1 %4511, %v5047_v43  }
0x155e   : > { %4512 = vset.pattern.permute.xlu1 %v4681_v41 }
0x155f   : > { %3218 = vperm.xlu1 %4512, %v5047_v43  }
0x1563   : > { %4514 = vset.pattern.permute.xlu1 %v4682_v42 }
0x1564   : > { %3260 = vperm.xlu1 %4514, %v5047_v43  }
0x1568   : > { %4515 = vset.pattern.permute.xlu1 %v4683_v44 }
0x1569   : > { %3281 = vperm.xlu1 %4515, %v5047_v43  }
0x156d   : > { %4517 = vset.pattern.permute.xlu1 %v4685_v30 }
0x156e   : > { %3323 = vperm.xlu1 %4517, %v5047_v43  }
0x1572   : > { %4518 = vset.pattern.permute.xlu1 %v4687_v61 }
0x1573   : > { %3356 = vperm.xlu1 %4518, %v5047_v43  }
0x15e5   : > { %v4249_v6 = vpop.f32.mrb[28].mxu1 }
0x15e6   : > { %v2589_v3 = vsub.f32 %v4927_v9, %v4249_v6  ;;  %v2579_v7 = vpop.f32.mrb[29].mxu1  ;;  %v4692_v6 = vmov 28  }
0x15e7   : > { %v2588_v1 = vsub.f32 %v4929_v10, %v2579_v7  ;;  %v4694_v7 = vmov 31  }
0x15e9   : > { %v4376_v8 = vpack.c.bf16 %v2589_v3, %v2588_v1  ;;  %v4693_v3 = vmov 29   ;;  %v4695_v1 = vmov 30  }
0x15eb   : > { %4377 = vmatprep.subr.bf16.mxu0 %v4376_v8 }
0x15ec   : > { %4379 = vmatpush3.bf16.msra.mxu0 %v4376_v8  ;;  %v4696_v8 = vmov 32  }
0x15ed   : > { %4264 = vmatprep.subr.bf16.mxu0 %v4662_v0 }
0x15ef   : > { %4255 = vmatmul.mubr.msk.f32.vlgmr.msra.gmra.mrb[30].mxu0 %vm547_vm2, %v4242_v63  ;;  %v4684_v63 = vmov 17  }
0x15f0   : > { %4266 = vmatprep.mubr.msk.bf16.mxu0 %vm4663_vm0, %v4662_v0 }
0x16c2   : > { %v4256_v12 = vpop.f32.mrb[30].mxu0 }
0x16c3   : > { %v2666_v9 = vsub.f32 %v4936_v16, %v4256_v12  ;;  %v2656_v10 = vpop.f32.mrb[31].mxu0  ;;  %v2797_v16 = vpack.c.bf16 %v779_v21, %v778_v20  ;;  %v2869_v20 = vld [vmem:[%s5025_s18 + $0x8] sm:$0x1] }
0x16c4   : > { %v2665_v13 = vsub.f32 %v4938_v17, %v2656_v10  ;;  %v4665_v17 = vmov 1  }
0x16c5   : > { %4495 = vset.pattern.permute.xlu0 %v4665_v17  ;;  %v2872_v17 = vunpack.c.l.bf16 %v2869_v20 }
0x16c6   : > { %v4380_v15 = vpack.c.bf16 %v2666_v9, %v2665_v13  ;;  %2874 = vperm.xlu0 %4495, %v5047_v43   ;;  %v2861_v13 = vpop.permute.xlu1 %2860 }
0x16c8   : > { %4381 = vmatprep.subr.bf16.mxu1 %v4380_v15 }
0x16c9   : > { %4383 = vmatpush3.bf16.msra.mxu1 %v4380_v15  ;;  %v3948_v15 = vld [vmem:[%s5025_s18] sm:$0xff]  }
0x16ca   : > { %4270 = vmatprep.subr.bf16.mxu1 %v4662_v0  ;;  %4504 = vset.pattern.permute.xlu0 %v4667_v23  ;;  %v2897_v14 = vpop.permute.xlu1 %2896  ;;  %v3949_v21 = vunpack.c.l.bf16 %v3948_v15 }
0x16cb   : > { %3060 = vperm.xlu0 %4504, %v5047_v43   ;;  %v2901_v38 = vmul.f32 %v2897_v14, %v2872_v17 }
0x16cc   : > { %4262 = vmatmul.mubr.msk.f32.vlgmr.msra.gmra.mrb[30].mxu1 %vm547_vm2, %v2429_v57  ;;  %v2863_v41 = vmul.f32 %v3949_v21, %v2861_v13 }
0x16cd   : > { %4271 = vmatpush3.bf16.msra.mxu1 %v5030_v18  ;;  %4272 = vmatprep.mubr.msk.bf16.mxu1 %vm4663_vm0, %v4662_v0 }
0x16ce   : > { %4282 = vmatprep.subr.bf16.mxu1 %v4662_v0  ;;  %v2919_v19 = vpop.permute.xlu1 %2918 }
0x16cf   : > { %4507 = vset.pattern.permute.xlu0 %v4669_v27  ;;  %v2923_v50 = vmul.f32 %v2919_v19, %v2916_v39 }
0x16d0   : > { %4273 = vmatmul.mubr.msk.bf16.vlgmr.msra.gmra.mrb[32].mxu1 %vm547_vm2, %v2797_v16  ;;  %3123 = vperm.xlu0 %4507, %v5047_v43  }
0x16d1   : > { %4283 = vmatpush3.bf16.msra.mxu1 %v2797_v16  ;;  %4284 = vmatprep.mubr.msk.bf16.mxu1 %vm4663_vm0, %v4662_v0  ;;  %v5092_v16 = vunpack.c.h.bf16 %v3948_v15 }
0x16d2   : > { %v2941_v23 = vpop.permute.xlu1 %2940 }
0x16d3   : > { %v2900_v32 = vmul.f32 %v5092_v16, %v2897_v14  ;;  %v2922_v24 = vmul.f32 %v5092_v16, %v2919_v19  ;;  %v2945_v61 = vmul.f32 %v2941_v23, %v2916_v39 }
0x16d4   : > { %4510 = vset.pattern.permute.xlu0 %v4684_v63 }
0x16d5   : > { %3197 = vperm.xlu0 %4510, %v5047_v43   ;;  %v2907_v44 = vrot.slane %v2900_v32, 2 }
0x16d6   : > { %v2963_v37 = vpop.permute.xlu1 %2962 }
0x16d9   : > { %4513 = vset.pattern.permute.xlu0 %v4686_v47  ;;  %v2931_v47 = vrot.slane %v2923_v50, 3 }
0x16da   : > { %3239 = vperm.xlu0 %4513, %v5047_v43  }
0x16de   : > { %4516 = vset.pattern.permute.xlu0 %v4688_v62 }
0x16df   : > { %3302 = vperm.xlu0 %4516, %v5047_v43  }
0x16e3   : > { %4519 = vset.pattern.permute.xlu0 %v4690_v4  ;;  %v2966_v4 = vmul.f32 %v5092_v16, %v2963_v37 }
0x16e4   : > { %3342 = vperm.xlu0 %4519, %v5047_v43  }
0x16e8   : > { %4522 = vset.pattern.permute.xlu0 %v4692_v6 }
0x16e9   : > { %3419 = vperm.xlu0 %4522, %v5047_v43  }
0x16ed   : > { %4525 = vset.pattern.permute.xlu0 %v4694_v7 }
0x16ee   : > { %3482 = vperm.xlu0 %4525, %v5047_v43  }
0x16f2   : > { %4527 = vset.pattern.permute.xlu0 %v4696_v8 }
0x1745   : > { %v2875_v54 = vpop.permute.xlu0 %2874 }
0x1746   : > { %v2877_v25 = vmul.f32 %v3949_v21, %v2875_v54  ;;  %v2878_v27 = vmul.f32 %v5092_v16, %v2875_v54  ;;  %v2879_v29 = vmul.f32 %v2875_v54, %v2872_v17 }
0x1748   : > { %v2884_v34 = vrot.slane %v2877_v25, 1  ;;  %v2885_v35 = vrot.slane %v2878_v27, 1  ;;  %v2887_v40 = vrot.slane %v2879_v29, 1 }
0x179f   : > { %v4263_v26 = vpop.f32.mrb[30].mxu1 }
0x17a0   : > { %v2749_v48 = vmul.f32 0.25, %v4263_v26  ;;  %v2739_v49 = vpop.f32.mrb[31].mxu1  ;;  %v2886_v26 = vsel %vm2883_vm5, %v2884_v34, %v2885_v35 }
0x17a1   : > { %v2748_v51 = vmul.f32 0.25, %v2739_v49  ;;  %v2909_v49 = vrot.slane %v2901_v38, 2  ;;  %v2891_v55 = vadd.f32 %v2886_v26, %v2863_v41  ;;  %v3034_v41 = vld [vmem:[%s5025_s18 + $0xc] sm:$0x1]  ;;  %v3057_v26 = vld [vmem:[%s5025_s18 + $0x4] sm:$0xe] }
0x17a3   : > { %v2751_v28 = vpack.c.bf16 %v2749_v48, %v2748_v51  ;;  %v2841_v53 = vpop.f32.mrb[32].mxu1  ;;  %v2864_v48 = vmul.f32 %v5092_v16, %v2861_v13  ;;  %v2888_v51 = vsel %vm2883_vm5, %v2885_v35, %v2887_v40  ;;  %v2910_v30 = vsel %vm2905_vm6, %v2907_v44, %v2909_v49  ;;  %v5121_v35 = vld [vmem:[%s5025_s18 + $0x4] ss:$12 sps:$4 sm:$0xff]  }
0x17a4   : > { %v4274_v56 = vpop.f32.mrb[33].mxu1  ;;  %v2973_v13 = vrot.slane %v2966_v4, 5  ;;  %v5125_v40 = vunpack.c.l.bf16 %v5030_v18 }
0x17a5   : > { %4265 = vmatpush3.bf16.msra.mxu0 %v2751_v28  ;;  %v2844_v57 = vpop.f32.mrb[34].mxu1  ;;  %v2959_v28 = vld [vmem:[%s5025_s18 + $0x8] sm:$0x7]  ;;  %v2892_v63 = vadd.f32 %v2888_v51, %v2864_v48 }
0x17a6   : > { %v2848_v58 = vpack.c.bf16 %v2844_v57, %v2841_v53  ;;  %v4275_v59 = vpop.f32.mrb[35].mxu1  ;;  %4276 = vmatprep.subr.bf16.mxu0 %v4662_v0  ;;  %v2985_v53 = vpop.permute.xlu1 %2984  ;;  %v2929_v57 = vrot.slane %v2922_v24, 3  ;;  %v2960_v62 = vunpack.c.l.bf16 %v2959_v28 }
0x17a7   : > { %v2944_v59 = vmul.f32 %v5092_v16, %v2941_v23  ;;  %v2988_v21 = vmul.f32 %v5092_v16, %v2985_v53 }
0x17a8   : > { %4267 = vmatmul.mubr.msk.bf16.vlgmr.msra.gmra.mrb[32].mxu0 %vm547_vm2, %v2750_v60  ;;  %v2981_v60 = vld [vmem:[%s5025_s18] sm:$0x8] }
0x17a9   : > { %4277 = vmatpush3.bf16.msra.mxu0 %v2848_v58  ;;  %4278 = vmatprep.mubr.msk.bf16.mxu0 %vm4663_vm0, %v4662_v0  ;;  %v4689_v0 = vmov 26   ;;  %v2943_v58 = vmul.f32 %v2941_v23, %v2938_v46  ;;  %v2951_v7 = vrot.slane %v2944_v59, 4  ;;  %v2995_v32 = vrot.slane %v2988_v21, 6 }
0x17aa   : > { %4520 = vset.pattern.permute.xlu1 %v4689_v0  ;;  %v2965_v0 = vmul.f32 %v2963_v37, %v2938_v46  ;;  %v3035_v46 = vunpack.c.l.bf16 %v5121_v35 }
0x17ab   : > { %3377 = vperm.xlu1 %4520, %v5047_v43  }
0x17af   : > { %4521 = vset.pattern.permute.xlu1 %v4691_v5 }
0x17b0   : > { %3398 = vperm.xlu1 %4521, %v5047_v43  }
0x17b4   : > { %4523 = vset.pattern.permute.xlu1 %v4693_v3  ;;  %v2950_v3 = vrot.slane %v2943_v58, 4  ;;  %v3061_v58 = vpop.permute.xlu0 %3060 }
0x17b5   : > { %3440 = vperm.xlu1 %4523, %v5047_v43   ;;  %v3064_v4 = vmul.f32 %v3061_v58, %v5125_v40 }
0x17b9   : > { %4524 = vset.pattern.permute.xlu1 %v4695_v1  ;;  %v2982_v1 = vunpack.c.l.bf16 %v2981_v60 }
0x17ba   : > { %3461 = vperm.xlu1 %4524, %v5047_v43  }
0x17bb   : > { %v2987_v20 = vmul.f32 %v2985_v53, %v2982_v1 }
0x17be   : > { %4526 = vset.pattern.permute.xlu1 %v4696_v8  ;;  %v3007_v8 = vpop.permute.xlu1 %3006 }
0x17bf   : > { %3501 = vperm.xlu1 %4526, %v5047_v43   ;;  %v2893_v43 = vld [vmem:[%s5025_s18] sm:$0xe]  ;;  %v3009_v33 = vmul.f32 %v3007_v8, %v2982_v1  ;;  %v3010_v34 = vmul.f32 %v5092_v16, %v3007_v8  ;;  %v3099_v1 = vld [vmem:[%s5025_s18 + $0x4] sm:$0xc] }
0x17c0   : > { %v2894_v22 = vunpack.c.l.bf16 %v2893_v43 }
0x17c1   : > { %v3017_v24 = vrot.slane %v3010_v34, 7 }
0x17c2   : > { %v2899_v31 = vmul.f32 %v2897_v14, %v2894_v22  ;;  %v2921_v45 = vmul.f32 %v2919_v19, %v2894_v22  ;;  %v5112_v14 = vld [vmem:[%s5025_s18 + $0x8] sm:$0xff]   ;;  %v2952_v19 = vsel %vm2949_vm8, %v2950_v3, %v2951_v7  ;;  %v2989_v22 = vmul.f32 %v2985_v53, %v2960_v62  ;;  %v3040_v27 = vpop.permute.xlu1 %3039 }
0x17c3   : > { %v3004_v23 = vunpack.c.l.bf16 %v5112_v14  ;;  %v3058_v53 = vunpack.c.l.bf16 %v3057_v26 }
0x17c4   : > { %v2906_v42 = vrot.slane %v2899_v31, 2  ;;  %v2928_v56 = vrot.slane %v2921_v45, 3  ;;  %v2994_v31 = vrot.slane %v2987_v20, 6  ;;  %v2997_v38 = vrot.slane %v2989_v22, 6 }
0x17c5   : > { %v3011_v39 = vmul.f32 %v3007_v8, %v3004_v23  ;;  %v3016_v45 = vrot.slane %v3009_v33, 7  ;;  %v3124_v33 = vpop.permute.xlu0 %3123 }
0x17c6   : > { %v2908_v52 = vsel %vm2905_vm6, %v2906_v42, %v2907_v44  ;;  %v2930_v6 = vsel %vm2927_vm7, %v2928_v56, %v2929_v57  ;;  %v2996_v44 = vsel %vm2993_vm10, %v2994_v31, %v2995_v32  ;;  %v3027_v48 = vpop.permute.xlu1 %3026  ;;  %v2998_v50 = vsel %vm2993_vm10, %v2995_v32, %v2997_v38 }
0x17c7   : > { %v2913_v5 = vadd.f32 %v2908_v52, %v2891_v55  ;;  %v3019_v51 = vrot.slane %v3011_v39, 7  ;;  %v3037_v52 = vunpack.c.l.bf16 %v3034_v41  ;;  %v3042_v55 = vmul.f32 %v3040_v27, %v3035_v46 }
0x17c8   : > { %v3043_v56 = vmul.f32 %v3040_v27, %v5125_v40 }
0x17c9   : > { %v2935_v15 = vadd.f32 %v2930_v6, %v2913_v5  ;;  %v3044_v60 = vmul.f32 %v3040_v27, %v3037_v52  ;;  %v3048_v5 = vrot.slane %v3042_v55, 1 }
0x17ca   : > { %v3049_v6 = vrot.slane %v3043_v56, 1 }
0x17cb   : > { %v2957_v29 = vadd.f32 %v2952_v19, %v2935_v15  ;;  %v3051_v8 = vrot.slane %v3044_v60, 1  ;;  %v3100_v19 = vunpack.c.l.bf16 %v3099_v1  ;;  %v3959_v1 = vld [vmem:[%s5025_s18 + $0x8] sm:$0xff]  }
0x187b   : > { %v2789_v2 = vpop.f32.mrb[32].mxu0 }
0x187c   : > { %v4268_v11 = vpop.f32.mrb[33].mxu0 }
0x187d   : > { %v2792_v12 = vpop.f32.mrb[34].mxu0  ;;  %v2932_v11 = vsel %vm2927_vm7, %v2929_v57, %v2931_v47  ;;  %v3018_v57 = vsel %vm3015_vm11, %v3016_v45, %v3017_v24  ;;  %v3029_v47 = vmul.f32 %v5092_v16, %v3027_v48  ;;  %v3126_v45 = vmul.f32 %v3124_v33, %v3100_v19 }
0x187e   : > { %v2796_v9 = vpack.c.bf16 %v2792_v12, %v2789_v2  ;;  %v4269_v10 = vpop.f32.mrb[35].mxu0  ;;  %v2914_v2 = vadd.f32 %v2910_v30, %v2892_v63  ;;  %v2953_v12 = vrot.slane %v2945_v61, 4  ;;  %v3020_v63 = vsel %vm3015_vm11, %v3017_v24, %v3019_v51  ;;  %v3078_v61 = vld [vmem:[%s5025_s18 + $0xc] sm:$0x3] }
0x187f   : > { %v2972_v10 = vrot.slane %v2965_v0, 5  ;;  %v3063_v0 = vmul.f32 %v3061_v58, %v3058_v53  ;;  %v3127_v24 = vmul.f32 %v3124_v33, %v5125_v40  ;;  %v3132_v55 = vrot.slane %v3126_v45, 5 }
0x1880   : > { %4279 = vmatmul.mubr.msk.bf16.vlgmr.msra.gmra.mrb[36].mxu0 %vm547_vm2, %v2796_v9  ;;  %4285 = vmatmul.mubr.msk.bf16.vlgmr.msra.gmra.mrb[36].mxu1 %vm547_vm2, %v2796_v9  ;;  %v2967_v9 = vmul.f32 %v2963_v37, %v2960_v62  ;;  %v2936_v43 = vadd.f32 %v2932_v11, %v2914_v2  ;;  %v2954_v54 = vsel %vm2949_vm8, %v2951_v7, %v2953_v12  ;;  %v3082_v62 = vpop.permute.xlu1 %3081  ;;  %v3079_v2 = vunpack.c.l.bf16 %v3078_v61 }
0x1881   : > { %v2974_v25 = vsel %vm2971_vm9, %v2972_v10, %v2973_v13  ;;  %v3030_v7 = vmul.f32 %v3027_v48, %v3004_v23  ;;  %v3065_v11 = vmul.f32 %v3061_v58, %v3037_v52  ;;  %v3070_v10 = vrot.slane %v3064_v4, 2  ;;  %v3120_v23 = vld [vmem:[%s5025_s18 + $0xc] sm:$0x7] }
0x1882   : > { %v2975_v17 = vrot.slane %v2967_v9, 5  ;;  %v2958_v36 = vadd.f32 %v2954_v54, %v2936_v43  ;;  %v2979_v42 = vadd.f32 %v2974_v25, %v2957_v29  ;;  %v3069_v9 = vrot.slane %v3063_v0, 2 }
0x1883   : > { %v3084_v16 = vmul.f32 %v3082_v62, %v3058_v53  ;;  %v3085_v15 = vmul.f32 %v3082_v62, %v5125_v40  ;;  %v3052_v43 = vsel %vm2883_vm5, %v3049_v6, %v3051_v8  ;;  %v3086_v54 = vmul.f32 %v3082_v62, %v3079_v2 }
0x1884   : > { %v2976_v37 = vsel %vm2971_vm9, %v2973_v13, %v2975_v17  ;;  %v3001_v28 = vadd.f32 %v2996_v44, %v2979_v42  ;;  %v3050_v13 = vsel %vm2883_vm5, %v3048_v5, %v3049_v6  ;;  %v3103_v21 = vpop.permute.xlu1 %3102  ;;  %v3072_v17 = vrot.slane %v3065_v11, 2 }
0x1885   : > { %v2980_v49 = vadd.f32 %v2976_v37, %v2958_v36  ;;  %v3071_v25 = vsel %vm2905_vm6, %v3069_v9, %v3070_v10  ;;  %v3090_v27 = vrot.slane %v3084_v16, 3  ;;  %v3091_v29 = vrot.slane %v3085_v15, 3  ;;  %v3141_v36 = vld [vmem:[%s5025_s18 + $0x4] sm:$0x8] }
0x1886   : > { %v3023_v30 = vadd.f32 %v3018_v57, %v3001_v28  ;;  %v3105_v31 = vmul.f32 %v3103_v21, %v3100_v19  ;;  %v3106_v32 = vmul.f32 %v3103_v21, %v5125_v40  ;;  %v3093_v37 = vrot.slane %v3086_v54, 3  ;;  %v3198_v54 = vpop.permute.xlu0 %3197 }
0x1887   : > { %v3002_v59 = vadd.f32 %v2998_v50, %v2980_v49  ;;  %v3107_v38 = vmul.f32 %v3103_v21, %v3079_v2  ;;  %v3121_v39 = vunpack.c.l.bf16 %v3120_v23  ;;  %v3073_v41 = vsel %vm2905_vm6, %v3070_v10, %v3072_v17 }
0x1888   : > { %v3031_v12 = vadd.f32 %v3029_v47, %v3023_v30  ;;  %v3145_v42 = vpop.permute.xlu1 %3144  ;;  %v3092_v46 = vsel %vm2927_vm7, %v3090_v27, %v3091_v29  ;;  %v3111_v26 = vrot.slane %v3105_v31, 4  ;;  %v3112_v48 = vrot.slane %v3106_v32, 4 }
0x1889   : > { %v3024_v3 = vadd.f32 %v3020_v63, %v3002_v59  ;;  %v3142_v49 = vunpack.c.l.bf16 %v3141_v36  ;;  %v3094_v51 = vsel %vm2927_vm7, %v3091_v29, %v3093_v37  ;;  %v3114_v52 = vrot.slane %v3107_v38, 4 }
0x188a   : > { %v3055_v22 = vadd.f32 %v3050_v13, %v3031_v12  ;;  %v3128_v28 = vmul.f32 %v3124_v33, %v3121_v39  ;;  %v3133_v56 = vrot.slane %v3127_v24, 5  ;;  %v3113_v57 = vsel %vm2949_vm8, %v3111_v26, %v3112_v48  ;;  %v3192_v13 = vld [vmem:[%s5025_s18 + $0x10] sm:$0x1]  ;;  %v3257_v26 = vld [vmem:[%s5025_s18 + $0x8] sm:$0xc] }
0x188b   : > { %v3032_v20 = vadd.f32 %v3030_v7, %v3024_v3  ;;  %v3147_v58 = vmul.f32 %v3145_v42, %v3142_v49  ;;  %v3148_v59 = vmul.f32 %v3145_v42, %v5125_v40  ;;  %v3115_v30 = vsel %vm2949_vm8, %v3112_v48, %v3114_v52 }
0x188c   : > { %v3076_v44 = vadd.f32 %v3071_v25, %v3055_v22  ;;  %v3165_v60 = vpop.permute.xlu1 %3164  ;;  %v3149_v47 = vmul.f32 %v3145_v42, %v3121_v39  ;;  %v3162_v61 = vunpack.c.h.bf16 %v5030_v18  ;;  %v3135_v62 = vrot.slane %v3128_v28, 5  ;;  %v3236_v42 = vld [vmem:[%s5025_s18 + $0x10] sm:$0x3] }
0x188d   : > { %v3056_v34 = vadd.f32 %v3052_v43, %v3032_v20  ;;  %v3134_v4 = vsel %vm2971_vm9, %v3132_v55, %v3133_v56  ;;  %v3153_v5 = vrot.slane %v3147_v58, 6  ;;  %v3154_v6 = vrot.slane %v3148_v59, 6  ;;  %v3215_v20 = vld [vmem:[%s5025_s18 + $0x8] sm:$0xe] }
0x188e   : > { %v3097_v53 = vadd.f32 %v3092_v46, %v3076_v44  ;;  %v3167_v3 = vmul.f32 %v3165_v60, %v3142_v49  ;;  %v3168_v7 = vmul.f32 %v3165_v60, %v5125_v40  ;;  %v3156_v2 = vrot.slane %v3149_v47, 6  ;;  %v3240_v49 = vpop.permute.xlu0 %3239 }
0x188f   : > { %v3077_v50 = vadd.f32 %v3073_v41, %v3056_v34  ;;  %v3169_v11 = vmul.f32 %v3165_v60, %v3162_v61  ;;  %v3136_v12 = vsel %vm2971_vm9, %v3133_v56, %v3135_v62  ;;  %v5158_v18 = vunpack.c.h.bf16 %v3959_v1 }
0x1890   : > { %v3118_v0 = vadd.f32 %v3113_v57, %v3097_v53  ;;  %v3184_v9 = vpop.permute.xlu1 %3183  ;;  %v3155_v16 = vsel %vm2993_vm10, %v3153_v5, %v3154_v6  ;;  %v3173_v15 = vrot.slane %v3167_v3, 7  ;;  %v3174_v19 = vrot.slane %v3168_v7, 7 }
0x1891   : > { %v3098_v63 = vadd.f32 %v3094_v51, %v3077_v50  ;;  %v3957_v21 = vunpack.c.l.bf16 %v3959_v1  ;;  %v3157_v17 = vsel %vm2993_vm10, %v3154_v6, %v3156_v2  ;;  %v3176_v22 = vrot.slane %v3169_v11, 7 }
0x1892   : > { %v3139_v10 = vadd.f32 %v3134_v4, %v3118_v0  ;;  %v3195_v23 = vunpack.c.l.bf16 %v3192_v13  ;;  %v3216_v27 = vunpack.c.l.bf16 %v3215_v20  ;;  %v3175_v29 = vsel %vm3015_vm11, %v3173_v15, %v3174_v19  ;;  %v3278_v0 = vld [vmem:[%s5025_s18 + $0x10] sm:$0x7] }
0x1893   : > { %v3119_v8 = vadd.f32 %v3115_v30, %v3098_v63  ;;  %v3200_v31 = vmul.f32 %v3957_v21, %v3198_v54  ;;  %v3201_v32 = vmul.f32 %v5158_v18, %v3198_v54  ;;  %v3177_v36 = vsel %vm3015_vm11, %v3174_v19, %v3176_v22 }
0x1894   : > { %v3160_v25 = vadd.f32 %v3155_v16, %v3139_v10  ;;  %v3219_v34 = vpop.permute.xlu1 %3218  ;;  %v3202_v37 = vmul.f32 %v3198_v54, %v3195_v23  ;;  %v3186_v38 = vmul.f32 %v3184_v9, %v5125_v40  ;;  %v3187_v46 = vmul.f32 %v3184_v9, %v3162_v61  ;;  %v3303_v54 = vpop.permute.xlu0 %3302 }
0x1895   : > { %v3140_v43 = vadd.f32 %v3136_v12, %v3119_v8  ;;  %v3221_v39 = vmul.f32 %v3219_v34, %v3216_v27  ;;  %v3222_v41 = vmul.f32 %v5158_v18, %v3219_v34  ;;  %v3206_v45 = vrot.slane %v3200_v31, 1  ;;  %v3299_v8 = vld [vmem:[%s5025_s18 + $0x8] sm:$0x8]  ;;  %v5183_v31 = vld [vmem:[%s5025_s18 + $0x10] sm:$0xff]  }
0x1896   : > { %v3180_v44 = vadd.f32 %v3175_v29, %v3160_v25  ;;  %v3207_v24 = vrot.slane %v3201_v32, 1  ;;  %v3223_v50 = vmul.f32 %v3219_v34, %v3195_v23  ;;  %v3237_v51 = vunpack.c.l.bf16 %v3236_v42 }
0x1897   : > { %v3161_v33 = vadd.f32 %v3157_v17, %v3140_v43  ;;  %v3209_v52 = vrot.slane %v3202_v37, 1  ;;  %v3227_v28 = vrot.slane %v3221_v39, 2  ;;  %v3228_v53 = vrot.slane %v3222_v41, 2 }
0x1898   : > { %v3261_v55 = vpop.permute.xlu1 %3260  ;;  %v3188_v56 = vadd.f32 %v3186_v38, %v3180_v44  ;;  %v3258_v40 = vunpack.c.l.bf16 %v3257_v26  ;;  %v3208_v57 = vsel %vm2883_vm5, %v3206_v45, %v3207_v24  ;;  %v3242_v58 = vmul.f32 %v3240_v49, %v3216_v27 }
0x1899   : > { %v3181_v48 = vadd.f32 %v3177_v36, %v3161_v33  ;;  %v3243_v59 = vmul.f32 %v5158_v18, %v3240_v49  ;;  %v3230_v63 = vrot.slane %v3223_v50, 2  ;;  %v3210_v30 = vsel %vm2883_vm5, %v3207_v24, %v3209_v52 }
0x189a   : > { %v3244_v47 = vmul.f32 %v3240_v49, %v3237_v51  ;;  %v3229_v61 = vsel %vm2905_vm6, %v3227_v28, %v3228_v53  ;;  %v3213_v62 = vadd.f32 %v3208_v57, %v3188_v56  ;;  %v3263_v4 = vmul.f32 %v3261_v55, %v3258_v40 }
0x189b   : > { %v3189_v60 = vadd.f32 %v3187_v46, %v3181_v48  ;;  %v3264_v5 = vmul.f32 %v5158_v18, %v3261_v55  ;;  %v3248_v6 = vrot.slane %v3242_v58, 3  ;;  %v3249_v3 = vrot.slane %v3243_v59, 3 }
0x189c   : > { %v3282_v1 = vpop.permute.xlu1 %3281  ;;  %v3231_v2 = vsel %vm2905_vm6, %v3228_v53, %v3230_v63  ;;  %v3265_v11 = vmul.f32 %v3261_v55, %v3237_v51  ;;  %v3279_v12 = vunpack.c.l.bf16 %v3278_v0  ;;  %v3251_v9 = vrot.slane %v3244_v47, 3  ;;  %v3351_v53 = vld [vmem:[%s5025_s18 + $0x14] sm:$0x1] }
0x189d   : > { %v3214_v7 = vadd.f32 %v3210_v30, %v3189_v60  ;;  %v3284_v10 = vmul.f32 %v3282_v1, %v3258_v40  ;;  %v3285_v13 = vmul.f32 %v5158_v18, %v3282_v1  ;;  %v3234_v16 = vadd.f32 %v3229_v61, %v3213_v62  ;;  %v3374_v60 = vld [vmem:[%s5025_s18 + $0xc] sm:$0xe] }
0x189e   : > { %v3269_v15 = vrot.slane %v3263_v4, 4  ;;  %v3270_v19 = vrot.slane %v3264_v5, 4  ;;  %v3250_v20 = vsel %vm2927_vm7, %v3248_v6, %v3249_v3  ;;  %v3300_v21 = vunpack.c.l.bf16 %v3299_v8 }
0x189f   : > { %v3235_v43 = vadd.f32 %v3231_v2, %v3214_v7  ;;  %v3272_v17 = vrot.slane %v3265_v11, 4  ;;  %v3286_v22 = vmul.f32 %v3282_v1, %v3279_v12  ;;  %v3252_v23 = vsel %vm2927_vm7, %v3249_v3, %v3251_v9  ;;  %v3395_v9 = vld [vmem:[%s5025_s18 + $0x14] sm:$0x3] }
0x18a0   : > { %v3290_v25 = vrot.slane %v3284_v10, 5  ;;  %v3291_v27 = vrot.slane %v3285_v13, 5  ;;  %v3255_v29 = vadd.f32 %v3250_v20, %v3234_v16  ;;  %v3324_v32 = vpop.permute.xlu1 %3323  ;;  %v3271_v33 = vsel %vm2949_vm8, %v3269_v15, %v3270_v19  ;;  %v3416_v20 = vld [vmem:[%s5025_s18 + $0xc] sm:$0xc] }
0x18a1   : > { %v3305_v34 = vmul.f32 %v3303_v54, %v3300_v21  ;;  %v3306_v36 = vmul.f32 %v5158_v18, %v3303_v54  ;;  %v3256_v37 = vadd.f32 %v3252_v23, %v3235_v43  ;;  %v3273_v38 = vsel %vm2949_vm8, %v3270_v19, %v3272_v17 }
0x18a2   : > { %v3293_v39 = vrot.slane %v3286_v22, 5  ;;  %v3321_v41 = vunpack.c.l.bf16 %v5183_v31  ;;  %v3307_v42 = vmul.f32 %v3303_v54, %v3279_v12  ;;  %v3292_v44 = vsel %vm2971_vm9, %v3290_v25, %v3291_v27 }
0x18a3   : > { %v3276_v45 = vadd.f32 %v3271_v33, %v3255_v29  ;;  %v3326_v24 = vmul.f32 %v3324_v32, %v3300_v21  ;;  %v3327_v46 = vmul.f32 %v5158_v18, %v3324_v32  ;;  %v3311_v26 = vrot.slane %v3305_v34, 6 }
0x18a4   : > { %v3312_v48 = vrot.slane %v3306_v36, 6  ;;  %v3277_v49 = vadd.f32 %v3273_v38, %v3256_v37  ;;  %v3357_v50 = vpop.permute.xlu1 %3356  ;;  %v3294_v51 = vsel %vm2971_vm9, %v3291_v27, %v3293_v39  ;;  %v3328_v52 = vmul.f32 %v3324_v32, %v3321_v41 }
0x18a5   : > { %v3314_v28 = vrot.slane %v3307_v42, 6  ;;  %v3352_v55 = vunpack.c.h.bf16 %v5112_v14  ;;  %v3297_v56 = vadd.f32 %v3292_v44, %v3276_v45  ;;  %v3332_v40 = vrot.slane %v3326_v24, 7 }
0x18a6   : > { %v3333_v57 = vrot.slane %v3327_v46, 7  ;;  %v5195_v58 = vunpack.c.h.bf16 %v5121_v35  ;;  %v3313_v59 = vsel %vm2993_vm10, %v3311_v26, %v3312_v48  ;;  %v3298_v63 = vadd.f32 %v3294_v51, %v3277_v49  ;;  %v3343_v35 = vpop.permute.xlu0 %3342  ;;  %v3458_v26 = vld [vmem:[%s5025_s18 + $0xc] sm:$0x8] }
0x18a7   : > { %v3335_v30 = vrot.slane %v3328_v52, 7  ;;  %v3354_v47 = vunpack.c.l.bf16 %v3351_v53  ;;  %v3315_v61 = vsel %vm2993_vm10, %v3312_v48, %v3314_v28  ;;  %v3375_v62 = vunpack.c.l.bf16 %v3374_v60 }
0x18a8   : > { %v3378_v0 = vpop.permute.xlu1 %3377  ;;  %v3318_v4 = vadd.f32 %v3313_v59, %v3297_v56  ;;  %v3359_v5 = vmul.f32 %v3357_v50, %v3352_v55  ;;  %v3360_v14 = vmul.f32 %v3357_v50, %v5195_v58  ;;  %v3334_v6 = vsel %vm3015_vm11, %v3332_v40, %v3333_v57 }
0x18a9   : > { %v3319_v3 = vadd.f32 %v3315_v61, %v3298_v63  ;;  %v3361_v7 = vmul.f32 %v3357_v50, %v3354_v47  ;;  %v3336_v1 = vsel %vm3015_vm11, %v3333_v57, %v3335_v30  ;;  %v3380_v8 = vmul.f32 %v3378_v0, %v3375_v62 }
0x18aa   : > { %v3381_v2 = vmul.f32 %v3378_v0, %v5195_v58  ;;  %v3339_v11 = vadd.f32 %v3334_v6, %v3318_v4  ;;  %v3345_v12 = vmul.f32 %v5158_v18, %v3343_v35  ;;  %v3365_v10 = vrot.slane %v3359_v5, 1  ;;  %v3420_v33 = vpop.permute.xlu0 %3419 }
0x18ab   : > { %v3366_v13 = vrot.slane %v3360_v14, 1  ;;  %v3340_v16 = vadd.f32 %v3336_v1, %v3319_v3  ;;  %v3346_v15 = vmul.f32 %v3343_v35, %v3321_v41  ;;  %v3368_v21 = vrot.slane %v3361_v7, 1  ;;  %v3437_v41 = vld [vmem:[%s5025_s18 + $0x14] sm:$0x7] }
0x18ac   : > { %v3399_v19 = vpop.permute.xlu1 %3398  ;;  %v3382_v43 = vmul.f32 %v3378_v0, %v3354_v47  ;;  %v3396_v54 = vunpack.c.l.bf16 %v3395_v9  ;;  %v3386_v17 = vrot.slane %v3380_v8, 2  ;;  %v3387_v22 = vrot.slane %v3381_v2, 2 }
0x18ad   : > { %v3347_v23 = vadd.f32 %v3345_v12, %v3339_v11  ;;  %v3367_v25 = vsel %vm2883_vm5, %v3365_v10, %v3366_v13  ;;  %v3401_v27 = vmul.f32 %v3399_v19, %v3375_v62  ;;  %v3402_v18 = vmul.f32 %v3399_v19, %v5195_v58 }
0x18ae   : > { %v3417_v29 = vunpack.c.l.bf16 %v3416_v20  ;;  %v3348_v32 = vadd.f32 %v3346_v15, %v3340_v16  ;;  %v3389_v34 = vrot.slane %v3382_v43, 2  ;;  %v3369_v36 = vsel %vm2883_vm5, %v3366_v13, %v3368_v21  ;;  %v3483_v35 = vpop.permute.xlu0 %3482 }
0x18af   : > { %v3403_v37 = vmul.f32 %v3399_v19, %v3396_v54  ;;  %v3388_v38 = vsel %vm2905_vm6, %v3386_v17, %v3387_v22  ;;  %v3372_v39 = vadd.f32 %v3367_v25, %v3347_v23  ;;  %v3407_v44 = vrot.slane %v3401_v27, 3 }
0x18b0   : > { %v3441_v42 = vpop.permute.xlu1 %3440  ;;  %v3408_v45 = vrot.slane %v3402_v18, 3  ;;  %v3422_v24 = vmul.f32 %v3420_v33, %v3417_v29  ;;  %v3423_v46 = vmul.f32 %v3420_v33, %v5195_v58  ;;  %v3373_v48 = vadd.f32 %v3369_v36, %v3348_v32 }
0x18b1   : > { %v3390_v49 = vsel %vm2905_vm6, %v3387_v22, %v3389_v34  ;;  %v3410_v50 = vrot.slane %v3403_v37, 3  ;;  %v3438_v51 = vunpack.c.l.bf16 %v3437_v41  ;;  %v3424_v52 = vmul.f32 %v3420_v33, %v3396_v54 }
0x18b2   : > { %v3393_v28 = vadd.f32 %v3388_v38, %v3372_v39  ;;  %v3443_v53 = vmul.f32 %v3441_v42, %v3417_v29  ;;  %v3459_v55 = vunpack.c.l.bf16 %v3458_v26  ;;  %v3409_v56 = vsel %vm2927_vm7, %v3407_v44, %v3408_v45 }
0x18b3   : > { %v3444_v40 = vmul.f32 %v3441_v42, %v5195_v58  ;;  %v3428_v57 = vrot.slane %v3422_v24, 4  ;;  %v3429_v59 = vrot.slane %v3423_v46, 4  ;;  %v3394_v60 = vadd.f32 %v3390_v49, %v3373_v48 }
0x18b4   : > { %v3462_v63 = vpop.permute.xlu1 %3461  ;;  %v3411_v30 = vsel %vm2927_vm7, %v3408_v45, %v3410_v50  ;;  %v3445_v47 = vmul.f32 %v3441_v42, %v3438_v51  ;;  %v3431_v61 = vrot.slane %v3424_v52, 4  ;;  %v3414_v62 = vadd.f32 %v3409_v56, %v3393_v28 }
0x18b5   : > { %v3449_v0 = vrot.slane %v3443_v53, 5  ;;  %v3450_v4 = vrot.slane %v3444_v40, 5  ;;  %v3430_v5 = vsel %vm2949_vm8, %v3428_v57, %v3429_v59  ;;  %v3464_v14 = vmul.f32 %v3462_v63, %v3459_v55 }
0x18b6   : > { %v3465_v6 = vmul.f32 %v3462_v63, %v5195_v58  ;;  %v3415_v3 = vadd.f32 %v3411_v30, %v3394_v60  ;;  %v3452_v7 = vrot.slane %v3445_v47, 5  ;;  %v3432_v1 = vsel %vm2949_vm8, %v3429_v59, %v3431_v61 }
0x18b7   : > { %v3466_v8 = vmul.f32 %v3462_v63, %v3438_v51  ;;  %v3480_v2 = vunpack.c.h.bf16 %v5183_v31  ;;  %v3435_v11 = vadd.f32 %v3430_v5, %v3414_v62  ;;  %v3485_v12 = vmul.f32 %v3483_v35, %v3459_v55 }
0x18b8   : > { %v3451_v9 = vsel %vm2971_vm9, %v3449_v0, %v3450_v4  ;;  %v3470_v10 = vrot.slane %v3464_v14, 6  ;;  %v3471_v13 = vrot.slane %v3465_v6, 6  ;;  %v3486_v16 = vmul.f32 %v3483_v35, %v5195_v58  ;;  %v3502_v18 = vpop.permute.xlu1 %3501 }
0x18b9   : > { %v3436_v15 = vadd.f32 %v3432_v1, %v3415_v3  ;;  %v3453_v19 = vsel %vm2971_vm9, %v3450_v4, %v3452_v7  ;;  %v3473_v20 = vrot.slane %v3466_v8, 6  ;;  %v3487_v21 = vmul.f32 %v3483_v35, %v3480_v2 }
0x18ba   : > { %v3456_v43 = vadd.f32 %v3451_v9, %v3435_v11  ;;  %v3491_v54 = vrot.slane %v3485_v12, 7  ;;  %v3492_v31 = vrot.slane %v3486_v16, 7  ;;  %v3472_v17 = vsel %vm2993_vm10, %v3470_v10, %v3471_v13 }
0x18bb   : > { %v3457_v22 = vadd.f32 %v3453_v19, %v3436_v15  ;;  %v3494_v23 = vrot.slane %v3487_v21, 7  ;;  %v3474_v25 = vsel %vm2993_vm10, %v3471_v13, %v3473_v20  ;;  %v3504_v34 = vmul.f32 %v3502_v18, %v5195_v58 }
0x18bc   : > { %v3477_v27 = vadd.f32 %v3472_v17, %v3456_v43  ;;  %v3493_v29 = vsel %vm3015_vm11, %v3491_v54, %v3492_v31  ;;  %v3505_v37 = vmul.f32 %v3502_v18, %v3480_v2 }
0x18bd   : > { %v3478_v32 = vadd.f32 %v3474_v25, %v3457_v22  ;;  %v3495_v33 = vsel %vm3015_vm11, %v3492_v31, %v3494_v23 }
0x18be   : > { %v3498_v36 = vadd.f32 %v3493_v29, %v3477_v27 }
0x18bf   : > { %v3499_v38 = vadd.f32 %v3495_v33, %v3478_v32 }
0x18c0   : > { %v3506_v39 = vadd.f32 %v3504_v34, %v3498_v36 }
0x18c1   : > { %v3507_v24 = vadd.f32 %v3505_v37, %v3499_v38 }
0x1953   : > { %v3545_v41 = vpop.f32.mrb[36].mxu0  ;;  %v3597_v42 = vpop.f32.mrb[36].mxu1 }
0x1954   : > { %v3546_v58 = vadd.f32 %v3545_v41, %v3506_v39  ;;  %3604 = vst.msk [vmem:[%s420_s23] sm:$0xff] %vm547_vm2, %v3597_v42  ;;  %v4280_v44 = vpop.f32.mrb[37].mxu0  ;;  %v4286_v45 = vpop.f32.mrb[37].mxu1 }
0x1955   : > { %v3548_v46 = vpop.f32.mrb[38].mxu0  ;;  %v3600_v26 = vpop.f32.mrb[38].mxu1 }
0x1956   : > { %v3945_v48 = vpack.c.bf16 %v3546_v58, %v3546_v58  ;;  %v3549_v49 = vadd.f32 %v3548_v46, %v3507_v24  ;;  %3605 = vst.msk [vmem:[%s420_s23 + $0x8] sm:$0xff] %vm547_vm2, %v3600_v26  ;;  %v4281_v50 = vpop.f32.mrb[39].mxu0  ;;  %v4287_v51 = vpop.f32.mrb[39].mxu1 }
0x1957   : > { %4579 = shalt.err (!%p4576_p7)
}
0x1958   : > { %s4580_s21 = scalar_lea.hbm %s5240_s13, 256  ;;  %s4584_s10 = scalar_lea.hbm %s5315_s7, 4096 }
0x1959   : > { %p4581_p9 = scmp.ne.s32.totalorder %s5240_s13, %s4580_s21  ;;  %p4585_p12 = scmp.lt.u32.totalorder %s5240_s13, %s5315_s7 }
0x195a   : > { %p4586_p13 = scmp.lt.u32.totalorder %s4584_s10, %s4580_s21  ;;  %p4588_p1 = scmp.lt.u32.totalorder %s4580_s21, %s5240_s13 }
0x195b   : > { %p4582_p10 = pnand %p4581_p9, %p4791_p3 }
0x195c   : > { %p4587_p0 = por %p4586_p13, %p4585_p12 }
0x195d   : > { %p4583_p11 = pneg %p4582_p10 }
0x195e   : > { %p4589_p2 = por %p4588_p1, %p4587_p0 }
0x1960   : > { %p4590_p4 = pnand %p4589_p2, %p4583_p11 }
0x1962   : > { %4593 = shalt.err (!%p4590_p4)
}
0x1963   : > { %s4698_s18 = smov 128   ;;  %s4699_s17 = smov 8   ;;  %3561 = vst.msk [vmem:[%s5247_s20] sm:$0xf] %vm3560_vm12, %v3945_v48  ;;  %v3946_v52 = vpack.c.bf16 %v3549_v49, %v3549_v49 }
0x1964   : > { %4386 = dma.vmem_to_hbm [thread:$0]  (%p4791_p3), %s5235_s9, 256, %s5240_s13, %s5252_s12, %s4698_s18, %s4698_s18, %s4699_s17  }
0x1965   : > { %3562 = vst.msk [vmem:[%s5247_s20 + $0x4] sm:$0xf] %vm3560_vm12, %v3946_v52 }
0x1966 PF: > { %p4392_p5 = scmp.ge.s32.totalorder %s4660_s8, 2  ;;  %s3661_s11 = sand.u32 1, %s4632_s24  }
0x1967   : > { %s3662_s16 = scalar_lea.sflag [#allocation3], %s3661_s11 }
0x1968   : > { %p4389_p6 = pnand %p4392_p5, %p4800_p8 }
0x196a   : > { %4627 = dma.done.wait (!%p4389_p6), %s3662_s16, 256  }
0x196b   : > { %4629 = vsyncadd (!%p4389_p6), %s3662_s16, 4294967040  ;;  %s21_s8 = sadd.s32 1, %s4660_s8   ;;  %s5326_s27 = sld [smem:[#allocation5_spill]] }
0x196c   : > { %p18_p7 = scmp.ge.s32.totalorder %s21_s8, 18   ;;  %s5327_s28 = sld [smem:[#allocation6_spill]] }
0x196d   : > { %s5328_s29 = sld [smem:[#allocation7_spill]]  ;;  %s5329_s30 = sld [smem:[#allocation8_spill]] }
0x196e   : > { %s5330_s24 = smov %s4636_s25  ;;  %s5331_s25 = smov %s4640_s26 }
0x196f   : > { %s5332_s26 = smov %s4809_s19  ;;  %20 = sbr.rel (!%p18_p7) target bundleno = 5 (0x5), region = 106 }
0x1976   :  { %3667 = vsyncpa [#allocation3], 1 }
0x1977   :  { %3669 = vsyncpa [#allocation3 + $0x1], 1 }

</bundles_post_ra>
